<compile_context>
chip_gen: v6e
topology: v6e:2x2x1
jax: 0.10.0
libtpu: 0.0.40
codegen_flags: <defaults>
</compile_context>

<pallas_src>
import functools

import jax
import jax.numpy as jnp
from jax import lax
from jax.experimental import pallas as pl
from jax.experimental.pallas import tpu as pltpu

COUT_PAD = 128                 # lane-dense channel padding for conv outputs
VMEM_LIMIT = 32 * 1024 * 1024  # explicit scoped-VMEM budget (safe on v5e..v7x)


# ---------------------------------------------------------------------------
# Fused Conv2d (valid, stride 1) + bias + ReLU + MaxPool2d(2, stride=2).
# Patches arrive pool-tap-OUTERMOST: p_ref is (4, Mt, K) where tap t = dh*2+dw
# and rows within a tap are (b, hp, wp). ReLU and max-pool commute and bias is
# shared across taps, so: max over the 4 tap matmuls, then bias + ReLU once.
# ---------------------------------------------------------------------------
def _conv_pool_relu_kernel(p_ref, w_ref, b_ref, o_ref):
    w = w_ref[...]                                            # (K, 128) bf16
    acc = jnp.dot(p_ref[0], w, preferred_element_type=jnp.float32)
    acc = jnp.maximum(acc, jnp.dot(p_ref[1], w, preferred_element_type=jnp.float32))
    acc = jnp.maximum(acc, jnp.dot(p_ref[2], w, preferred_element_type=jnp.float32))
    acc = jnp.maximum(acc, jnp.dot(p_ref[3], w, preferred_element_type=jnp.float32))
    o_ref[...] = jnp.maximum(acc + b_ref[...], 0.0)           # f32 epilogue


def _pick_m_tile(m_total, cap=512):
    """Largest multiple-of-8 divisor of m_total that is <= cap and leaves at
    least two grid steps when possible (keeps both v7x TensorCores busy)."""
    cap = min(cap, max(m_total // 2, 8))
    best, t = 8, 8
    while t <= min(cap, m_total):
        if m_total % t == 0:
            best = t
        t += 8
    return best


def conv_pool_relu(x, cin, w4, b):
    """x: (B,H,W,Cpad) f32 (only first `cin` channels valid),
    w4: (KH,KW,cin,Cout), b: (Cout,)
    -> ((B, Hp, Wp, COUT_PAD) f32 with first Cout channels valid, Cout)."""
    B, H, W, _ = x.shape
    KH, KW, _, Cout = w4.shape
    Ho, Wo = H - KH + 1, W - KW + 1
    Hp, Wp = Ho // 2, Wo // 2
    K = KH * KW * cin
    Mp = Hp * Wp
    Mp_pad = ((Mp + 7) // 8) * 8
    M_total = B * Mp_pad
    Mt = _pick_m_tile(M_total)

    # Pool-outermost im2col (XLA glue): tap index = dh*2+dw, rows (b,hp,wp),
    # feature order (kh, kw, ci) matching w4.reshape(K, Cout). Channels are
    # sliced lazily here (no materialized [..., :Cout] slice after the conv).
    taps = []
    for dh in range(2):
        for dw in range(2):
            cols = []
            for kh in range(KH):
                for kw in range(KW):
                    cols.append(x[:, dh + kh:dh + kh + 2 * Hp:2,
                                  dw + kw:dw + kw + 2 * Wp:2, :cin])
            taps.append(jnp.concatenate(cols, axis=-1).reshape(B, Mp, K))
    pat = jnp.stack(taps, axis=0)                            # (4, B, Mp, K)
    pat = jnp.pad(pat, ((0, 0), (0, 0), (0, Mp_pad - Mp), (0, 0)))
    pat = pat.reshape(4, M_total, K).astype(jnp.bfloat16)    # batch folded in M

    w2 = jnp.pad(w4.reshape(K, Cout),
                 ((0, 0), (0, COUT_PAD - Cout))).astype(jnp.bfloat16)
    b2 = jnp.pad(b.reshape(1, Cout), ((0, 0), (0, COUT_PAD - Cout)))  # f32

    out = pl.pallas_call(
        _conv_pool_relu_kernel,
        out_shape=jax.ShapeDtypeStruct((M_total, COUT_PAD), jnp.float32),
        grid=(M_total // Mt,),
        in_specs=[
            pl.BlockSpec((4, Mt, K), lambda i: (0, i, 0)),
            pl.BlockSpec((K, COUT_PAD), lambda i: (0, 0)),
            pl.BlockSpec((1, COUT_PAD), lambda i: (0, 0)),
        ],
        out_specs=pl.BlockSpec((Mt, COUT_PAD), lambda i: (i, 0)),
        compiler_params=pltpu.CompilerParams(
            dimension_semantics=("parallel",),
            vmem_limit_bytes=VMEM_LIMIT),
    )(pat, w2, b2)

    out = out.reshape(B, Mp_pad, COUT_PAD)[:, :Mp, :].reshape(B, Hp, Wp, COUT_PAD)
    return out, Cout


# ---------------------------------------------------------------------------
# F.affine_grid + F.grid_sample (bilinear, padding_mode='zeros',
# align_corners=False) fused into one Pallas kernel. Grid = (batch, pixel
# block); each step writes one lane-dense (1, Pblk) output row. The bilinear
# gather is one weighted column-selection matmul on the MXU plus one weighted
# row-selection multiply-reduce; the weighted selectors are "tent" functions
# relu(1 - |iota - ix|), which also implement zero padding exactly.
# ---------------------------------------------------------------------------
def _stn_sampler_kernel(theta_ref, img_ref, o_ref, *, H, W, pblk):
    b = pl.program_id(0)
    pb = pl.program_id(1)
    Hf, Wf = float(H), float(W)
    p = (pb * pblk +
         lax.broadcasted_iota(jnp.int32, (1, pblk), 1)).astype(jnp.float32)
    ii = jnp.floor(p / Wf)                    # output row index
    jj = p - ii * Wf                          # output col index
    # affine_grid base grid (align_corners=False)
    xn = (2.0 * jj + 1.0) / Wf - 1.0
    yn = (2.0 * ii + 1.0) / Hf - 1.0
    t00 = theta_ref[b, 0]; t01 = theta_ref[b, 1]; t02 = theta_ref[b, 2]
    t10 = theta_ref[b, 3]; t11 = theta_ref[b, 4]; t12 = theta_ref[b, 5]
    gx = t00 * xn + t01 * yn + t02
    gy = t10 * xn + t11 * yn + t12
    # grid_sample unnormalize (align_corners=False)
    ix = ((gx + 1.0) * Wf - 1.0) * 0.5
    iy = ((gy + 1.0) * Hf - 1.0) * 0.5
    # Tent-weight selectors: relu(1 - |i - ix|) == bilinear corner weights with
    # out-of-bounds taps implicitly zeroed (padding_mode='zeros').
    col_iota = lax.broadcasted_iota(jnp.int32, (W, pblk), 0).astype(jnp.float32)
    row_iota = lax.broadcasted_iota(jnp.int32, (H, pblk), 0).astype(jnp.float32)
    cwT = jnp.maximum(1.0 - jnp.abs(col_iota - ix), 0.0)      # (W, Pblk)
    rwT = jnp.maximum(1.0 - jnp.abs(row_iota - iy), 0.0)      # (H, Pblk)
    t = jnp.dot(img_ref[...], cwT, preferred_element_type=jnp.float32)  # (H, Pblk)
    o_ref[...] = jnp.sum(rwT * t, axis=0, keepdims=True)                # (1, Pblk)


def _pick_pixel_tile(hw, cap=2048):
    """Largest multiple-of-128 divisor of hw that is <= cap (full row if none)."""
    best = None
    for t in range(128, min(hw, cap) + 1, 128):
        if hw % t == 0:
            best = t
    return best if best is not None else hw


def grid_sample_affine(img, theta):
    """img: (B, H, W) f32, theta: (B, 6) = flattened (2,3) affine matrices."""
    B, H, W = img.shape
    HW = H * W
    pblk = _pick_pixel_tile(HW)
    out = pl.pallas_call(
        functools.partial(_stn_sampler_kernel, H=H, W=W, pblk=pblk),
        out_shape=jax.ShapeDtypeStruct((B, 1, HW), jnp.float32),
        grid=(B, HW // pblk),
        in_specs=[
            pl.BlockSpec(memory_space=pltpu.MemorySpace.SMEM),   # theta (B, 6)
            pl.BlockSpec((None, H, W), lambda b, p: (b, 0, 0)),  # one image, reused
        ],
        out_specs=pl.BlockSpec((None, 1, pblk), lambda b, p: (b, 0, p)),
        compiler_params=pltpu.CompilerParams(
            dimension_semantics=("parallel", "parallel"),
            vmem_limit_bytes=VMEM_LIMIT),
    )(theta, img)
    return out.reshape(B, H, W)


# ---------------------------------------------------------------------------
# STNNet forward.
# ---------------------------------------------------------------------------
def loc_output_shape(H, W):
    h, w = (H - 6) // 2, (W - 6) // 2          # conv7 + pool2
    h, w = (h - 4) // 2, (w - 4) // 2          # conv5 + pool2
    h, w = (h - 4) // 2, (w - 4) // 2          # conv5 + pool2
    return 30, h, w


def init_params(key, loc_flat):
    ks = jax.random.split(key, 8)
    return {
        "w1": 0.1 * jax.random.normal(ks[0], (7, 7, 1, 10), jnp.float32),
        "b1": 0.1 * jax.random.normal(ks[1], (10,), jnp.float32),
        "w2": 0.1 * jax.random.normal(ks[2], (5, 5, 10, 20), jnp.float32),
        "b2": 0.1 * jax.random.normal(ks[3], (20,), jnp.float32),
        "w3": 0.1 * jax.random.normal(ks[4], (5, 5, 20, 30), jnp.float32),
        "b3": 0.1 * jax.random.normal(ks[5], (30,), jnp.float32),
        "fc1_w": 0.1 * jax.random.normal(ks[6], (loc_flat, 32), jnp.float32),
        "fc1_b": 0.1 * jax.random.normal(ks[7], (32,), jnp.float32),
        # fc_loc[2]: zero weights, identity-affine bias (as in the PyTorch module)
        "fc2_w": jnp.zeros((32, 6), jnp.float32),
        "fc2_b": jnp.array([1, 0, 0, 0, 1, 0], jnp.float32),
    }


def stn_forward(x_nchw, params):
    B, C, H, W = x_nchw.shape
    x = jnp.transpose(x_nchw, (0, 2, 3, 1))                       # NCHW -> NHWC
    # localization: (conv -> maxpool2 -> relu) x 3, each one fused Pallas kernel.
    # Outputs stay 128-channel padded; channels are sliced lazily downstream.
    h, c = conv_pool_relu(x, C, params["w1"], params["b1"])
    h, c = conv_pool_relu(h, c, params["w2"], params["b2"])
    h, c = conv_pool_relu(h, c, params["w3"], params["b3"])
    # flatten per sample in torch NCHW order (C, H, W)
    xs = jnp.transpose(h[..., :c], (0, 3, 1, 2)).reshape(B, -1)
    # fc_loc in plain jnp (a dedicated pallas_call is pure launch/DMA overhead
    # for a (B,120)@(120,32)@(32,6) chain; XLA fuses it).
    hfc = jnp.maximum(xs @ params["fc1_w"] + params["fc1_b"], 0.0)
    theta = hfc @ params["fc2_w"] + params["fc2_b"]               # (B, 6) ~ (B,2,3)
    # TODO(synk): sampler handles a single input channel (C=1, as in the module).
    out = grid_sample_affine(x_nchw[:, 0, :, :], theta)           # (B, H, W)
    return out[:, None, :, :]                                     # (B, 1, H, W)


if __name__ == "__main__":
    B, H, W = 2, 48, 48
    Cl, Hl, Wl = loc_output_shape(H, W)
    key = jax.random.PRNGKey(0)
    kp, kx = jax.random.split(key)
    params = init_params(kp, Cl * Hl * Wl)
    x = jax.random.normal(kx, (B, 1, H, W), dtype=jnp.float32)

    out = jax.jit(stn_forward)(x, params)
    out = jax.block_until_ready(out)

    assert out.shape == (B, 1, H, W)
    # fc_loc[2] has zero weight and identity bias, so theta is the identity
    # affine and the STN must reproduce its input up to bilinear rounding.
    err = float(jnp.max(jnp.abs(out - x)))
    assert err < 1e-2, f"identity-STN check failed: max abs err = {err}"
    print("KERNEL_OK")
</pallas_src>

<mosaic_0001>
module attributes {stable_mosaic.version = 11 : i64} {
  func.func @_conv_pool_relu_kernel(%arg0: i32, %arg1: memref<4x448x49xbf16, #tpu.memory_space<vmem>>, %arg2: memref<49x128xbf16, #tpu.memory_space<vmem>>, %arg3: memref<1x128xf32, #tpu.memory_space<vmem>>, %arg4: memref<448x128xf32, #tpu.memory_space<vmem>>) attributes {dimension_semantics = [#tpu.dimension_semantics<parallel>], iteration_bounds = array<i64: 2>, scalar_prefetch = 0 : i64, scratch_operands = 0 : i64, tpu.core_type = #tpu.core_type<tc>, window_params = [{transform_indices = @transform_0, window_bounds = array<i64: 4, 448, 49>}, {pipeline_mode = #tpu.pipeline_mode<synchronous>, transform_indices = @transform_1, window_bounds = array<i64: 49, 128>}, {pipeline_mode = #tpu.pipeline_mode<synchronous>, transform_indices = @transform_2, window_bounds = array<i64: 1, 128>}, {transform_indices = @transform_3, window_bounds = array<i64: 448, 128>}]} {
    %c0 = arith.constant 0 : index
    %c0_0 = arith.constant 0 : index
    %0 = vector.load %arg2[%c0, %c0_0] : memref<49x128xbf16, #tpu.memory_space<vmem>>, vector<49x128xbf16>
    %c0_1 = arith.constant 0 : index
    %c0_2 = arith.constant 0 : index
    %c0_3 = arith.constant 0 : index
    %1 = vector.load %arg1[%c0_1, %c0_2, %c0_3] : memref<4x448x49xbf16, #tpu.memory_space<vmem>>, vector<1x448x49xbf16>
    %2 = vector.shape_cast %1 : vector<1x448x49xbf16> to vector<448x49xbf16>
    %cst = arith.constant dense<0.000000e+00> : vector<448x128xf32>
    %3 = tpu.matmul %2, %0, %cst {dimension_numbers = #tpu.dot_dimension_numbers<[1], [0], [0], [1], [0, 0, 1, 1], [], []>} : vector<448x49xbf16>, vector<49x128xbf16>, vector<448x128xf32> -> vector<448x128xf32>
    %c1 = arith.constant 1 : index
    %c0_4 = arith.constant 0 : index
    %c0_5 = arith.constant 0 : index
    %4 = vector.load %arg1[%c1, %c0_4, %c0_5] : memref<4x448x49xbf16, #tpu.memory_space<vmem>>, vector<1x448x49xbf16>
    %5 = vector.shape_cast %4 : vector<1x448x49xbf16> to vector<448x49xbf16>
    %cst_6 = arith.constant dense<0.000000e+00> : vector<448x128xf32>
    %6 = tpu.matmul %5, %0, %cst_6 {dimension_numbers = #tpu.dot_dimension_numbers<[1], [0], [0], [1], [0, 0, 1, 1], [], []>} : vector<448x49xbf16>, vector<49x128xbf16>, vector<448x128xf32> -> vector<448x128xf32>
    %7 = arith.maximumf %3, %6 : vector<448x128xf32>
    %c2 = arith.constant 2 : index
    %c0_7 = arith.constant 0 : index
    %c0_8 = arith.constant 0 : index
    %8 = vector.load %arg1[%c2, %c0_7, %c0_8] : memref<4x448x49xbf16, #tpu.memory_space<vmem>>, vector<1x448x49xbf16>
    %9 = vector.shape_cast %8 : vector<1x448x49xbf16> to vector<448x49xbf16>
    %cst_9 = arith.constant dense<0.000000e+00> : vector<448x128xf32>
    %10 = tpu.matmul %9, %0, %cst_9 {dimension_numbers = #tpu.dot_dimension_numbers<[1], [0], [0], [1], [0, 0, 1, 1], [], []>} : vector<448x49xbf16>, vector<49x128xbf16>, vector<448x128xf32> -> vector<448x128xf32>
    %11 = arith.maximumf %7, %10 : vector<448x128xf32>
    %c3 = arith.constant 3 : index
    %c0_10 = arith.constant 0 : index
    %c0_11 = arith.constant 0 : index
    %12 = vector.load %arg1[%c3, %c0_10, %c0_11] : memref<4x448x49xbf16, #tpu.memory_space<vmem>>, vector<1x448x49xbf16>
    %13 = vector.shape_cast %12 : vector<1x448x49xbf16> to vector<448x49xbf16>
    %cst_12 = arith.constant dense<0.000000e+00> : vector<448x128xf32>
    %14 = tpu.matmul %13, %0, %cst_12 {dimension_numbers = #tpu.dot_dimension_numbers<[1], [0], [0], [1], [0, 0, 1, 1], [], []>} : vector<448x49xbf16>, vector<49x128xbf16>, vector<448x128xf32> -> vector<448x128xf32>
    %15 = arith.maximumf %11, %14 : vector<448x128xf32>
    %c0_13 = arith.constant 0 : index
    %c0_14 = arith.constant 0 : index
    %16 = vector.load %arg3[%c0_13, %c0_14] : memref<1x128xf32, #tpu.memory_space<vmem>>, vector<1x128xf32>
    %17 = vector.broadcast %16 : vector<1x128xf32> to vector<448x128xf32>
    %18 = arith.addf %15, %17 : vector<448x128xf32>
    %cst_15 = arith.constant 0.000000e+00 : f32
    %19 = vector.broadcast %cst_15 : f32 to vector<448x128xf32>
    %20 = arith.maximumf %18, %19 : vector<448x128xf32>
    %c0_16 = arith.constant 0 : index
    %c0_17 = arith.constant 0 : index
    %21 = vector.load %arg4[%c0_16, %c0_17] : memref<448x128xf32, #tpu.memory_space<vmem>>, vector<448x128xf32>
    tpu.vector_store %arg4[%c0_16, %c0_17], %20 {strides = array<i32>} : memref<448x128xf32, #tpu.memory_space<vmem>>, vector<448x128xf32>,
    return
  }
  func.func @transform_0(%arg0: i32) -> (i32, i32, i32) {
    %c0_i32 = arith.constant 0 : i32
    %c0_i32_0 = arith.constant 0 : i32
    %c0_i32_1 = arith.constant 0 : i32
    return %c0_i32, %arg0, %c0_i32_0 : i32, i32, i32
  }
  func.func @transform_1(%arg0: i32) -> (i32, i32) {
    %c0_i32 = arith.constant 0 : i32
    %c0_i32_0 = arith.constant 0 : i32
    %c0_i32_1 = arith.constant 0 : i32
    return %c0_i32, %c0_i32_0 : i32, i32
  }
  func.func @transform_2(%arg0: i32) -> (i32, i32) {
    %c0_i32 = arith.constant 0 : i32
    %c0_i32_0 = arith.constant 0 : i32
    %c0_i32_1 = arith.constant 0 : i32
    return %c0_i32, %c0_i32_0 : i32, i32
  }
  func.func @transform_3(%arg0: i32) -> (i32, i32) {
    %c0_i32 = arith.constant 0 : i32
    %c0_i32_0 = arith.constant 0 : i32
    return %arg0, %c0_i32 : i32, i32
  }
}

module attributes {stable_mosaic.version = 11 : i64} {
  func.func @_conv_pool_relu_kernel(%arg0: i32, %arg1: memref<4x64x250xbf16, #tpu.memory_space<vmem>>, %arg2: memref<250x128xbf16, #tpu.memory_space<vmem>>, %arg3: memref<1x128xf32, #tpu.memory_space<vmem>>, %arg4: memref<64x128xf32, #tpu.memory_space<vmem>>) attributes {dimension_semantics = [#tpu.dimension_semantics<parallel>], iteration_bounds = array<i64: 2>, scalar_prefetch = 0 : i64, scratch_operands = 0 : i64, tpu.core_type = #tpu.core_type<tc>, window_params = [{transform_indices = @transform_0, window_bounds = array<i64: 4, 64, 250>}, {pipeline_mode = #tpu.pipeline_mode<synchronous>, transform_indices = @transform_1, window_bounds = array<i64: 250, 128>}, {pipeline_mode = #tpu.pipeline_mode<synchronous>, transform_indices = @transform_2, window_bounds = array<i64: 1, 128>}, {transform_indices = @transform_3, window_bounds = array<i64: 64, 128>}]} {
    %c0 = arith.constant 0 : index
    %c0_0 = arith.constant 0 : index
    %0 = vector.load %arg2[%c0, %c0_0] : memref<250x128xbf16, #tpu.memory_space<vmem>>, vector<250x128xbf16>
    %c0_1 = arith.constant 0 : index
    %c0_2 = arith.constant 0 : index
    %c0_3 = arith.constant 0 : index
    %1 = vector.load %arg1[%c0_1, %c0_2, %c0_3] : memref<4x64x250xbf16, #tpu.memory_space<vmem>>, vector<1x64x250xbf16>
    %2 = vector.shape_cast %1 : vector<1x64x250xbf16> to vector<64x250xbf16>
    %cst = arith.constant dense<0.000000e+00> : vector<64x128xf32>
    %3 = tpu.matmul %2, %0, %cst {dimension_numbers = #tpu.dot_dimension_numbers<[1], [0], [0], [1], [0, 0, 1, 1], [], []>} : vector<64x250xbf16>, vector<250x128xbf16>, vector<64x128xf32> -> vector<64x128xf32>
    %c1 = arith.constant 1 : index
    %c0_4 = arith.constant 0 : index
    %c0_5 = arith.constant 0 : index
    %4 = vector.load %arg1[%c1, %c0_4, %c0_5] : memref<4x64x250xbf16, #tpu.memory_space<vmem>>, vector<1x64x250xbf16>
    %5 = vector.shape_cast %4 : vector<1x64x250xbf16> to vector<64x250xbf16>
    %cst_6 = arith.constant dense<0.000000e+00> : vector<64x128xf32>
    %6 = tpu.matmul %5, %0, %cst_6 {dimension_numbers = #tpu.dot_dimension_numbers<[1], [0], [0], [1], [0, 0, 1, 1], [], []>} : vector<64x250xbf16>, vector<250x128xbf16>, vector<64x128xf32> -> vector<64x128xf32>
    %7 = arith.maximumf %3, %6 : vector<64x128xf32>
    %c2 = arith.constant 2 : index
    %c0_7 = arith.constant 0 : index
    %c0_8 = arith.constant 0 : index
    %8 = vector.load %arg1[%c2, %c0_7, %c0_8] : memref<4x64x250xbf16, #tpu.memory_space<vmem>>, vector<1x64x250xbf16>
    %9 = vector.shape_cast %8 : vector<1x64x250xbf16> to vector<64x250xbf16>
    %cst_9 = arith.constant dense<0.000000e+00> : vector<64x128xf32>
    %10 = tpu.matmul %9, %0, %cst_9 {dimension_numbers = #tpu.dot_dimension_numbers<[1], [0], [0], [1], [0, 0, 1, 1], [], []>} : vector<64x250xbf16>, vector<250x128xbf16>, vector<64x128xf32> -> vector<64x128xf32>
    %11 = arith.maximumf %7, %10 : vector<64x128xf32>
    %c3 = arith.constant 3 : index
    %c0_10 = arith.constant 0 : index
    %c0_11 = arith.constant 0 : index
    %12 = vector.load %arg1[%c3, %c0_10, %c0_11] : memref<4x64x250xbf16, #tpu.memory_space<vmem>>, vector<1x64x250xbf16>
    %13 = vector.shape_cast %12 : vector<1x64x250xbf16> to vector<64x250xbf16>
    %cst_12 = arith.constant dense<0.000000e+00> : vector<64x128xf32>
    %14 = tpu.matmul %13, %0, %cst_12 {dimension_numbers = #tpu.dot_dimension_numbers<[1], [0], [0], [1], [0, 0, 1, 1], [], []>} : vector<64x250xbf16>, vector<250x128xbf16>, vector<64x128xf32> -> vector<64x128xf32>
    %15 = arith.maximumf %11, %14 : vector<64x128xf32>
    %c0_13 = arith.constant 0 : index
    %c0_14 = arith.constant 0 : index
    %16 = vector.load %arg3[%c0_13, %c0_14] : memref<1x128xf32, #tpu.memory_space<vmem>>, vector<1x128xf32>
    %17 = vector.broadcast %16 : vector<1x128xf32> to vector<64x128xf32>
    %18 = arith.addf %15, %17 : vector<64x128xf32>
    %cst_15 = arith.constant 0.000000e+00 : f32
    %19 = vector.broadcast %cst_15 : f32 to vector<64x128xf32>
    %20 = arith.maximumf %18, %19 : vector<64x128xf32>
    %c0_16 = arith.constant 0 : index
    %c0_17 = arith.constant 0 : index
    %21 = vector.load %arg4[%c0_16, %c0_17] : memref<64x128xf32, #tpu.memory_space<vmem>>, vector<64x128xf32>
    tpu.vector_store %arg4[%c0_16, %c0_17], %20 {strides = array<i32>} : memref<64x128xf32, #tpu.memory_space<vmem>>, vector<64x128xf32>,
    return
  }
  func.func @transform_0(%arg0: i32) -> (i32, i32, i32) {
    %c0_i32 = arith.constant 0 : i32
    %c0_i32_0 = arith.constant 0 : i32
    %c0_i32_1 = arith.constant 0 : i32
    return %c0_i32, %arg0, %c0_i32_0 : i32, i32, i32
  }
  func.func @transform_1(%arg0: i32) -> (i32, i32) {
    %c0_i32 = arith.constant 0 : i32
    %c0_i32_0 = arith.constant 0 : i32
    %c0_i32_1 = arith.constant 0 : i32
    return %c0_i32, %c0_i32_0 : i32, i32
  }
  func.func @transform_2(%arg0: i32) -> (i32, i32) {
    %c0_i32 = arith.constant 0 : i32
    %c0_i32_0 = arith.constant 0 : i32
    %c0_i32_1 = arith.constant 0 : i32
    return %c0_i32, %c0_i32_0 : i32, i32
  }
  func.func @transform_3(%arg0: i32) -> (i32, i32) {
    %c0_i32 = arith.constant 0 : i32
    %c0_i32_0 = arith.constant 0 : i32
    return %arg0, %c0_i32 : i32, i32
  }
}

module attributes {stable_mosaic.version = 11 : i64} {
  func.func @_conv_pool_relu_kernel(%arg0: i32, %arg1: memref<4x8x500xbf16, #tpu.memory_space<vmem>>, %arg2: memref<500x128xbf16, #tpu.memory_space<vmem>>, %arg3: memref<1x128xf32, #tpu.memory_space<vmem>>, %arg4: memref<8x128xf32, #tpu.memory_space<vmem>>) attributes {dimension_semantics = [#tpu.dimension_semantics<parallel>], iteration_bounds = array<i64: 2>, scalar_prefetch = 0 : i64, scratch_operands = 0 : i64, tpu.core_type = #tpu.core_type<tc>, window_params = [{transform_indices = @transform_0, window_bounds = array<i64: 4, 8, 500>}, {pipeline_mode = #tpu.pipeline_mode<synchronous>, transform_indices = @transform_1, window_bounds = array<i64: 500, 128>}, {pipeline_mode = #tpu.pipeline_mode<synchronous>, transform_indices = @transform_2, window_bounds = array<i64: 1, 128>}, {transform_indices = @transform_3, window_bounds = array<i64: 8, 128>}]} {
    %c0 = arith.constant 0 : index
    %c0_0 = arith.constant 0 : index
    %0 = vector.load %arg2[%c0, %c0_0] : memref<500x128xbf16, #tpu.memory_space<vmem>>, vector<500x128xbf16>
    %c0_1 = arith.constant 0 : index
    %c0_2 = arith.constant 0 : index
    %c0_3 = arith.constant 0 : index
    %1 = vector.load %arg1[%c0_1, %c0_2, %c0_3] : memref<4x8x500xbf16, #tpu.memory_space<vmem>>, vector<1x8x500xbf16>
    %2 = vector.shape_cast %1 : vector<1x8x500xbf16> to vector<8x500xbf16>
    %cst = arith.constant dense<0.000000e+00> : vector<8x128xf32>
    %3 = tpu.matmul %2, %0, %cst {dimension_numbers = #tpu.dot_dimension_numbers<[1], [0], [0], [1], [0, 0, 1, 1], [], []>} : vector<8x500xbf16>, vector<500x128xbf16>, vector<8x128xf32> -> vector<8x128xf32>
    %c1 = arith.constant 1 : index
    %c0_4 = arith.constant 0 : index
    %c0_5 = arith.constant 0 : index
    %4 = vector.load %arg1[%c1, %c0_4, %c0_5] : memref<4x8x500xbf16, #tpu.memory_space<vmem>>, vector<1x8x500xbf16>
    %5 = vector.shape_cast %4 : vector<1x8x500xbf16> to vector<8x500xbf16>
    %cst_6 = arith.constant dense<0.000000e+00> : vector<8x128xf32>
    %6 = tpu.matmul %5, %0, %cst_6 {dimension_numbers = #tpu.dot_dimension_numbers<[1], [0], [0], [1], [0, 0, 1, 1], [], []>} : vector<8x500xbf16>, vector<500x128xbf16>, vector<8x128xf32> -> vector<8x128xf32>
    %7 = arith.maximumf %3, %6 : vector<8x128xf32>
    %c2 = arith.constant 2 : index
    %c0_7 = arith.constant 0 : index
    %c0_8 = arith.constant 0 : index
    %8 = vector.load %arg1[%c2, %c0_7, %c0_8] : memref<4x8x500xbf16, #tpu.memory_space<vmem>>, vector<1x8x500xbf16>
    %9 = vector.shape_cast %8 : vector<1x8x500xbf16> to vector<8x500xbf16>
    %cst_9 = arith.constant dense<0.000000e+00> : vector<8x128xf32>
    %10 = tpu.matmul %9, %0, %cst_9 {dimension_numbers = #tpu.dot_dimension_numbers<[1], [0], [0], [1], [0, 0, 1, 1], [], []>} : vector<8x500xbf16>, vector<500x128xbf16>, vector<8x128xf32> -> vector<8x128xf32>
    %11 = arith.maximumf %7, %10 : vector<8x128xf32>
    %c3 = arith.constant 3 : index
    %c0_10 = arith.constant 0 : index
    %c0_11 = arith.constant 0 : index
    %12 = vector.load %arg1[%c3, %c0_10, %c0_11] : memref<4x8x500xbf16, #tpu.memory_space<vmem>>, vector<1x8x500xbf16>
    %13 = vector.shape_cast %12 : vector<1x8x500xbf16> to vector<8x500xbf16>
    %cst_12 = arith.constant dense<0.000000e+00> : vector<8x128xf32>
    %14 = tpu.matmul %13, %0, %cst_12 {dimension_numbers = #tpu.dot_dimension_numbers<[1], [0], [0], [1], [0, 0, 1, 1], [], []>} : vector<8x500xbf16>, vector<500x128xbf16>, vector<8x128xf32> -> vector<8x128xf32>
    %15 = arith.maximumf %11, %14 : vector<8x128xf32>
    %c0_13 = arith.constant 0 : index
    %c0_14 = arith.constant 0 : index
    %16 = vector.load %arg3[%c0_13, %c0_14] : memref<1x128xf32, #tpu.memory_space<vmem>>, vector<1x128xf32>
    %17 = vector.broadcast %16 : vector<1x128xf32> to vector<8x128xf32>
    %18 = arith.addf %15, %17 : vector<8x128xf32>
    %cst_15 = arith.constant 0.000000e+00 : f32
    %19 = vector.broadcast %cst_15 : f32 to vector<8x128xf32>
    %20 = arith.maximumf %18, %19 : vector<8x128xf32>
    %c0_16 = arith.constant 0 : index
    %c0_17 = arith.constant 0 : index
    %21 = vector.load %arg4[%c0_16, %c0_17] : memref<8x128xf32, #tpu.memory_space<vmem>>, vector<8x128xf32>
    tpu.vector_store %arg4[%c0_16, %c0_17], %20 {strides = array<i32>} : memref<8x128xf32, #tpu.memory_space<vmem>>, vector<8x128xf32>,
    return
  }
  func.func @transform_0(%arg0: i32) -> (i32, i32, i32) {
    %c0_i32 = arith.constant 0 : i32
    %c0_i32_0 = arith.constant 0 : i32
    %c0_i32_1 = arith.constant 0 : i32
    return %c0_i32, %arg0, %c0_i32_0 : i32, i32, i32
  }
  func.func @transform_1(%arg0: i32) -> (i32, i32) {
    %c0_i32 = arith.constant 0 : i32
    %c0_i32_0 = arith.constant 0 : i32
    %c0_i32_1 = arith.constant 0 : i32
    return %c0_i32, %c0_i32_0 : i32, i32
  }
  func.func @transform_2(%arg0: i32) -> (i32, i32) {
    %c0_i32 = arith.constant 0 : i32
    %c0_i32_0 = arith.constant 0 : i32
    %c0_i32_1 = arith.constant 0 : i32
    return %c0_i32, %c0_i32_0 : i32, i32
  }
  func.func @transform_3(%arg0: i32) -> (i32, i32) {
    %c0_i32 = arith.constant 0 : i32
    %c0_i32_0 = arith.constant 0 : i32
    return %arg0, %c0_i32 : i32, i32
  }
}

module attributes {stable_mosaic.version = 11 : i64} {
  func.func @_stn_sampler_kernel(%arg0: i32, %arg1: i32, %arg2: memref<2x6xf32, #tpu.memory_space<smem>>, %arg3: memref<1x48x48xf32, #tpu.memory_space<vmem>>, %arg4: memref<1x1x1152xf32, #tpu.memory_space<vmem>>) attributes {dimension_semantics = [#tpu.dimension_semantics<parallel>, #tpu.dimension_semantics<parallel>], iteration_bounds = array<i64: 2, 2>, scalar_prefetch = 0 : i64, scratch_operands = 0 : i64, tpu.core_type = #tpu.core_type<tc>, window_params = [{transform_indices = @transform_0, window_bounds = array<i64: 2, 6>}, {transform_indices = @transform_1, window_bounds = array<i64: 1, 48, 48>}, {transform_indices = @transform_2, window_bounds = array<i64: 1, 1, 1152>}]} {
    %c1152_i32 = arith.constant 1152 : i32
    %0 = arith.muli %arg1, %c1152_i32 : i32
    %1 = tpu.iota {dimensions = array<i32: 1>} : vector<1x1152xi32>
    %2 = vector.broadcast %0 : i32 to vector<1x1152xi32>
    %3 = arith.addi %2, %1 : vector<1x1152xi32>
    %4 = arith.sitofp %3 : vector<1x1152xi32> to vector<1x1152xf32>
    %cst = arith.constant 4.800000e+01 : f32
    %5 = vector.broadcast %cst : f32 to vector<1x1152xf32>
    %6 = arith.divf %4, %5 : vector<1x1152xf32>
    %7 = math.floor %6 : vector<1x1152xf32>
    %cst_0 = arith.constant 4.800000e+01 : f32
    %8 = vector.broadcast %cst_0 : f32 to vector<1x1152xf32>
    %9 = arith.mulf %7, %8 : vector<1x1152xf32>
    %10 = arith.subf %4, %9 : vector<1x1152xf32>
    %cst_1 = arith.constant 2.000000e+00 : f32
    %11 = vector.broadcast %cst_1 : f32 to vector<1x1152xf32>
    %12 = arith.mulf %11, %10 : vector<1x1152xf32>
    %cst_2 = arith.constant 1.000000e+00 : f32
    %13 = vector.broadcast %cst_2 : f32 to vector<1x1152xf32>
    %14 = arith.addf %12, %13 : vector<1x1152xf32>
    %cst_3 = arith.constant 4.800000e+01 : f32
    %15 = vector.broadcast %cst_3 : f32 to vector<1x1152xf32>
    %16 = arith.divf %14, %15 : vector<1x1152xf32>
    %cst_4 = arith.constant 1.000000e+00 : f32
    %17 = vector.broadcast %cst_4 : f32 to vector<1x1152xf32>
    %18 = arith.subf %16, %17 : vector<1x1152xf32>
    %cst_5 = arith.constant 2.000000e+00 : f32
    %19 = vector.broadcast %cst_5 : f32 to vector<1x1152xf32>
    %20 = arith.mulf %19, %7 : vector<1x1152xf32>
    %cst_6 = arith.constant 1.000000e+00 : f32
    %21 = vector.broadcast %cst_6 : f32 to vector<1x1152xf32>
    %22 = arith.addf %20, %21 : vector<1x1152xf32>
    %cst_7 = arith.constant 4.800000e+01 : f32
    %23 = vector.broadcast %cst_7 : f32 to vector<1x1152xf32>
    %24 = arith.divf %22, %23 : vector<1x1152xf32>
    %cst_8 = arith.constant 1.000000e+00 : f32
    %25 = vector.broadcast %cst_8 : f32 to vector<1x1152xf32>
    %26 = arith.subf %24, %25 : vector<1x1152xf32>
    %27 = arith.index_cast %arg0 : i32 to index
    %c0 = arith.constant 0 : index
    %28 = memref.load %arg2[%27, %c0] : memref<2x6xf32, #tpu.memory_space<smem>>
    %29 = arith.index_cast %arg0 : i32 to index
    %c1 = arith.constant 1 : index
    %30 = memref.load %arg2[%29, %c1] : memref<2x6xf32, #tpu.memory_space<smem>>
    %31 = arith.index_cast %arg0 : i32 to index
    %c2 = arith.constant 2 : index
    %32 = memref.load %arg2[%31, %c2] : memref<2x6xf32, #tpu.memory_space<smem>>
    %33 = arith.index_cast %arg0 : i32 to index
    %c3 = arith.constant 3 : index
    %34 = memref.load %arg2[%33, %c3] : memref<2x6xf32, #tpu.memory_space<smem>>
    %35 = arith.index_cast %arg0 : i32 to index
    %c4 = arith.constant 4 : index
    %36 = memref.load %arg2[%35, %c4] : memref<2x6xf32, #tpu.memory_space<smem>>
    %37 = arith.index_cast %arg0 : i32 to index
    %c5 = arith.constant 5 : index
    %38 = memref.load %arg2[%37, %c5] : memref<2x6xf32, #tpu.memory_space<smem>>
    %39 = vector.broadcast %28 : f32 to vector<1x1152xf32>
    %40 = arith.mulf %39, %18 : vector<1x1152xf32>
    %41 = vector.broadcast %30 : f32 to vector<1x1152xf32>
    %42 = arith.mulf %41, %26 : vector<1x1152xf32>
    %43 = arith.addf %40, %42 : vector<1x1152xf32>
    %44 = vector.broadcast %32 : f32 to vector<1x1152xf32>
    %45 = arith.addf %43, %44 : vector<1x1152xf32>
    %46 = vector.broadcast %34 : f32 to vector<1x1152xf32>
    %47 = arith.mulf %46, %18 : vector<1x1152xf32>
    %48 = vector.broadcast %36 : f32 to vector<1x1152xf32>
    %49 = arith.mulf %48, %26 : vector<1x1152xf32>
    %50 = arith.addf %47, %49 : vector<1x1152xf32>
    %51 = vector.broadcast %38 : f32 to vector<1x1152xf32>
    %52 = arith.addf %50, %51 : vector<1x1152xf32>
    %cst_9 = arith.constant 1.000000e+00 : f32
    %53 = vector.broadcast %cst_9 : f32 to vector<1x1152xf32>
    %54 = arith.addf %45, %53 : vector<1x1152xf32>
    %cst_10 = arith.constant 4.800000e+01 : f32
    %55 = vector.broadcast %cst_10 : f32 to vector<1x1152xf32>
    %56 = arith.mulf %54, %55 : vector<1x1152xf32>
    %cst_11 = arith.constant 1.000000e+00 : f32
    %57 = vector.broadcast %cst_11 : f32 to vector<1x1152xf32>
    %58 = arith.subf %56, %57 : vector<1x1152xf32>
    %cst_12 = arith.constant 5.000000e-01 : f32
    %59 = vector.broadcast %cst_12 : f32 to vector<1x1152xf32>
    %60 = arith.mulf %58, %59 : vector<1x1152xf32>
    %cst_13 = arith.constant 1.000000e+00 : f32
    %61 = vector.broadcast %cst_13 : f32 to vector<1x1152xf32>
    %62 = arith.addf %52, %61 : vector<1x1152xf32>
    %cst_14 = arith.constant 4.800000e+01 : f32
    %63 = vector.broadcast %cst_14 : f32 to vector<1x1152xf32>
    %64 = arith.mulf %62, %63 : vector<1x1152xf32>
    %cst_15 = arith.constant 1.000000e+00 : f32
    %65 = vector.broadcast %cst_15 : f32 to vector<1x1152xf32>
    %66 = arith.subf %64, %65 : vector<1x1152xf32>
    %cst_16 = arith.constant 5.000000e-01 : f32
    %67 = vector.broadcast %cst_16 : f32 to vector<1x1152xf32>
    %68 = arith.mulf %66, %67 : vector<1x1152xf32>
    %69 = tpu.iota {dimensions = array<i32: 0>} : vector<48x1152xi32>
    %70 = arith.sitofp %69 : vector<48x1152xi32> to vector<48x1152xf32>
    %71 = tpu.iota {dimensions = array<i32: 0>} : vector<48x1152xi32>
    %72 = arith.sitofp %71 : vector<48x1152xi32> to vector<48x1152xf32>
    %73 = vector.broadcast %60 : vector<1x1152xf32> to vector<48x1152xf32>
    %74 = arith.subf %70, %73 : vector<48x1152xf32>
    %75 = math.absf %74 : vector<48x1152xf32>
    %cst_17 = arith.constant 1.000000e+00 : f32
    %76 = vector.broadcast %cst_17 : f32 to vector<48x1152xf32>
    %77 = arith.subf %76, %75 : vector<48x1152xf32>
    %cst_18 = arith.constant 0.000000e+00 : f32
    %78 = vector.broadcast %cst_18 : f32 to vector<48x1152xf32>
    %79 = arith.maximumf %77, %78 : vector<48x1152xf32>
    %80 = vector.broadcast %68 : vector<1x1152xf32> to vector<48x1152xf32>
    %81 = arith.subf %72, %80 : vector<48x1152xf32>
    %82 = math.absf %81 : vector<48x1152xf32>
    %cst_19 = arith.constant 1.000000e+00 : f32
    %83 = vector.broadcast %cst_19 : f32 to vector<48x1152xf32>
    %84 = arith.subf %83, %82 : vector<48x1152xf32>
    %cst_20 = arith.constant 0.000000e+00 : f32
    %85 = vector.broadcast %cst_20 : f32 to vector<48x1152xf32>
    %86 = arith.maximumf %84, %85 : vector<48x1152xf32>
    %c0_21 = arith.constant 0 : index
    %c0_22 = arith.constant 0 : index
    %c0_23 = arith.constant 0 : index
    %87 = vector.load %arg3[%c0_21, %c0_22, %c0_23] : memref<1x48x48xf32, #tpu.memory_space<vmem>>, vector<1x48x48xf32>
    %88 = vector.shape_cast %87 : vector<1x48x48xf32> to vector<48x48xf32>
    %cst_24 = arith.constant dense<0.000000e+00> : vector<48x1152xf32>
    %89 = tpu.matmul %88, %79, %cst_24 {dimension_numbers = #tpu.dot_dimension_numbers<[1], [0], [0], [1], [0, 0, 1, 1], [], []>} : vector<48x48xf32>, vector<48x1152xf32>, vector<48x1152xf32> -> vector<48x1152xf32>
    %90 = arith.mulf %86, %89 : vector<48x1152xf32>
    %cst_25 = arith.constant dense<0.000000e+00> : vector<1152xf32>
    %91 = vector.multi_reduction <add>, %90, %cst_25 [0] : vector<48x1152xf32> to vector<1152xf32>
    %92 = vector.shape_cast %91 : vector<1152xf32> to vector<1x1152xf32>
    %c0_26 = arith.constant 0 : index
    %c0_27 = arith.constant 0 : index
    %c0_28 = arith.constant 0 : index
    %93 = vector.load %arg4[%c0_26, %c0_27, %c0_28] : memref<1x1x1152xf32, #tpu.memory_space<vmem>>, vector<1x1x1152xf32>
    %94 = vector.shape_cast %93 : vector<1x1x1152xf32> to vector<1x1152xf32>
    %95 = vector.shape_cast %92 : vector<1x1152xf32> to vector<1x1x1152xf32>
    tpu.vector_store %arg4[%c0_26, %c0_27, %c0_28], %95 {strides = array<i32>} : memref<1x1x1152xf32, #tpu.memory_space<vmem>>, vector<1x1x1152xf32>,
    return
  }
  func.func @transform_0(%arg0: i32, %arg1: i32) -> (i32, i32) {
    %c0_i32 = arith.constant 0 : i32
    %c0_i32_0 = arith.constant 0 : i32
    %c0_i32_1 = arith.constant 0 : i32
    return %c0_i32, %c0_i32_0 : i32, i32
  }
  func.func @transform_1(%arg0: i32, %arg1: i32) -> (i32, i32, i32) {
    %c0_i32 = arith.constant 0 : i32
    %c0_i32_0 = arith.constant 0 : i32
    %c0_i32_1 = arith.constant 0 : i32
    return %arg0, %c0_i32, %c0_i32_0 : i32, i32, i32
  }
  func.func @transform_2(%arg0: i32, %arg1: i32) -> (i32, i32, i32) {
    %c0_i32 = arith.constant 0 : i32
    %c0_i32_0 = arith.constant 0 : i32
    return %arg0, %c0_i32, %arg1 : i32, i32, i32
  }
}

</mosaic_0001>

<bundles_post_ra>
// kernel: stn_forward.4
= control target key start
LH: loop header
LB: loop body
LE: loop exit
PB: predicated region body
PF: predicated region fallthrough
CT: control target
= control target key end

     0   :  { %s4680_s12 = smov 0   ;;  %s4682_s13 = smov 0   ;;  %s5821_s0 = inlined_call_operand.vmem [shape: bf16[4,896,49], index: 0, kind: input, shape index: {}]   ;;  %s5822_s1 = inlined_call_operand.vmem [shape: bf16[49,128], index: 1, kind: input, shape index: {}]   ;;  %s5823_s2 = inlined_call_operand.vmem [shape: f32[1,128], index: 2, kind: input, shape index: {}]   ;;  %s5824_s3 = inlined_call_operand.vmem [shape: f32[896,128], index: 3, kind: output, shape index: {}]  }
   0x1   :  { %s4684_s14 = smov 0  }
   0x2 LB: > { %s3701_s15 = sadd.s32 4294967295, %s4657_s14   ;;  %s4697_s16 = sadd.s32 1, %s4657_s14   ;;  %s4657_s14 = sphi %s4684_s14, %s6069_s14   ;;  %s4653_s13 = sphi %s4682_s13, %s6068_s13   ;;  %s4649_s12 = sphi %s4680_s12, %s6067_s12  }
   0x3   : > { %s17_s17 = ssub.s32 %s4657_s14, %s4697_s16  ;;  %s20_s18 = sadd.s32 1, %s4653_s13 }
   0x4   : > { %p18_p0 = scmp.eq.s32.totalorder %s17_s17, 0  ;;  %p27_p1 = scmp.ne.s32.totalorder %s4653_s13, %s4649_s12 }
   0x5   : > { %p28_p2 = scmp.eq.s32.totalorder %s4657_s14, 0  ;;  %p3704_p4 = scmp.ge.s32.totalorder %s4657_s14, 2 }
   0x6   : > { %s4706_s19 = scalar_select %p18_p0, %s4653_s13, %s20_s18  }
   0x7   : > { %p29_p3 = por %p28_p2, %p27_p1  ;;  %127 = sbr.rel (%p3704_p4) target bundleno = 73 (0x49), region = 24 }
   0xc   : > { %130 = sbr.rel (!%p29_p3) target bundleno = 73 (0x49), region = 28  ;;  %s132_s20 = sand.u32 (%p29_p3), 1, %s4653_s13  }
   0xd   : > { %s4107_s21 = smul.u32 (%p29_p3), 224, %s4657_s14 }
   0xe   : > { %s4492_s22 = smul.u32 (%p29_p3), 896, %s132_s20 }
   0xf   : > { %s4714_s25 = scalar_lea.vmem (%p29_p3), %s5821_s0, %s4107_s21 }
  0x10   : > { %v154_v0 = vld [vmem:[%s4714_s25] sm:$0xff] (%p29_p3)   ;;  %v158_v1 = vld [vmem:[%s4714_s25 + $0x8] sm:$0xff] (%p29_p3)   ;;  %v162_v2 = vld [vmem:[%s4714_s25 + $0x10] sm:$0xff] (%p29_p3)   ;;  %s4719_s26 = scalar_lea.vmem (%p29_p3), [#allocation2], %s4492_s22 }
  0x11   : > { %155 = vst [vmem:[%s4719_s26] sm:$0xff] %v154_v0   ;;  %159 = vst [vmem:[%s4719_s26 + $0x8] sm:$0xff] %v158_v1   ;;  %v166_v3 = vld [vmem:[%s4714_s25 + $0x18] sm:$0xff]   ;;  %v170_v4 = vld [vmem:[%s4714_s25 + $0x20] sm:$0xff]  }
  0x12   : > { %163 = vst [vmem:[%s4719_s26 + $0x10] sm:$0xff] %v162_v2   ;;  %v174_v5 = vld [vmem:[%s4714_s25 + $0x28] sm:$0xff]   ;;  %167 = vst [vmem:[%s4719_s26 + $0x18] sm:$0xff] %v166_v3   ;;  %v178_v6 = vld [vmem:[%s4714_s25 + $0x30] sm:$0xff]  }
  0x13   : > { %171 = vst [vmem:[%s4719_s26 + $0x20] sm:$0xff] %v170_v4   ;;  %175 = vst [vmem:[%s4719_s26 + $0x28] sm:$0xff] %v174_v5   ;;  %v182_v7 = vld [vmem:[%s4714_s25 + $0x38] sm:$0xff]   ;;  %v186_v8 = vld [vmem:[%s4714_s25 + $0x40] sm:$0xff]  }
  0x14   : > { %179 = vst [vmem:[%s4719_s26 + $0x30] sm:$0xff] %v178_v6   ;;  %183 = vst [vmem:[%s4719_s26 + $0x38] sm:$0xff] %v182_v7   ;;  %v190_v9 = vld [vmem:[%s4714_s25 + $0x48] sm:$0xff]   ;;  %v194_v10 = vld [vmem:[%s4714_s25 + $0x50] sm:$0xff]  }
  0x15   : > { %187 = vst [vmem:[%s4719_s26 + $0x40] sm:$0xff] %v186_v8   ;;  %v198_v11 = vld [vmem:[%s4714_s25 + $0x58] sm:$0xff]   ;;  %191 = vst [vmem:[%s4719_s26 + $0x48] sm:$0xff] %v190_v9   ;;  %v202_v12 = vld [vmem:[%s4714_s25 + $0x60] sm:$0xff]  }
  0x16   : > { %195 = vst [vmem:[%s4719_s26 + $0x50] sm:$0xff] %v194_v10   ;;  %199 = vst [vmem:[%s4719_s26 + $0x58] sm:$0xff] %v198_v11   ;;  %v206_v13 = vld [vmem:[%s4714_s25 + $0x68] sm:$0xff]   ;;  %v210_v14 = vld [vmem:[%s4714_s25 + $0x70] sm:$0xff]  }
  0x17   : > { %203 = vst [vmem:[%s4719_s26 + $0x60] sm:$0xff] %v202_v12   ;;  %207 = vst [vmem:[%s4719_s26 + $0x68] sm:$0xff] %v206_v13   ;;  %v214_v15 = vld [vmem:[%s4714_s25 + $0x78] sm:$0xff]   ;;  %v218_v16 = vld [vmem:[%s4714_s25 + $0x80] sm:$0xff]  }
  0x18   : > { %211 = vst [vmem:[%s4719_s26 + $0x70] sm:$0xff] %v210_v14   ;;  %v222_v17 = vld [vmem:[%s4714_s25 + $0x88] sm:$0xff]   ;;  %215 = vst [vmem:[%s4719_s26 + $0x78] sm:$0xff] %v214_v15   ;;  %v226_v18 = vld [vmem:[%s4714_s25 + $0x90] sm:$0xff]  }
  0x19   : > { %219 = vst [vmem:[%s4719_s26 + $0x80] sm:$0xff] %v218_v16   ;;  %223 = vst [vmem:[%s4719_s26 + $0x88] sm:$0xff] %v222_v17   ;;  %v230_v19 = vld [vmem:[%s4714_s25 + $0x98] sm:$0xff]   ;;  %v234_v20 = vld [vmem:[%s4714_s25 + $0xa0] sm:$0xff]  }
  0x1a   : > { %227 = vst [vmem:[%s4719_s26 + $0x90] sm:$0xff] %v226_v18   ;;  %231 = vst [vmem:[%s4719_s26 + $0x98] sm:$0xff] %v230_v19   ;;  %v238_v21 = vld [vmem:[%s4714_s25 + $0xa8] sm:$0xff]   ;;  %v242_v22 = vld [vmem:[%s4714_s25 + $0xb0] sm:$0xff]  }
  0x1b   : > { %235 = vst [vmem:[%s4719_s26 + $0xa0] sm:$0xff] %v234_v20   ;;  %v246_v23 = vld [vmem:[%s4714_s25 + $0xb8] sm:$0xff]   ;;  %239 = vst [vmem:[%s4719_s26 + $0xa8] sm:$0xff] %v238_v21   ;;  %v250_v24 = vld [vmem:[%s4714_s25 + $0xc0] sm:$0xff]  }
  0x1c   : > { %243 = vst [vmem:[%s4719_s26 + $0xb0] sm:$0xff] %v242_v22   ;;  %247 = vst [vmem:[%s4719_s26 + $0xb8] sm:$0xff] %v246_v23   ;;  %v254_v25 = vld [vmem:[%s4714_s25 + $0xc8] sm:$0xff]   ;;  %v258_v26 = vld [vmem:[%s4714_s25 + $0xd0] sm:$0xff]  }
  0x1d   : > { %251 = vst [vmem:[%s4719_s26 + $0xc0] sm:$0xff] %v250_v24   ;;  %255 = vst [vmem:[%s4719_s26 + $0xc8] sm:$0xff] %v254_v25   ;;  %v262_v27 = vld [vmem:[%s4714_s25 + $0xd8] sm:$0xff]   ;;  %v266_v28 = vld [vmem:[%s4714_s25 + $0x1c0] sm:$0xff]  }
  0x1e   : > { %259 = vst [vmem:[%s4719_s26 + $0xd0] sm:$0xff] %v258_v26   ;;  %v270_v29 = vld [vmem:[%s4714_s25 + $0x1c8] sm:$0xff]   ;;  %263 = vst [vmem:[%s4719_s26 + $0xd8] sm:$0xff] %v262_v27   ;;  %v274_v30 = vld [vmem:[%s4714_s25 + $0x1d0] sm:$0xff]  }
  0x1f   : > { %267 = vst [vmem:[%s4719_s26 + $0xe0] sm:$0xff] %v266_v28   ;;  %271 = vst [vmem:[%s4719_s26 + $0xe8] sm:$0xff] %v270_v29   ;;  %v278_v31 = vld [vmem:[%s4714_s25 + $0x1d8] sm:$0xff]   ;;  %v282_v32 = vld [vmem:[%s4714_s25 + $0x1e0] sm:$0xff]  }
  0x20   : > { %275 = vst [vmem:[%s4719_s26 + $0xf0] sm:$0xff] %v274_v30   ;;  %279 = vst [vmem:[%s4719_s26 + $0xf8] sm:$0xff] %v278_v31   ;;  %v286_v33 = vld [vmem:[%s4714_s25 + $0x1e8] sm:$0xff]   ;;  %v290_v34 = vld [vmem:[%s4714_s25 + $0x1f0] sm:$0xff]  }
  0x21   : > { %283 = vst [vmem:[%s4719_s26 + $0x100] sm:$0xff] %v282_v32   ;;  %v294_v35 = vld [vmem:[%s4714_s25 + $0x1f8] sm:$0xff]   ;;  %287 = vst [vmem:[%s4719_s26 + $0x108] sm:$0xff] %v286_v33   ;;  %v298_v36 = vld [vmem:[%s4714_s25 + $0x200] sm:$0xff]  }
  0x22   : > { %291 = vst [vmem:[%s4719_s26 + $0x110] sm:$0xff] %v290_v34   ;;  %295 = vst [vmem:[%s4719_s26 + $0x118] sm:$0xff] %v294_v35   ;;  %v302_v37 = vld [vmem:[%s4714_s25 + $0x208] sm:$0xff]   ;;  %v306_v38 = vld [vmem:[%s4714_s25 + $0x210] sm:$0xff]  }
  0x23   : > { %299 = vst [vmem:[%s4719_s26 + $0x120] sm:$0xff] %v298_v36   ;;  %303 = vst [vmem:[%s4719_s26 + $0x128] sm:$0xff] %v302_v37   ;;  %v310_v39 = vld [vmem:[%s4714_s25 + $0x218] sm:$0xff]   ;;  %v314_v40 = vld [vmem:[%s4714_s25 + $0x220] sm:$0xff]  }
  0x24   : > { %307 = vst [vmem:[%s4719_s26 + $0x130] sm:$0xff] %v306_v38   ;;  %v318_v41 = vld [vmem:[%s4714_s25 + $0x228] sm:$0xff]   ;;  %311 = vst [vmem:[%s4719_s26 + $0x138] sm:$0xff] %v310_v39   ;;  %v322_v42 = vld [vmem:[%s4714_s25 + $0x230] sm:$0xff]  }
  0x25   : > { %315 = vst [vmem:[%s4719_s26 + $0x140] sm:$0xff] %v314_v40   ;;  %319 = vst [vmem:[%s4719_s26 + $0x148] sm:$0xff] %v318_v41   ;;  %v326_v43 = vld [vmem:[%s4714_s25 + $0x238] sm:$0xff]   ;;  %v330_v44 = vld [vmem:[%s4714_s25 + $0x240] sm:$0xff]  }
  0x26   : > { %323 = vst [vmem:[%s4719_s26 + $0x150] sm:$0xff] %v322_v42   ;;  %327 = vst [vmem:[%s4719_s26 + $0x158] sm:$0xff] %v326_v43   ;;  %v334_v45 = vld [vmem:[%s4714_s25 + $0x248] sm:$0xff]   ;;  %v338_v46 = vld [vmem:[%s4714_s25 + $0x250] sm:$0xff]  }
  0x27   : > { %331 = vst [vmem:[%s4719_s26 + $0x160] sm:$0xff] %v330_v44   ;;  %v342_v47 = vld [vmem:[%s4714_s25 + $0x258] sm:$0xff]   ;;  %335 = vst [vmem:[%s4719_s26 + $0x168] sm:$0xff] %v334_v45   ;;  %v346_v48 = vld [vmem:[%s4714_s25 + $0x260] sm:$0xff]  }
  0x28   : > { %339 = vst [vmem:[%s4719_s26 + $0x170] sm:$0xff] %v338_v46   ;;  %343 = vst [vmem:[%s4719_s26 + $0x178] sm:$0xff] %v342_v47   ;;  %v350_v49 = vld [vmem:[%s4714_s25 + $0x268] sm:$0xff]   ;;  %v354_v50 = vld [vmem:[%s4714_s25 + $0x270] sm:$0xff]  }
  0x29   : > { %347 = vst [vmem:[%s4719_s26 + $0x180] sm:$0xff] %v346_v48   ;;  %351 = vst [vmem:[%s4719_s26 + $0x188] sm:$0xff] %v350_v49   ;;  %v358_v51 = vld [vmem:[%s4714_s25 + $0x278] sm:$0xff]   ;;  %v362_v52 = vld [vmem:[%s4714_s25 + $0x280] sm:$0xff]  }
  0x2a   : > { %355 = vst [vmem:[%s4719_s26 + $0x190] sm:$0xff] %v354_v50   ;;  %v366_v53 = vld [vmem:[%s4714_s25 + $0x288] sm:$0xff]   ;;  %359 = vst [vmem:[%s4719_s26 + $0x198] sm:$0xff] %v358_v51   ;;  %v370_v54 = vld [vmem:[%s4714_s25 + $0x290] sm:$0xff]  }
  0x2b   : > { %363 = vst [vmem:[%s4719_s26 + $0x1a0] sm:$0xff] %v362_v52   ;;  %367 = vst [vmem:[%s4719_s26 + $0x1a8] sm:$0xff] %v366_v53   ;;  %v374_v55 = vld [vmem:[%s4714_s25 + $0x298] sm:$0xff]   ;;  %v378_v56 = vld [vmem:[%s4714_s25 + $0x380] sm:$0xff]  }
  0x2c   : > { %371 = vst [vmem:[%s4719_s26 + $0x1b0] sm:$0xff] %v370_v54   ;;  %375 = vst [vmem:[%s4719_s26 + $0x1b8] sm:$0xff] %v374_v55   ;;  %v382_v57 = vld [vmem:[%s4714_s25 + $0x388] sm:$0xff]   ;;  %v386_v58 = vld [vmem:[%s4714_s25 + $0x390] sm:$0xff]  }
  0x2d   : > { %379 = vst [vmem:[%s4719_s26 + $0x1c0] sm:$0xff] %v378_v56   ;;  %v390_v59 = vld [vmem:[%s4714_s25 + $0x398] sm:$0xff]   ;;  %383 = vst [vmem:[%s4719_s26 + $0x1c8] sm:$0xff] %v382_v57   ;;  %v394_v60 = vld [vmem:[%s4714_s25 + $0x3a0] sm:$0xff]  }
  0x2e   : > { %387 = vst [vmem:[%s4719_s26 + $0x1d0] sm:$0xff] %v386_v58   ;;  %391 = vst [vmem:[%s4719_s26 + $0x1d8] sm:$0xff] %v390_v59   ;;  %v398_v61 = vld [vmem:[%s4714_s25 + $0x3a8] sm:$0xff]   ;;  %v402_v62 = vld [vmem:[%s4714_s25 + $0x3b0] sm:$0xff]  }
  0x2f   : > { %395 = vst [vmem:[%s4719_s26 + $0x1e0] sm:$0xff] %v394_v60   ;;  %399 = vst [vmem:[%s4719_s26 + $0x1e8] sm:$0xff] %v398_v61   ;;  %v406_v63 = vld [vmem:[%s4714_s25 + $0x3b8] sm:$0xff]   ;;  %v410_v0 = vld [vmem:[%s4714_s25 + $0x3c0] sm:$0xff]  }
  0x30   : > { %403 = vst [vmem:[%s4719_s26 + $0x1f0] sm:$0xff] %v402_v62   ;;  %v414_v1 = vld [vmem:[%s4714_s25 + $0x3c8] sm:$0xff]   ;;  %407 = vst [vmem:[%s4719_s26 + $0x1f8] sm:$0xff] %v406_v63   ;;  %v418_v2 = vld [vmem:[%s4714_s25 + $0x3d0] sm:$0xff]  }
  0x31   : > { %411 = vst [vmem:[%s4719_s26 + $0x200] sm:$0xff] %v410_v0   ;;  %415 = vst [vmem:[%s4719_s26 + $0x208] sm:$0xff] %v414_v1   ;;  %v422_v3 = vld [vmem:[%s4714_s25 + $0x3d8] sm:$0xff]   ;;  %v426_v4 = vld [vmem:[%s4714_s25 + $0x3e0] sm:$0xff]  }
  0x32   : > { %419 = vst [vmem:[%s4719_s26 + $0x210] sm:$0xff] %v418_v2   ;;  %423 = vst [vmem:[%s4719_s26 + $0x218] sm:$0xff] %v422_v3   ;;  %v430_v5 = vld [vmem:[%s4714_s25 + $0x3e8] sm:$0xff]   ;;  %v434_v6 = vld [vmem:[%s4714_s25 + $0x3f0] sm:$0xff]  }
  0x33   : > { %427 = vst [vmem:[%s4719_s26 + $0x220] sm:$0xff] %v426_v4   ;;  %v438_v7 = vld [vmem:[%s4714_s25 + $0x3f8] sm:$0xff]   ;;  %431 = vst [vmem:[%s4719_s26 + $0x228] sm:$0xff] %v430_v5   ;;  %v442_v8 = vld [vmem:[%s4714_s25 + $0x400] sm:$0xff]  }
  0x34   : > { %435 = vst [vmem:[%s4719_s26 + $0x230] sm:$0xff] %v434_v6   ;;  %439 = vst [vmem:[%s4719_s26 + $0x238] sm:$0xff] %v438_v7   ;;  %v446_v9 = vld [vmem:[%s4714_s25 + $0x408] sm:$0xff]   ;;  %v450_v10 = vld [vmem:[%s4714_s25 + $0x410] sm:$0xff]  }
  0x35   : > { %443 = vst [vmem:[%s4719_s26 + $0x240] sm:$0xff] %v442_v8   ;;  %447 = vst [vmem:[%s4719_s26 + $0x248] sm:$0xff] %v446_v9   ;;  %v454_v11 = vld [vmem:[%s4714_s25 + $0x418] sm:$0xff]   ;;  %v458_v12 = vld [vmem:[%s4714_s25 + $0x420] sm:$0xff]  }
  0x36   : > { %451 = vst [vmem:[%s4719_s26 + $0x250] sm:$0xff] %v450_v10   ;;  %v462_v13 = vld [vmem:[%s4714_s25 + $0x428] sm:$0xff]   ;;  %455 = vst [vmem:[%s4719_s26 + $0x258] sm:$0xff] %v454_v11   ;;  %v466_v14 = vld [vmem:[%s4714_s25 + $0x430] sm:$0xff]  }
  0x37   : > { %459 = vst [vmem:[%s4719_s26 + $0x260] sm:$0xff] %v458_v12   ;;  %463 = vst [vmem:[%s4719_s26 + $0x268] sm:$0xff] %v462_v13   ;;  %v470_v15 = vld [vmem:[%s4714_s25 + $0x438] sm:$0xff]   ;;  %v474_v16 = vld [vmem:[%s4714_s25 + $0x440] sm:$0xff]  }
  0x38   : > { %467 = vst [vmem:[%s4719_s26 + $0x270] sm:$0xff] %v466_v14   ;;  %471 = vst [vmem:[%s4719_s26 + $0x278] sm:$0xff] %v470_v15   ;;  %v478_v17 = vld [vmem:[%s4714_s25 + $0x448] sm:$0xff]   ;;  %v482_v18 = vld [vmem:[%s4714_s25 + $0x450] sm:$0xff]  }
  0x39   : > { %475 = vst [vmem:[%s4719_s26 + $0x280] sm:$0xff] %v474_v16   ;;  %v486_v19 = vld [vmem:[%s4714_s25 + $0x458] sm:$0xff]   ;;  %479 = vst [vmem:[%s4719_s26 + $0x288] sm:$0xff] %v478_v17   ;;  %v490_v20 = vld [vmem:[%s4714_s25 + $0x540] sm:$0xff]  }
  0x3a   : > { %483 = vst [vmem:[%s4719_s26 + $0x290] sm:$0xff] %v482_v18   ;;  %487 = vst [vmem:[%s4719_s26 + $0x298] sm:$0xff] %v486_v19   ;;  %v494_v21 = vld [vmem:[%s4714_s25 + $0x548] sm:$0xff]   ;;  %v498_v22 = vld [vmem:[%s4714_s25 + $0x550] sm:$0xff]  }
  0x3b   : > { %491 = vst [vmem:[%s4719_s26 + $0x2a0] sm:$0xff] %v490_v20   ;;  %495 = vst [vmem:[%s4719_s26 + $0x2a8] sm:$0xff] %v494_v21   ;;  %v502_v23 = vld [vmem:[%s4714_s25 + $0x558] sm:$0xff]   ;;  %v506_v24 = vld [vmem:[%s4714_s25 + $0x560] sm:$0xff]  }
  0x3c   : > { %499 = vst [vmem:[%s4719_s26 + $0x2b0] sm:$0xff] %v498_v22   ;;  %v510_v25 = vld [vmem:[%s4714_s25 + $0x568] sm:$0xff]   ;;  %503 = vst [vmem:[%s4719_s26 + $0x2b8] sm:$0xff] %v502_v23   ;;  %v514_v26 = vld [vmem:[%s4714_s25 + $0x570] sm:$0xff]  }
  0x3d   : > { %507 = vst [vmem:[%s4719_s26 + $0x2c0] sm:$0xff] %v506_v24   ;;  %511 = vst [vmem:[%s4719_s26 + $0x2c8] sm:$0xff] %v510_v25   ;;  %v518_v27 = vld [vmem:[%s4714_s25 + $0x578] sm:$0xff]   ;;  %v522_v28 = vld [vmem:[%s4714_s25 + $0x580] sm:$0xff]  }
  0x3e   : > { %515 = vst [vmem:[%s4719_s26 + $0x2d0] sm:$0xff] %v514_v26   ;;  %519 = vst [vmem:[%s4719_s26 + $0x2d8] sm:$0xff] %v518_v27   ;;  %v526_v29 = vld [vmem:[%s4714_s25 + $0x588] sm:$0xff]   ;;  %v530_v30 = vld [vmem:[%s4714_s25 + $0x590] sm:$0xff]  }
  0x3f   : > { %523 = vst [vmem:[%s4719_s26 + $0x2e0] sm:$0xff] %v522_v28   ;;  %v534_v31 = vld [vmem:[%s4714_s25 + $0x598] sm:$0xff]   ;;  %527 = vst [vmem:[%s4719_s26 + $0x2e8] sm:$0xff] %v526_v29   ;;  %v538_v32 = vld [vmem:[%s4714_s25 + $0x5a0] sm:$0xff]  }
  0x40   : > { %531 = vst [vmem:[%s4719_s26 + $0x2f0] sm:$0xff] %v530_v30   ;;  %535 = vst [vmem:[%s4719_s26 + $0x2f8] sm:$0xff] %v534_v31   ;;  %v542_v33 = vld [vmem:[%s4714_s25 + $0x5a8] sm:$0xff]   ;;  %v546_v34 = vld [vmem:[%s4714_s25 + $0x5b0] sm:$0xff]  }
  0x41   : > { %539 = vst [vmem:[%s4719_s26 + $0x300] sm:$0xff] %v538_v32   ;;  %543 = vst [vmem:[%s4719_s26 + $0x308] sm:$0xff] %v542_v33   ;;  %v550_v35 = vld [vmem:[%s4714_s25 + $0x5b8] sm:$0xff]   ;;  %v554_v36 = vld [vmem:[%s4714_s25 + $0x5c0] sm:$0xff]  }
  0x42   : > { %547 = vst [vmem:[%s4719_s26 + $0x310] sm:$0xff] %v546_v34   ;;  %v558_v37 = vld [vmem:[%s4714_s25 + $0x5c8] sm:$0xff]   ;;  %551 = vst [vmem:[%s4719_s26 + $0x318] sm:$0xff] %v550_v35   ;;  %v562_v38 = vld [vmem:[%s4714_s25 + $0x5d0] sm:$0xff]  }
  0x43   : > { %555 = vst [vmem:[%s4719_s26 + $0x320] sm:$0xff] %v554_v36   ;;  %559 = vst [vmem:[%s4719_s26 + $0x328] sm:$0xff] %v558_v37   ;;  %v566_v39 = vld [vmem:[%s4714_s25 + $0x5d8] sm:$0xff]   ;;  %v570_v40 = vld [vmem:[%s4714_s25 + $0x5e0] sm:$0xff]  }
  0x44   : > { %563 = vst [vmem:[%s4719_s26 + $0x330] sm:$0xff] %v562_v38   ;;  %567 = vst [vmem:[%s4719_s26 + $0x338] sm:$0xff] %v566_v39   ;;  %v574_v41 = vld [vmem:[%s4714_s25 + $0x5e8] sm:$0xff]   ;;  %v578_v42 = vld [vmem:[%s4714_s25 + $0x5f0] sm:$0xff]  }
  0x45   : > { %571 = vst [vmem:[%s4719_s26 + $0x340] sm:$0xff] %v570_v40   ;;  %v582_v43 = vld [vmem:[%s4714_s25 + $0x5f8] sm:$0xff]   ;;  %575 = vst [vmem:[%s4719_s26 + $0x348] sm:$0xff] %v574_v41   ;;  %v586_v44 = vld [vmem:[%s4714_s25 + $0x600] sm:$0xff]  }
  0x46   : > { %579 = vst [vmem:[%s4719_s26 + $0x350] sm:$0xff] %v578_v42   ;;  %583 = vst [vmem:[%s4719_s26 + $0x358] sm:$0xff] %v582_v43   ;;  %v590_v45 = vld [vmem:[%s4714_s25 + $0x608] sm:$0xff]   ;;  %v594_v46 = vld [vmem:[%s4714_s25 + $0x610] sm:$0xff]  }
  0x47   : > { %587 = vst [vmem:[%s4719_s26 + $0x360] sm:$0xff] %v586_v44   ;;  %591 = vst [vmem:[%s4719_s26 + $0x368] sm:$0xff] %v590_v45   ;;  %v598_v47 = vld [vmem:[%s4714_s25 + $0x618] sm:$0xff]  }
  0x48   : > { %595 = vst [vmem:[%s4719_s26 + $0x370] sm:$0xff] %v594_v46   ;;  %599 = vst [vmem:[%s4719_s26 + $0x378] sm:$0xff] %v598_v47  }
  0x49 PF: > { %p3706_p5 = scmp.ge.s32.totalorder %s4657_s14, 1  ;;  %p1072_p6 = scmp.lt.s32.totalorder %s4657_s14, 3 }
  0x4b   : > { %p1073_p7 = pnand %p3706_p5, %p1072_p6 }
  0x4d   : > { %1076 = sbr.rel (%p1073_p7) target bundleno = 526 (0x20e), region = 69 }
  0x52   : > { %v4519_v48 = vld [vmem:[%s5822_s1 + $0x18] ss:$0 sps:$4 sm:$0x11]   ;;  %vm1419_vm0 = vcmask 1040384   ;;  %v4659_v49 = vmov 0   ;;  %v4520_v52 = vld [vmem:[%s5822_s1 + $0x10] sm:$0xff]  }
  0x53   : > { %v1421_v50 = vsel %vm1419_vm0, 65535, %v4659_v49  ;;  %s1079_s4 = sand.u32 1, %s4649_s12   ;;  %v4521_v53 = vld [vmem:[%s5822_s1 + $0x8] sm:$0xff]   ;;  %vm1334_vm1 = vcmask 400384   ;;  %v4522_v56 = vld [vmem:[%s5822_s1] sm:$0xff]   ;;  %s1103_s11 = smul.u32 56, %s3701_s15 }
  0x54   : > { %v1423_v51 = vand.u32 %v4519_v48, %v1421_v50  ;;  %s4493_s5 = smul.u32 896, %s1079_s4 }
  0x55   : > { %p1104_p8 = scmp.lt.s32.totalorder %s1103_s11, 111 }
  0x56   : > { %4236 = vmatprep.subr.bf16.mxu0 %v1423_v51  ;;  %4300 = vmatprep.subr.bf16.mxu1 %v1423_v51  ;;  %s4954_s8 = scalar_lea.vmem [#allocation2], %s4493_s5 }
  0x57   : > { %4237 = vmatpush3.bf16.msra.mxu0 %v1423_v51  ;;  %4301 = vmatpush3.bf16.msra.mxu1 %v1423_v51  ;;  %v4523_v54 = vld [vmem:[%s4954_s8] sm:$0xff]   ;;  %v4525_v57 = vld [vmem:[%s4954_s8 + $0x8] sm:$0xff]   ;;  %v4527_v59 = vld [vmem:[%s4954_s8 + $0x10] sm:$0xff]   ;;  %s6071_s11 = smov (!%p1104_p8, %s1103_s11), 111 }
  0x58   : > { %4238 = vmatprep.subr.bf16.mxu0 %v4520_v52  ;;  %4302 = vmatprep.subr.bf16.mxu1 %v4520_v52  ;;  %v4524_v55 = vld [vmem:[%s4954_s8 + $0xe0] sm:$0xff]   ;;  %v4526_v58 = vld [vmem:[%s4954_s8 + $0xe8] sm:$0xff]   ;;  %v4528_v60 = vld [vmem:[%s4954_s8 + $0xf0] sm:$0xff]   ;;  %s3707_s15 = sshll.u32 %s6071_s11, 3 }
  0x59   : > { %4244 = vmatprep.mubr.msk.bf16.mxu0 %vm1334_vm1, %v4523_v54  ;;  %4308 = vmatprep.mubr.msk.bf16.mxu1 %vm1334_vm1, %v4524_v55  ;;  %v4529_v61 = vld [vmem:[%s4954_s8 + $0x18] sm:$0xff]   ;;  %v4531_v63 = vld [vmem:[%s4954_s8 + $0x20] sm:$0xff]   ;;  %v4533_v1 = vld [vmem:[%s4954_s8 + $0x28] sm:$0xff]   ;;  %s5539_s20 = scalar_lea.vmem %s5824_s3, %s3707_s15 }
  0x5a   : > { %v4530_v62 = vld [vmem:[%s4954_s8 + $0xf8] sm:$0xff]   ;;  %v4532_v0 = vld [vmem:[%s4954_s8 + $0x100] sm:$0xff]   ;;  %v4534_v2 = vld [vmem:[%s4954_s8 + $0x108] sm:$0xff]  }
  0x5b   : > { %4239 = vmatpush3.bf16.msra.mxu0 %v4520_v52  ;;  %4303 = vmatpush3.bf16.msra.mxu1 %v4520_v52  ;;  %v4535_v3 = vld [vmem:[%s4954_s8 + $0x30] sm:$0xff]   ;;  %v4537_v5 = vld [vmem:[%s4954_s8 + $0x38] sm:$0xff]   ;;  %v4539_v7 = vld [vmem:[%s4954_s8 + $0x40] sm:$0xff]  }
  0x5c   : > { %4240 = vmatprep.subr.bf16.mxu0 %v4521_v53  ;;  %4304 = vmatprep.subr.bf16.mxu1 %v4521_v53  ;;  %v4536_v4 = vld [vmem:[%s4954_s8 + $0x110] sm:$0xff]   ;;  %v4538_v6 = vld [vmem:[%s4954_s8 + $0x118] sm:$0xff]   ;;  %v4540_v8 = vld [vmem:[%s4954_s8 + $0x120] sm:$0xff]  }
  0x5d   : > { %v4541_v9 = vld [vmem:[%s4954_s8 + $0x48] sm:$0xff]   ;;  %v4543_v11 = vld [vmem:[%s4954_s8 + $0x50] sm:$0xff]   ;;  %v4545_v13 = vld [vmem:[%s4954_s8 + $0x58] sm:$0xff]  }
  0x5e   : > { %v4542_v10 = vld [vmem:[%s4954_s8 + $0x128] sm:$0xff]   ;;  %v4544_v12 = vld [vmem:[%s4954_s8 + $0x130] sm:$0xff]   ;;  %v4546_v14 = vld [vmem:[%s4954_s8 + $0x138] sm:$0xff]  }
  0x5f   : > { %4241 = vmatpush3.bf16.msra.mxu0 %v4521_v53  ;;  %4305 = vmatpush3.bf16.msra.mxu1 %v4521_v53  ;;  %v4547_v15 = vld [vmem:[%s4954_s8 + $0x60] sm:$0xff]   ;;  %v4549_v17 = vld [vmem:[%s4954_s8 + $0x68] sm:$0xff]   ;;  %v4551_v19 = vld [vmem:[%s4954_s8 + $0x70] sm:$0xff]  }
  0x60   : > { %4242 = vmatprep.subr.bf16.mxu0 %v4522_v56  ;;  %4306 = vmatprep.subr.bf16.mxu1 %v4522_v56  ;;  %v4548_v16 = vld [vmem:[%s4954_s8 + $0x140] sm:$0xff]   ;;  %v4550_v18 = vld [vmem:[%s4954_s8 + $0x148] sm:$0xff]   ;;  %v4552_v20 = vld [vmem:[%s4954_s8 + $0x150] sm:$0xff]  }
  0x61   : > { %v4553_v21 = vld [vmem:[%s4954_s8 + $0x78] sm:$0xff]   ;;  %v4555_v23 = vld [vmem:[%s4954_s8 + $0x80] sm:$0xff]   ;;  %v4557_v25 = vld [vmem:[%s4954_s8 + $0x88] sm:$0xff]  }
  0x62   : > { %v4554_v22 = vld [vmem:[%s4954_s8 + $0x158] sm:$0xff]   ;;  %v4556_v24 = vld [vmem:[%s4954_s8 + $0x160] sm:$0xff]   ;;  %v4558_v26 = vld [vmem:[%s4954_s8 + $0x168] sm:$0xff]  }
  0x63   : > { %4243 = vmatpush3.bf16.msra.mxu0 %v4522_v56  ;;  %4307 = vmatpush3.bf16.msra.mxu1 %v4522_v56  ;;  %v4559_v27 = vld [vmem:[%s4954_s8 + $0x90] sm:$0xff]   ;;  %v4561_v29 = vld [vmem:[%s4954_s8 + $0x98] sm:$0xff]   ;;  %v4563_v31 = vld [vmem:[%s4954_s8 + $0xa0] sm:$0xff]  }
  0x64   : > { %4364 = vmatprep.subr.bf16.mxu0 %v1423_v51  ;;  %4428 = vmatprep.subr.bf16.mxu1 %v1423_v51  ;;  %v4560_v28 = vld [vmem:[%s4954_s8 + $0x170] sm:$0xff]   ;;  %v4562_v30 = vld [vmem:[%s4954_s8 + $0x178] sm:$0xff]   ;;  %v4564_v32 = vld [vmem:[%s4954_s8 + $0x180] sm:$0xff]  }
  0x65   : > { %v4565_v33 = vld [vmem:[%s4954_s8 + $0xa8] sm:$0xff]   ;;  %v4567_v35 = vld [vmem:[%s4954_s8 + $0xb0] sm:$0xff]   ;;  %v4569_v37 = vld [vmem:[%s4954_s8 + $0xb8] sm:$0xff]  }
  0x66   : > { %4245 = vmatmul.mubr.msk.bf16.vlgmr.msra.gmra.mxu0 %vm1334_vm1, %v4525_v57  ;;  %4309 = vmatmul.mubr.msk.bf16.vlgmr.msra.gmra.mxu1 %vm1334_vm1, %v4526_v58  ;;  %v4566_v34 = vld [vmem:[%s4954_s8 + $0x188] sm:$0xff]   ;;  %v4568_v36 = vld [vmem:[%s4954_s8 + $0x190] sm:$0xff]   ;;  %v4570_v38 = vld [vmem:[%s4954_s8 + $0x198] sm:$0xff]  }
  0x67   : > { %4365 = vmatpush3.bf16.msra.mxu0 %v1423_v51  ;;  %4429 = vmatpush3.bf16.msra.mxu1 %v1423_v51  ;;  %v4571_v39 = vld [vmem:[%s4954_s8 + $0xc0] sm:$0xff]   ;;  %v4573_v41 = vld [vmem:[%s4954_s8 + $0xc8] sm:$0xff]   ;;  %v4575_v43 = vld [vmem:[%s4954_s8 + $0xd0] sm:$0xff]  }
  0x68   : > { %4248 = vmatprep.mubr.msk.bf16.mxu0 %vm1334_vm1, %v4527_v59  ;;  %4312 = vmatprep.mubr.msk.bf16.mxu1 %vm1334_vm1, %v4528_v60  ;;  %v4572_v40 = vld [vmem:[%s4954_s8 + $0x1a0] sm:$0xff]   ;;  %v4574_v42 = vld [vmem:[%s4954_s8 + $0x1a8] sm:$0xff]   ;;  %v4576_v44 = vld [vmem:[%s4954_s8 + $0x1b0] sm:$0xff]  }
  0x69   : > { %4366 = vmatprep.subr.bf16.mxu0 %v4520_v52  ;;  %4430 = vmatprep.subr.bf16.mxu1 %v4520_v52  ;;  %v4577_v45 = vld [vmem:[%s4954_s8 + $0xd8] sm:$0xff]   ;;  %v4579_v47 = vld [vmem:[%s4954_s8 + $0x1c0] sm:$0xff]   ;;  %v4581_v49 = vld [vmem:[%s4954_s8 + $0x1c8] sm:$0xff]  }
  0x6a   : > { %v4578_v46 = vld [vmem:[%s4954_s8 + $0x1b8] sm:$0xff]   ;;  %v4580_v48 = vld [vmem:[%s4954_s8 + $0x2a0] sm:$0xff]   ;;  %v4582_v50 = vld [vmem:[%s4954_s8 + $0x2a8] sm:$0xff]  }
  0x6b   : > { %4367 = vmatpush3.bf16.msra.mxu0 %v4520_v52  ;;  %4431 = vmatpush3.bf16.msra.mxu1 %v4520_v52  ;;  %v4583_v51 = vld [vmem:[%s4954_s8 + $0x1d0] sm:$0xff]   ;;  %v4586_v54 = vld [vmem:[%s4954_s8 + $0x2b8] sm:$0xff]   ;;  %v4587_v55 = vld [vmem:[%s4954_s8 + $0x1e0] sm:$0xff]  }
  0x6c   : > { %4368 = vmatprep.subr.bf16.mxu0 %v4521_v53  ;;  %4432 = vmatprep.subr.bf16.mxu1 %v4521_v53  ;;  %v4584_v52 = vld [vmem:[%s4954_s8 + $0x2b0] sm:$0xff]   ;;  %v4589_v57 = vld [vmem:[%s4954_s8 + $0x1e8] sm:$0xff]  }
  0x6d   : > { %v4590_v58 = vld [vmem:[%s4954_s8 + $0x2c8] sm:$0xff]   ;;  %v4591_v59 = vld [vmem:[%s4954_s8 + $0x1f0] sm:$0xff]  }
  0x6e   : > { %4249 = vmatmul.mubr.msk.bf16.gmra.mxu0 %vm1334_vm1, %v4529_v61  ;;  %4313 = vmatmul.mubr.msk.bf16.gmra.mxu1 %vm1334_vm1, %v4530_v62  ;;  %v4592_v60 = vld [vmem:[%s4954_s8 + $0x2d0] sm:$0xff]   ;;  %v4593_v61 = vld [vmem:[%s4954_s8 + $0x1f8] sm:$0xff]  }
  0x6f   : > { %4252 = vmatprep.mubr.msk.bf16.mxu0 %vm1334_vm1, %v4531_v63  ;;  %4316 = vmatprep.mubr.msk.bf16.mxu1 %vm1334_vm1, %v4532_v0  ;;  %v4594_v62 = vld [vmem:[%s4954_s8 + $0x2d8] sm:$0xff]   ;;  %v4595_v63 = vld [vmem:[%s4954_s8 + $0x200] sm:$0xff]  }
  0x70   : > { %4369 = vmatpush3.bf16.msra.mxu0 %v4521_v53  ;;  %4433 = vmatpush3.bf16.msra.mxu1 %v4521_v53  ;;  %v4585_v53 = vld [vmem:[%s4954_s8 + $0x1d8] sm:$0xff]   ;;  %v4596_v0 = vld [vmem:[%s4954_s8 + $0x2e0] sm:$0xff]  }
  0x71   : > { %4370 = vmatprep.subr.bf16.mxu0 %v4522_v56  ;;  %4434 = vmatprep.subr.bf16.mxu1 %v4522_v56 }
  0x74   : > { %4371 = vmatpush3.bf16.msra.mxu0 %v4522_v56  ;;  %4435 = vmatpush3.bf16.msra.mxu1 %v4522_v56  ;;  %v4588_v56 = vld [vmem:[%s4954_s8 + $0x2c0] sm:$0xff]  }
  0x76   : > { %4253 = vmatmul.mubr.msk.bf16.gmra.mxu0 %vm1334_vm1, %v4533_v1  ;;  %4317 = vmatmul.mubr.msk.bf16.gmra.mxu1 %vm1334_vm1, %v4534_v2  ;;  %v4597_v1 = vld [vmem:[%s4954_s8 + $0x208] sm:$0xff]  }
  0x77   : > { %4256 = vmatprep.mubr.msk.bf16.mxu0 %vm1334_vm1, %v4535_v3  ;;  %4320 = vmatprep.mubr.msk.bf16.mxu1 %vm1334_vm1, %v4536_v4  ;;  %v4598_v2 = vld [vmem:[%s4954_s8 + $0x2e8] sm:$0xff]   ;;  %v4599_v3 = vld [vmem:[%s4954_s8 + $0x210] sm:$0xff]  }
  0x78   : > { %v4600_v4 = vld [vmem:[%s4954_s8 + $0x2f0] sm:$0xff]  }
  0x7e   : > { %4257 = vmatmul.mubr.msk.bf16.gmra.mxu0 %vm1334_vm1, %v4537_v5  ;;  %4321 = vmatmul.mubr.msk.bf16.gmra.mxu1 %vm1334_vm1, %v4538_v6  ;;  %v4601_v5 = vld [vmem:[%s4954_s8 + $0x218] sm:$0xff]  }
  0x7f   : > { %4260 = vmatprep.mubr.msk.bf16.mxu0 %vm1334_vm1, %v4539_v7  ;;  %4324 = vmatprep.mubr.msk.bf16.mxu1 %vm1334_vm1, %v4540_v8  ;;  %v4602_v6 = vld [vmem:[%s4954_s8 + $0x2f8] sm:$0xff]   ;;  %v4603_v7 = vld [vmem:[%s4954_s8 + $0x220] sm:$0xff]  }
  0x80   : > { %v4604_v8 = vld [vmem:[%s4954_s8 + $0x300] sm:$0xff]  }
  0x86   : > { %4261 = vmatmul.mubr.msk.bf16.gmra.mxu0 %vm1334_vm1, %v4541_v9  ;;  %4325 = vmatmul.mubr.msk.bf16.gmra.mxu1 %vm1334_vm1, %v4542_v10  ;;  %v4605_v9 = vld [vmem:[%s4954_s8 + $0x228] sm:$0xff]  }
  0x87   : > { %4264 = vmatprep.mubr.msk.bf16.mxu0 %vm1334_vm1, %v4543_v11  ;;  %4328 = vmatprep.mubr.msk.bf16.mxu1 %vm1334_vm1, %v4544_v12  ;;  %v4606_v10 = vld [vmem:[%s4954_s8 + $0x308] sm:$0xff]   ;;  %v4607_v11 = vld [vmem:[%s4954_s8 + $0x230] sm:$0xff]  }
  0x88   : > { %v4608_v12 = vld [vmem:[%s4954_s8 + $0x310] sm:$0xff]  }
  0x8e   : > { %4265 = vmatmul.mubr.msk.bf16.gmra.mxu0 %vm1334_vm1, %v4545_v13  ;;  %4329 = vmatmul.mubr.msk.bf16.gmra.mxu1 %vm1334_vm1, %v4546_v14  ;;  %v4609_v13 = vld [vmem:[%s4954_s8 + $0x238] sm:$0xff]  }
  0x8f   : > { %4268 = vmatprep.mubr.msk.bf16.mxu0 %vm1334_vm1, %v4547_v15  ;;  %4332 = vmatprep.mubr.msk.bf16.mxu1 %vm1334_vm1, %v4548_v16  ;;  %v4610_v14 = vld [vmem:[%s4954_s8 + $0x318] sm:$0xff]   ;;  %v4611_v15 = vld [vmem:[%s4954_s8 + $0x240] sm:$0xff]  }
  0x90   : > { %v4612_v16 = vld [vmem:[%s4954_s8 + $0x320] sm:$0xff]  }
  0x96   : > { %4269 = vmatmul.mubr.msk.bf16.gmra.mxu0 %vm1334_vm1, %v4549_v17  ;;  %4333 = vmatmul.mubr.msk.bf16.gmra.mxu1 %vm1334_vm1, %v4550_v18  ;;  %v4613_v17 = vld [vmem:[%s4954_s8 + $0x248] sm:$0xff]  }
  0x97   : > { %4272 = vmatprep.mubr.msk.bf16.mxu0 %vm1334_vm1, %v4551_v19  ;;  %4336 = vmatprep.mubr.msk.bf16.mxu1 %vm1334_vm1, %v4552_v20  ;;  %v4614_v18 = vld [vmem:[%s4954_s8 + $0x328] sm:$0xff]   ;;  %v4615_v19 = vld [vmem:[%s4954_s8 + $0x250] sm:$0xff]  }
  0x98   : > { %v4616_v20 = vld [vmem:[%s4954_s8 + $0x330] sm:$0xff]  }
  0x9e   : > { %4273 = vmatmul.mubr.msk.bf16.gmra.mxu0 %vm1334_vm1, %v4553_v21  ;;  %4337 = vmatmul.mubr.msk.bf16.gmra.mxu1 %vm1334_vm1, %v4554_v22  ;;  %v4617_v21 = vld [vmem:[%s4954_s8 + $0x258] sm:$0xff]  }
  0x9f   : > { %4276 = vmatprep.mubr.msk.bf16.mxu0 %vm1334_vm1, %v4555_v23  ;;  %4340 = vmatprep.mubr.msk.bf16.mxu1 %vm1334_vm1, %v4556_v24  ;;  %v4618_v22 = vld [vmem:[%s4954_s8 + $0x338] sm:$0xff]   ;;  %v4619_v23 = vld [vmem:[%s4954_s8 + $0x260] sm:$0xff]  }
  0xa0   : > { %v4620_v24 = vld [vmem:[%s4954_s8 + $0x340] sm:$0xff]  }
  0xa6   : > { %4277 = vmatmul.mubr.msk.bf16.gmra.mxu0 %vm1334_vm1, %v4557_v25  ;;  %4341 = vmatmul.mubr.msk.bf16.gmra.mxu1 %vm1334_vm1, %v4558_v26  ;;  %v4621_v25 = vld [vmem:[%s4954_s8 + $0x268] sm:$0xff]  }
  0xa7   : > { %4280 = vmatprep.mubr.msk.bf16.mxu0 %vm1334_vm1, %v4559_v27  ;;  %4344 = vmatprep.mubr.msk.bf16.mxu1 %vm1334_vm1, %v4560_v28  ;;  %v4622_v26 = vld [vmem:[%s4954_s8 + $0x348] sm:$0xff]   ;;  %v4623_v27 = vld [vmem:[%s4954_s8 + $0x270] sm:$0xff]  }
  0xa8   : > { %v4624_v28 = vld [vmem:[%s4954_s8 + $0x350] sm:$0xff]  }
  0xae   : > { %4281 = vmatmul.mubr.msk.bf16.gmra.mxu0 %vm1334_vm1, %v4561_v29  ;;  %4345 = vmatmul.mubr.msk.bf16.gmra.mxu1 %vm1334_vm1, %v4562_v30 }
  0xaf   : > { %4284 = vmatprep.mubr.msk.bf16.mxu0 %vm1334_vm1, %v4563_v31  ;;  %4348 = vmatprep.mubr.msk.bf16.mxu1 %vm1334_vm1, %v4564_v32 }
  0xb6   : > { %4285 = vmatmul.mubr.msk.bf16.gmra.mxu0 %vm1334_vm1, %v4565_v33  ;;  %4349 = vmatmul.mubr.msk.bf16.gmra.mxu1 %vm1334_vm1, %v4566_v34 }
  0xb7   : > { %4288 = vmatprep.mubr.msk.bf16.mxu0 %vm1334_vm1, %v4567_v35  ;;  %4352 = vmatprep.mubr.msk.bf16.mxu1 %vm1334_vm1, %v4568_v36 }
  0xbe   : > { %4289 = vmatmul.mubr.msk.bf16.gmra.mxu0 %vm1334_vm1, %v4569_v37  ;;  %4353 = vmatmul.mubr.msk.bf16.gmra.mxu1 %vm1334_vm1, %v4570_v38  ;;  %v4625_v37 = vld [vmem:[%s4954_s8 + $0x278] sm:$0xff]  }
  0xbf   : > { %4292 = vmatprep.mubr.msk.bf16.mxu0 %vm1334_vm1, %v4571_v39  ;;  %4356 = vmatprep.mubr.msk.bf16.mxu1 %vm1334_vm1, %v4572_v40  ;;  %v4626_v38 = vld [vmem:[%s4954_s8 + $0x358] sm:$0xff]   ;;  %v4627_v40 = vld [vmem:[%s4954_s8 + $0x280] sm:$0xff]  }
  0xc6   : > { %4293 = vmatmul.mubr.msk.bf16.gmra.mxu0 %vm1334_vm1, %v4573_v41  ;;  %4357 = vmatmul.mubr.msk.bf16.gmra.mxu1 %vm1334_vm1, %v4574_v42  ;;  %v4628_v41 = vld [vmem:[%s4954_s8 + $0x360] sm:$0xff]  }
  0xc7   : > { %4296 = vmatprep.mubr.msk.bf16.mxu0 %vm1334_vm1, %v4575_v43  ;;  %4360 = vmatprep.mubr.msk.bf16.mxu1 %vm1334_vm1, %v4576_v44 }
  0xce   : > { %4297 = vmatmul.mubr.msk.bf16.gmra.mxu0 %vm1334_vm1, %v4577_v45  ;;  %4361 = vmatmul.mubr.msk.bf16.gmra.mxu1 %vm1334_vm1, %v4578_v46 }
  0xcf   : > { %4372 = vmatprep.mubr.msk.bf16.mxu0 %vm1334_vm1, %v4579_v47  ;;  %4436 = vmatprep.mubr.msk.bf16.mxu1 %vm1334_vm1, %v4580_v48 }
  0xd6   : > { %4373 = vmatmul.mubr.msk.bf16.vlgmr.msra.gmra.mxu0 %vm1334_vm1, %v4581_v49  ;;  %4437 = vmatmul.mubr.msk.bf16.vlgmr.msra.gmra.mxu1 %vm1334_vm1, %v4582_v50 }
  0xd7   : > { %4376 = vmatprep.mubr.msk.bf16.mxu0 %vm1334_vm1, %v4583_v51  ;;  %4440 = vmatprep.mubr.msk.bf16.mxu1 %vm1334_vm1, %v4584_v52 }
  0xde   : > { %4377 = vmatmul.mubr.msk.bf16.gmra.mxu0 %vm1334_vm1, %v4585_v53  ;;  %4441 = vmatmul.mubr.msk.bf16.gmra.mxu1 %vm1334_vm1, %v4586_v54  ;;  %v4629_v53 = vld [vmem:[%s4954_s8 + $0x288] sm:$0xff]  }
  0xdf   : > { %4380 = vmatprep.mubr.msk.bf16.mxu0 %vm1334_vm1, %v4587_v55  ;;  %4444 = vmatprep.mubr.msk.bf16.mxu1 %vm1334_vm1, %v4588_v56  ;;  %v4630_v54 = vld [vmem:[%s4954_s8 + $0x368] sm:$0xff]   ;;  %v4631_v56 = vld [vmem:[%s4954_s8 + $0x290] sm:$0xff]  }
  0xe6   : > { %4381 = vmatmul.mubr.msk.bf16.gmra.mxu0 %vm1334_vm1, %v4589_v57  ;;  %4445 = vmatmul.mubr.msk.bf16.gmra.mxu1 %vm1334_vm1, %v4590_v58  ;;  %v4632_v57 = vld [vmem:[%s4954_s8 + $0x370] sm:$0xff]  }
  0xe7   : > { %4384 = vmatprep.mubr.msk.bf16.mxu0 %vm1334_vm1, %v4591_v59  ;;  %4448 = vmatprep.mubr.msk.bf16.mxu1 %vm1334_vm1, %v4592_v60 }
  0xee   : > { %4385 = vmatmul.mubr.msk.bf16.gmra.mxu0 %vm1334_vm1, %v4593_v61  ;;  %4449 = vmatmul.mubr.msk.bf16.gmra.mxu1 %vm1334_vm1, %v4594_v62 }
  0xef   : > { %4388 = vmatprep.mubr.msk.bf16.mxu0 %vm1334_vm1, %v4595_v63  ;;  %4452 = vmatprep.mubr.msk.bf16.mxu1 %vm1334_vm1, %v4596_v0 }
  0xf6   : > { %4389 = vmatmul.mubr.msk.bf16.gmra.mxu0 %vm1334_vm1, %v4597_v1  ;;  %4453 = vmatmul.mubr.msk.bf16.gmra.mxu1 %vm1334_vm1, %v4598_v2 }
  0xf7   : > { %4392 = vmatprep.mubr.msk.bf16.mxu0 %vm1334_vm1, %v4599_v3  ;;  %4456 = vmatprep.mubr.msk.bf16.mxu1 %vm1334_vm1, %v4600_v4 }
  0xfe   : > { %4393 = vmatmul.mubr.msk.bf16.gmra.mxu0 %vm1334_vm1, %v4601_v5  ;;  %4457 = vmatmul.mubr.msk.bf16.gmra.mxu1 %vm1334_vm1, %v4602_v6  ;;  %v4633_v5 = vld [vmem:[%s4954_s8 + $0x298] sm:$0xff]  }
  0xff   : > { %4396 = vmatprep.mubr.msk.bf16.mxu0 %vm1334_vm1, %v4603_v7  ;;  %4460 = vmatprep.mubr.msk.bf16.mxu1 %vm1334_vm1, %v4604_v8  ;;  %v4634_v6 = vld [vmem:[%s4954_s8 + $0x378] sm:$0xff]  }
 0x106   : > { %4397 = vmatmul.mubr.msk.bf16.gmra.mxu0 %vm1334_vm1, %v4605_v9  ;;  %4461 = vmatmul.mubr.msk.bf16.gmra.mxu1 %vm1334_vm1, %v4606_v10 }
 0x107   : > { %4400 = vmatprep.mubr.msk.bf16.mxu0 %vm1334_vm1, %v4607_v11  ;;  %4464 = vmatprep.mubr.msk.bf16.mxu1 %vm1334_vm1, %v4608_v12 }
 0x10e   : > { %4401 = vmatmul.mubr.msk.bf16.gmra.mxu0 %vm1334_vm1, %v4609_v13  ;;  %4465 = vmatmul.mubr.msk.bf16.gmra.mxu1 %vm1334_vm1, %v4610_v14 }
 0x10f   : > { %4404 = vmatprep.mubr.msk.bf16.mxu0 %vm1334_vm1, %v4611_v15  ;;  %4468 = vmatprep.mubr.msk.bf16.mxu1 %vm1334_vm1, %v4612_v16 }
 0x116   : > { %4405 = vmatmul.mubr.msk.bf16.gmra.mxu0 %vm1334_vm1, %v4613_v17  ;;  %4469 = vmatmul.mubr.msk.bf16.gmra.mxu1 %vm1334_vm1, %v4614_v18 }
 0x117   : > { %4408 = vmatprep.mubr.msk.bf16.mxu0 %vm1334_vm1, %v4615_v19  ;;  %4472 = vmatprep.mubr.msk.bf16.mxu1 %vm1334_vm1, %v4616_v20 }
 0x11e   : > { %4409 = vmatmul.mubr.msk.bf16.gmra.mxu0 %vm1334_vm1, %v4617_v21  ;;  %4473 = vmatmul.mubr.msk.bf16.gmra.mxu1 %vm1334_vm1, %v4618_v22 }
 0x11f   : > { %4412 = vmatprep.mubr.msk.bf16.mxu0 %vm1334_vm1, %v4619_v23  ;;  %4476 = vmatprep.mubr.msk.bf16.mxu1 %vm1334_vm1, %v4620_v24 }
 0x126   : > { %v5159_v29 = vpop.f32.mrf.mxu0  ;;  %v5161_v30 = vpop.f32.mrf.mxu1  ;;  %4413 = vmatmul.mubr.msk.bf16.gmra.mxu0 %vm1334_vm1, %v4621_v25  ;;  %4477 = vmatmul.mubr.msk.bf16.gmra.mxu1 %vm1334_vm1, %v4622_v26 }
 0x127   : > { %4416 = vmatprep.mubr.msk.bf16.mxu0 %vm1334_vm1, %v4623_v27  ;;  %4480 = vmatprep.mubr.msk.bf16.mxu1 %vm1334_vm1, %v4624_v28 }
 0x128   : > { %v5169_v32 = vpop.f32.mrf.mxu0  ;;  %v5171_v33 = vpop.f32.mrf.mxu1 }
 0x12a   : > { %v5175_v35 = vpop.f32.mrf.mxu0  ;;  %v5177_v36 = vpop.f32.mrf.mxu1 }
 0x12c   : > { %v5185_v42 = vpop.f32.mrf.mxu0  ;;  %v5187_v43 = vpop.f32.mrf.mxu1 }
 0x12e   : > { %v5191_v45 = vpop.f32.mrf.mxu0  ;;  %v5193_v46 = vpop.f32.mrf.mxu1  ;;  %4417 = vmatmul.mubr.msk.bf16.gmra.mxu0 %vm1334_vm1, %v4625_v37  ;;  %4481 = vmatmul.mubr.msk.bf16.gmra.mxu1 %vm1334_vm1, %v4626_v38 }
 0x12f   : > { %4420 = vmatprep.mubr.msk.bf16.mxu0 %vm1334_vm1, %v4627_v40  ;;  %4484 = vmatprep.mubr.msk.bf16.mxu1 %vm1334_vm1, %v4628_v41 }
 0x130   : > { %v5201_v48 = vpop.f32.mrf.mxu0  ;;  %v5203_v49 = vpop.f32.mrf.mxu1 }
 0x132   : > { %v5207_v51 = vpop.f32.mrf.mxu0  ;;  %v5209_v52 = vpop.f32.mrf.mxu1 }
 0x134   : > { %v5217_v58 = vpop.f32.mrf.mxu0  ;;  %v5219_v59 = vpop.f32.mrf.mxu1 }
 0x136   : > { %v5223_v61 = vpop.f32.mrf.mxu0  ;;  %v5225_v62 = vpop.f32.mrf.mxu1  ;;  %4421 = vmatmul.mubr.msk.bf16.gmra.mxu0 %vm1334_vm1, %v4629_v53  ;;  %4485 = vmatmul.mubr.msk.bf16.gmra.mxu1 %vm1334_vm1, %v4630_v54 }
 0x137   : > { %4424 = vmatprep.mubr.msk.bf16.mxu0 %vm1334_vm1, %v4631_v56  ;;  %4488 = vmatprep.mubr.msk.bf16.mxu1 %vm1334_vm1, %v4632_v57 }
 0x138   : > { %v5233_v0 = vpop.f32.mrf.mxu0  ;;  %v5235_v1 = vpop.f32.mrf.mxu1 }
 0x13a   : > { %v5239_v3 = vpop.f32.mrf.mxu0  ;;  %v5241_v4 = vpop.f32.mrf.mxu1 }
 0x13c   : > { %v5247_v8 = vpop.f32.mrf.mxu0  ;;  %v5249_v9 = vpop.f32.mrf.mxu1 }
 0x13e   : > { %v5253_v11 = vpop.f32.mrf.mxu0  ;;  %v5255_v12 = vpop.f32.mrf.mxu1  ;;  %4425 = vmatmul.mubr.msk.bf16.gmra.mxu0 %vm1334_vm1, %v4633_v5  ;;  %4489 = vmatmul.mubr.msk.bf16.gmra.mxu1 %vm1334_vm1, %v4634_v6  ;;  %v5949_v5 = vmax.f32 %v5159_v29, %v5161_v30  ;;  %v5951_v29 = vmax.f32 %v5175_v35, %v5177_v36 }
 0x140   : > { %v5261_v14 = vpop.f32.mrf.mxu0  ;;  %v5263_v15 = vpop.f32.mrf.mxu1 }
 0x142   : > { %v5267_v17 = vpop.f32.mrf.mxu0  ;;  %v5269_v18 = vpop.f32.mrf.mxu1 }
 0x144   : > { %v5273_v20 = vpop.f32.mrf.mxu0  ;;  %v5275_v21 = vpop.f32.mrf.mxu1 }
 0x146   : > { %v5279_v23 = vpop.f32.mrf.mxu0  ;;  %v5281_v24 = vpop.f32.mrf.mxu1 }
 0x148   : > { %v5285_v26 = vpop.f32.mrf.mxu0  ;;  %v5287_v27 = vpop.f32.mrf.mxu1 }
 0x14a   : > { %v5291_v37 = vpop.f32.mrf.mxu0  ;;  %v5293_v38 = vpop.f32.mrf.mxu1 }
 0x14c   : > { %v5297_v41 = vpop.f32.mrf.mxu0  ;;  %v5299_v53 = vpop.f32.mrf.mxu1 }
 0x14e   : > { %v5303_v56 = vpop.f32.mrf.mxu0  ;;  %v5305_v57 = vpop.f32.mrf.mxu1 }
 0x150   : > { %v5309_v6 = vpop.f32.mrf.mxu0  ;;  %v5311_v28 = vpop.f32.mrf.mxu1 }
 0x152   : > { %v5315_v25 = vpop.f32.mrf.mxu0  ;;  %v5317_v22 = vpop.f32.mrf.mxu1 }
 0x154   : > { %v5321_v19 = vpop.f32.mrf.mxu0  ;;  %v5323_v16 = vpop.f32.mrf.mxu1 }
 0x156   : > { %v5327_v13 = vpop.f32.mrf.mxu0  ;;  %v5329_v10 = vpop.f32.mrf.mxu1 }
 0x158   : > { %v5333_v7 = vpop.f32.mrf.mxu0  ;;  %v5335_v2 = vpop.f32.mrf.mxu1 }
 0x159   : > { %5887 = vst [vmem:[#allocation3_spill] sm:$0xff] %v5333_v7  ;;  %5888 = vst [vmem:[#allocation4_spill] sm:$0xff] %v5335_v2 }
 0x15a   : > { %v5339_v63 = vpop.f32.mrf.mxu0  ;;  %v5341_v60 = vpop.f32.mrf.mxu1 }
 0x15b   : > { %5889 = vst [vmem:[#allocation5_spill] sm:$0xff] %v5339_v63  ;;  %5890 = vst [vmem:[#allocation6_spill] sm:$0xff] %v5341_v60  ;;  %v5950_v63 = vmax.f32 %v5169_v32, %v5171_v33 }
 0x15c   : > { %v5345_v55 = vpop.f32.mrf.mxu0  ;;  %v5347_v50 = vpop.f32.mrf.mxu1 }
 0x15d   : > { %5891 = vst [vmem:[#allocation7_spill] sm:$0xff] %v5345_v55  ;;  %5892 = vst [vmem:[#allocation8_spill] sm:$0xff] %v5347_v50 }
 0x15e   : > { %v5351_v47 = vpop.f32.mrf.mxu0  ;;  %v5353_v44 = vpop.f32.mrf.mxu1 }
 0x15f   : > { %5893 = vst [vmem:[#allocation9_spill] sm:$0xff] %v5351_v47  ;;  %5894 = vst [vmem:[#allocation10_spill] sm:$0xff] %v5353_v44 }
 0x160   : > { %v5357_v39 = vpop.f32.mrf.mxu0  ;;  %v5359_v34 = vpop.f32.mrf.mxu1 }
 0x161   : > { %5895 = vst [vmem:[#allocation11_spill] sm:$0xff] %v5357_v39  ;;  %5896 = vst [vmem:[#allocation12_spill] sm:$0xff] %v5359_v34 }
 0x162   : > { %v5363_v31 = vpop.f32.mrf.mxu0  ;;  %v5365_v60 = vpop.f32.mrf.mxu1 }
 0x163   : > { %5897 = vst [vmem:[#allocation13_spill] sm:$0xff] %v5363_v31  ;;  %5898 = vst [vmem:[#allocation14_spill] sm:$0xff] %v5365_v60 }
 0x164   : > { %v5369_v50 = vpop.f32.mrf.mxu0  ;;  %v5371_v55 = vpop.f32.mrf.mxu1 }
 0x165   : > { %5899 = vst [vmem:[#allocation15_spill] sm:$0xff] %v5369_v50  ;;  %5900 = vst [vmem:[#allocation16_spill] sm:$0xff] %v5371_v55 }
 0x166   : > { %v5375_v44 = vpop.f32.mrf.mxu0  ;;  %v5377_v47 = vpop.f32.mrf.mxu1 }
 0x167   : > { %5901 = vst [vmem:[#allocation17_spill] sm:$0xff] %v5375_v44  ;;  %5902 = vst [vmem:[#allocation18_spill] sm:$0xff] %v5377_v47 }
 0x168   : > { %v5381_v34 = vpop.f32.mrf.mxu0  ;;  %v5383_v39 = vpop.f32.mrf.mxu1 }
 0x169   : > { %5903 = vst [vmem:[#allocation19_spill] sm:$0xff] %v5381_v34  ;;  %5904 = vst [vmem:[#allocation20_spill] sm:$0xff] %v5383_v39 }
 0x16a   : > { %v5387_v60 = vpop.f32.mrf.mxu0  ;;  %v5389_v31 = vpop.f32.mrf.mxu1 }
 0x16b   : > { %5905 = vst [vmem:[#allocation21_spill] sm:$0xff] %v5387_v60  ;;  %5906 = vst [vmem:[#allocation22_spill] sm:$0xff] %v5389_v31 }
 0x16c   : > { %v5393_v55 = vpop.f32.mrf.mxu0  ;;  %v5395_v50 = vpop.f32.mrf.mxu1 }
 0x16d   : > { %5907 = vst [vmem:[#allocation23_spill] sm:$0xff] %v5393_v55  ;;  %5908 = vst [vmem:[#allocation24_spill] sm:$0xff] %v5395_v50 }
 0x16e   : > { %v5399_v47 = vpop.f32.mrf.mxu0  ;;  %v5401_v44 = vpop.f32.mrf.mxu1 }
 0x16f   : > { %5909 = vst [vmem:[#allocation25_spill] sm:$0xff] %v5399_v47  ;;  %5910 = vst [vmem:[#allocation26_spill] sm:$0xff] %v5401_v44 }
 0x170   : > { %v5405_v39 = vpop.f32.mrf.mxu0  ;;  %v5407_v34 = vpop.f32.mrf.mxu1 }
 0x171   : > { %5911 = vst [vmem:[#allocation27_spill] sm:$0xff] %v5405_v39  ;;  %5912 = vst [vmem:[#allocation28_spill] sm:$0xff] %v5407_v34 }
 0x172   : > { %v5411_v31 = vpop.f32.mrf.mxu0  ;;  %v5413_v60 = vpop.f32.mrf.mxu1 }
 0x173   : > { %5913 = vst [vmem:[#allocation29_spill] sm:$0xff] %v5411_v31  ;;  %5914 = vst [vmem:[#allocation30_spill] sm:$0xff] %v5413_v60 }
 0x174   : > { %v5417_v50 = vpop.f32.mrf.mxu0  ;;  %v5419_v55 = vpop.f32.mrf.mxu1 }
 0x175   : > { %5915 = vst [vmem:[#allocation31_spill] sm:$0xff] %v5417_v50  ;;  %5916 = vst [vmem:[#allocation32_spill] sm:$0xff] %v5419_v55 }
 0x176   : > { %v5423_v44 = vpop.f32.mrf.mxu0  ;;  %v5425_v47 = vpop.f32.mrf.mxu1 }
 0x177   : > { %5917 = vst [vmem:[#allocation33_spill] sm:$0xff] %v5423_v44  ;;  %5918 = vst [vmem:[#allocation34_spill] sm:$0xff] %v5425_v47 }
 0x178   : > { %v5429_v34 = vpop.f32.mrf.mxu0  ;;  %v5431_v39 = vpop.f32.mrf.mxu1 }
 0x179   : > { %5919 = vst [vmem:[#allocation35_spill] sm:$0xff] %v5429_v34  ;;  %5920 = vst [vmem:[#allocation36_spill] sm:$0xff] %v5431_v39 }
 0x17a   : > { %v5435_v60 = vpop.f32.mrf.mxu0  ;;  %v5437_v31 = vpop.f32.mrf.mxu1 }
 0x17b   : > { %5921 = vst [vmem:[#allocation37_spill] sm:$0xff] %v5435_v60  ;;  %5922 = vst [vmem:[#allocation38_spill] sm:$0xff] %v5437_v31 }
 0x17c   : > { %v5441_v55 = vpop.f32.mrf.mxu0  ;;  %v5443_v50 = vpop.f32.mrf.mxu1 }
 0x17d   : > { %5923 = vst [vmem:[#allocation39_spill] sm:$0xff] %v5441_v55  ;;  %5924 = vst [vmem:[#allocation40_spill] sm:$0xff] %v5443_v50 }
 0x17e   : > { %v5447_v47 = vpop.f32.mrf.mxu0  ;;  %v5449_v44 = vpop.f32.mrf.mxu1 }
 0x17f   : > { %5925 = vst [vmem:[#allocation41_spill] sm:$0xff] %v5447_v47  ;;  %5926 = vst [vmem:[#allocation42_spill] sm:$0xff] %v5449_v44 }
 0x180   : > { %v5453_v39 = vpop.f32.mrf.mxu0  ;;  %v5455_v34 = vpop.f32.mrf.mxu1 }
 0x181   : > { %5927 = vst [vmem:[#allocation43_spill] sm:$0xff] %v5453_v39  ;;  %5928 = vst [vmem:[#allocation44_spill] sm:$0xff] %v5455_v34 }
 0x182   : > { %v5459_v31 = vpop.f32.mrf.mxu0  ;;  %v5461_v60 = vpop.f32.mrf.mxu1 }
 0x183   : > { %5929 = vst [vmem:[#allocation45_spill] sm:$0xff] %v5459_v31  ;;  %5930 = vst [vmem:[#allocation46_spill] sm:$0xff] %v5461_v60 }
 0x184   : > { %v5465_v50 = vpop.f32.mrf.mxu0  ;;  %v5467_v55 = vpop.f32.mrf.mxu1 }
 0x185   : > { %5931 = vst [vmem:[#allocation47_spill] sm:$0xff] %v5465_v50  ;;  %5932 = vst [vmem:[#allocation48_spill] sm:$0xff] %v5467_v55 }
 0x186   : > { %v5471_v44 = vpop.f32.mrf.mxu0  ;;  %v5473_v47 = vpop.f32.mrf.mxu1 }
 0x187   : > { %5933 = vst [vmem:[#allocation49_spill] sm:$0xff] %v5471_v44  ;;  %5934 = vst [vmem:[#allocation50_spill] sm:$0xff] %v5473_v47 }
 0x188   : > { %v5477_v34 = vpop.f32.mrf.mxu0  ;;  %v5479_v39 = vpop.f32.mrf.mxu1 }
 0x189   : > { %5935 = vst [vmem:[#allocation51_spill] sm:$0xff] %v5477_v34  ;;  %5936 = vst [vmem:[#allocation52_spill] sm:$0xff] %v5479_v39 }
 0x18a   : > { %v5483_v60 = vpop.f32.mrf.mxu0  ;;  %v5485_v31 = vpop.f32.mrf.mxu1 }
 0x18b   : > { %5937 = vst [vmem:[#allocation53_spill] sm:$0xff] %v5483_v60  ;;  %5938 = vst [vmem:[#allocation54_spill] sm:$0xff] %v5485_v31 }
 0x18c   : > { %v5489_v55 = vpop.f32.mrf.mxu0  ;;  %v5491_v50 = vpop.f32.mrf.mxu1 }
 0x18d   : > { %5939 = vst [vmem:[#allocation55_spill] sm:$0xff] %v5489_v55  ;;  %5940 = vst [vmem:[#allocation56_spill] sm:$0xff] %v5491_v50 }
 0x18e   : > { %v5497_v47 = vpop.f32.mrf.mxu0  ;;  %v5499_v44 = vpop.f32.mrf.mxu1 }
 0x18f   : > { %5941 = vst [vmem:[#allocation57_spill] sm:$0xff] %v5497_v47  ;;  %5942 = vst [vmem:[#allocation58_spill] sm:$0xff] %v5499_v44 }
 0x190   : > { %v5503_v39 = vpop.f32.mrf.mxu0  ;;  %v5505_v34 = vpop.f32.mrf.mxu1 }
 0x191   : > { %5943 = vst [vmem:[#allocation59_spill] sm:$0xff] %v5503_v39  ;;  %5944 = vst [vmem:[#allocation60_spill] sm:$0xff] %v5505_v34  ;;  %v5527_v39 = vld [vmem:[%s5823_s2] ss:$0 sm:$0xff] }
 0x192   : > { %v5509_v31 = vpop.f32.mrf.mxu0  ;;  %v5511_v40 = vpop.f32.mrf.mxu1 }
 0x193   : > { %5945 = vst [vmem:[#allocation61_spill] sm:$0xff] %v5509_v31  ;;  %5946 = vst [vmem:[#allocation62_spill] sm:$0xff] %v5511_v40 }
 0x194   : > { %v5515_v55 = vpop.f32.mrf.mxu0  ;;  %v5517_v60 = vpop.f32.mrf.mxu1 }
 0x195   : > { %5947 = vst [vmem:[#allocation63_spill] sm:$0xff] %v5515_v55  ;;  %5948 = vst [vmem:[#allocation64_spill] sm:$0xff] %v5517_v60 }
 0x196   : > { %v4374_v44 = vpop.f32.mrf.mxu0  ;;  %v4438_v47 = vpop.f32.mrf.mxu1 }
 0x197   : > { %v2816_v34 = vmax.f32 %v5949_v5, %v4374_v44 }
 0x198   : > { %v2591_v50 = vpop.f32.mrf.mxu0  ;;  %v3185_v40 = vpop.f32.mrf.mxu1 }
 0x199   : > { %v3410_v31 = vmax.f32 %v2816_v34, %v4438_v47  ;;  %v2814_v54 = vmax.f32 %v5950_v63, %v2591_v50 }
 0x19a   : > { %v4375_v60 = vpop.f32.mrf.mxu0  ;;  %v4439_v55 = vpop.f32.mrf.mxu1 }
 0x19b   : > { %v3473_v2 = vadd.f32 %v5527_v39, %v3410_v31  ;;  %v3408_v7 = vmax.f32 %v2814_v54, %v3185_v40  ;;  %v2817_v30 = vmax.f32 %v5951_v29, %v4375_v60  ;;  %v5952_v31 = vmax.f32 %v5185_v42, %v5187_v43 }
 0x19c   : > { %v2594_v34 = vpop.f32.mrf.mxu0  ;;  %v3188_v44 = vpop.f32.mrf.mxu1  ;;  %v5953_v54 = vmax.f32 %v5191_v45, %v5193_v46  ;;  %v5954_v29 = vmax.f32 %v5201_v48, %v5203_v49 }
 0x19d   : > { %v3529_v32 = vmax.f32 %v3473_v2, 0.0  ;;  %v3471_v33 = vadd.f32 %v5527_v39, %v3408_v7  ;;  %v3411_v47 = vmax.f32 %v2817_v30, %v4439_v55  ;;  %v2815_v50 = vmax.f32 %v5952_v31, %v2594_v34 }
 0x19e   : > { %v4378_v63 = vpop.f32.mrf.mxu0  ;;  %v4442_v35 = vpop.f32.mrf.mxu1 }
 0x19f   : > { %3585 = vst [vmem:[%s5539_s20 + $0x10] sm:$0xff] %v3529_v32  ;;  %v3527_v36 = vmax.f32 %v3471_v33, 0.0  ;;  %v3474_v60 = vadd.f32 %v5527_v39, %v3411_v47  ;;  %v3409_v40 = vmax.f32 %v2815_v50, %v3188_v44  ;;  %v2820_v5 = vmax.f32 %v5953_v54, %v4378_v63 }
 0x1a0   : > { %v2607_v2 = vpop.f32.mrf.mxu0  ;;  %v3201_v7 = vpop.f32.mrf.mxu1  ;;  %v5955_v33 = vmax.f32 %v5207_v51, %v5209_v52 }
 0x1a1   : > { %3583 = vst [vmem:[%s5539_s20] sm:$0xff] %v3527_v36  ;;  %v3530_v55 = vmax.f32 %v3474_v60, 0.0  ;;  %v3472_v42 = vadd.f32 %v5527_v39, %v3409_v40  ;;  %v3414_v43 = vmax.f32 %v2820_v5, %v4442_v35  ;;  %v2818_v30 = vmax.f32 %v5954_v29, %v2607_v2 }
 0x1a2   : > { %v4379_v34 = vpop.f32.mrf.mxu0  ;;  %v4443_v32 = vpop.f32.mrf.mxu1  ;;  %v5956_v35 = vmax.f32 %v5217_v58, %v5219_v59  ;;  %v5957_v5 = vmax.f32 %v5223_v61, %v5225_v62 }
 0x1a3   : > { %3586 = vst [vmem:[%s5539_s20 + $0x18] sm:$0xff] %v3530_v55  ;;  %v3528_v44 = vmax.f32 %v3472_v42, 0.0  ;;  %v3477_v45 = vadd.f32 %v5527_v39, %v3414_v43  ;;  %v3412_v46 = vmax.f32 %v2818_v30, %v3201_v7  ;;  %v2821_v47 = vmax.f32 %v5955_v33, %v4379_v34 }
 0x1a4   : > { %v2610_v31 = vpop.f32.mrf.mxu0  ;;  %v3204_v50 = vpop.f32.mrf.mxu1  ;;  %v5958_v43 = vmax.f32 %v5233_v0, %v5235_v1 }
 0x1a5   : > { %3584 = vst [vmem:[%s5539_s20 + $0x8] sm:$0xff] %v3528_v44  ;;  %v3533_v63 = vmax.f32 %v3477_v45, 0.0  ;;  %v3475_v48 = vadd.f32 %v5527_v39, %v3412_v46  ;;  %v3415_v49 = vmax.f32 %v2821_v47, %v4443_v32  ;;  %v2819_v36 = vmax.f32 %v5956_v35, %v2610_v31 }
 0x1a6   : > { %v4382_v60 = vpop.f32.mrf.mxu0  ;;  %v4446_v40 = vpop.f32.mrf.mxu1  ;;  %v5959_v44 = vmax.f32 %v5239_v3, %v5241_v4  ;;  %v5960_v31 = vmax.f32 %v5247_v8, %v5249_v9  ;;  %v5961_v35 = vmax.f32 %v5253_v11, %v5255_v12 }
 0x1a7   : > { %3589 = vst [vmem:[%s5539_s20 + $0x30] sm:$0xff] %v3533_v63  ;;  %v3531_v54 = vmax.f32 %v3475_v48, 0.0  ;;  %v3478_v51 = vadd.f32 %v5527_v39, %v3415_v49  ;;  %v3413_v52 = vmax.f32 %v2819_v36, %v3204_v50  ;;  %v2824_v2 = vmax.f32 %v5957_v5, %v4382_v60 }
 0x1a8   : > { %v2623_v7 = vpop.f32.mrf.mxu0  ;;  %v3217_v55 = vpop.f32.mrf.mxu1 }
 0x1a9   : > { %3587 = vst [vmem:[%s5539_s20 + $0x20] sm:$0xff] %v3531_v54  ;;  %v3534_v42 = vmax.f32 %v3478_v51, 0.0  ;;  %v3476_v58 = vadd.f32 %v5527_v39, %v3413_v52  ;;  %v3418_v59 = vmax.f32 %v2824_v2, %v4446_v40  ;;  %v2822_v29 = vmax.f32 %v5958_v43, %v2623_v7 }
 0x1aa   : > { %v4383_v30 = vpop.f32.mrf.mxu0  ;;  %v4447_v34 = vpop.f32.mrf.mxu1  ;;  %v5962_v51 = vmax.f32 %v5261_v14, %v5263_v15 }
 0x1ab   : > { %3590 = vst [vmem:[%s5539_s20 + $0x38] sm:$0xff] %v3534_v42  ;;  %v3532_v32 = vmax.f32 %v3476_v58, 0.0  ;;  %v3481_v61 = vadd.f32 %v5527_v39, %v3418_v59  ;;  %v3416_v62 = vmax.f32 %v2822_v29, %v3217_v55  ;;  %v2825_v45 = vmax.f32 %v5959_v44, %v4383_v30 }
 0x1ac   : > { %v2626_v46 = vpop.f32.mrf.mxu0  ;;  %v3220_v33 = vpop.f32.mrf.mxu1  ;;  %v5963_v55 = vmax.f32 %v5267_v17, %v5269_v18  ;;  %v5964_v29 = vmax.f32 %v5273_v20, %v5275_v21 }
 0x1ad   : > { %3588 = vst [vmem:[%s5539_s20 + $0x28] sm:$0xff] %v3532_v32  ;;  %v3537_v47 = vmax.f32 %v3481_v61, 0.0  ;;  %v3479_v0 = vadd.f32 %v5527_v39, %v3416_v62  ;;  %v3419_v1 = vmax.f32 %v2825_v45, %v4447_v34  ;;  %v2823_v50 = vmax.f32 %v5960_v31, %v2626_v46 }
 0x1ae   : > { %v4386_v63 = vpop.f32.mrf.mxu0  ;;  %v4450_v48 = vpop.f32.mrf.mxu1  ;;  %v5965_v62 = vmax.f32 %v5279_v23, %v5281_v24 }
 0x1af   : > { %3593 = vst [vmem:[%s5539_s20 + $0x50] sm:$0xff] %v3537_v47  ;;  %v3535_v49 = vmax.f32 %v3479_v0, 0.0  ;;  %v3482_v3 = vadd.f32 %v5527_v39, %v3419_v1  ;;  %v3417_v4 = vmax.f32 %v2823_v50, %v3220_v33  ;;  %v2828_v36 = vmax.f32 %v5961_v35, %v4386_v63 }
 0x1b0   : > { %v2639_v60 = vpop.f32.mrf.mxu0  ;;  %v3233_v40 = vpop.f32.mrf.mxu1  ;;  %v5966_v47 = vmax.f32 %v5285_v26, %v5287_v27  ;;  %v5967_v63 = vmax.f32 %v5291_v37, %v5293_v38  ;;  %v5968_v35 = vmax.f32 %v5297_v41, %v5299_v53 }
 0x1b1   : > { %3591 = vst [vmem:[%s5539_s20 + $0x40] sm:$0xff] %v3535_v49  ;;  %v3538_v54 = vmax.f32 %v3482_v3, 0.0  ;;  %v3480_v8 = vadd.f32 %v5527_v39, %v3417_v4  ;;  %v3422_v9 = vmax.f32 %v2828_v36, %v4450_v48  ;;  %v2826_v52 = vmax.f32 %v5962_v51, %v2639_v60 }
 0x1b2   : > { %v4387_v5 = vpop.f32.mrf.mxu0  ;;  %v4451_v2 = vpop.f32.mrf.mxu1 }
 0x1b3   : > { %3594 = vst [vmem:[%s5539_s20 + $0x58] sm:$0xff] %v3538_v54  ;;  %v3536_v7 = vmax.f32 %v3480_v8, 0.0  ;;  %v3485_v11 = vadd.f32 %v5527_v39, %v3422_v9  ;;  %v3420_v12 = vmax.f32 %v2826_v52, %v3233_v40  ;;  %v2829_v42 = vmax.f32 %v5963_v55, %v4387_v5 }
 0x1b4   : > { %v2642_v58 = vpop.f32.mrf.mxu0  ;;  %v3236_v59 = vpop.f32.mrf.mxu1  ;;  %v5969_v8 = vmax.f32 %v5303_v56, %v5305_v57 }
 0x1b5   : > { %3592 = vst [vmem:[%s5539_s20 + $0x48] sm:$0xff] %v3536_v7  ;;  %v3541_v43 = vmax.f32 %v3485_v11, 0.0  ;;  %v3483_v14 = vadd.f32 %v5527_v39, %v3420_v12  ;;  %v3423_v15 = vmax.f32 %v2829_v42, %v4451_v2  ;;  %v2827_v30 = vmax.f32 %v5964_v29, %v2642_v58 }
 0x1b6   : > { %v4390_v34 = vpop.f32.mrf.mxu0  ;;  %v4454_v32 = vpop.f32.mrf.mxu1  ;;  %v5970_v2 = vmax.f32 %v5309_v6, %v5311_v28  ;;  %v5971_v42 = vmax.f32 %v5315_v25, %v5317_v22 }
 0x1b7   : > { %3597 = vst [vmem:[%s5539_s20 + $0x70] sm:$0xff] %v3541_v43  ;;  %v3539_v61 = vmax.f32 %v3483_v14, 0.0  ;;  %v3486_v17 = vadd.f32 %v5527_v39, %v3423_v15  ;;  %v3421_v18 = vmax.f32 %v2827_v30, %v3236_v59  ;;  %v2832_v44 = vmax.f32 %v5965_v62, %v4390_v34 }
 0x1b8   : > { %v2655_v45 = vpop.f32.mrf.mxu0  ;;  %v3249_v46 = vpop.f32.mrf.mxu1  ;;  %v5972_v15 = vmax.f32 %v5321_v19, %v5323_v16 }
 0x1b9   : > { %3595 = vst [vmem:[%s5539_s20 + $0x60] sm:$0xff] %v3539_v61  ;;  %v3542_v33 = vmax.f32 %v3486_v17, 0.0  ;;  %v3484_v20 = vadd.f32 %v5527_v39, %v3421_v18  ;;  %v3426_v21 = vmax.f32 %v2832_v44, %v4454_v32  ;;  %v2830_v0 = vmax.f32 %v5966_v47, %v2655_v45  ;;  %v5974_v45 = vld [vmem:[#allocation3_spill] sm:$0xff] }
 0x1ba   : > { %v4391_v1 = vpop.f32.mrf.mxu0  ;;  %v4455_v31 = vpop.f32.mrf.mxu1  ;;  %v5973_v61 = vmax.f32 %v5327_v13, %v5329_v10 }
 0x1bb   : > { %3598 = vst [vmem:[%s5539_s20 + $0x78] sm:$0xff] %v3542_v33  ;;  %v3540_v50 = vmax.f32 %v3484_v20, 0.0  ;;  %v3489_v23 = vadd.f32 %v5527_v39, %v3426_v21  ;;  %v3424_v24 = vmax.f32 %v2830_v0, %v3249_v46  ;;  %v2833_v48 = vmax.f32 %v5967_v63, %v4391_v1  ;;  %v5975_v46 = vld [vmem:[#allocation4_spill] sm:$0xff]  ;;  %v5977_v1 = vld [vmem:[#allocation5_spill] sm:$0xff] }
 0x1bc   : > { %v2658_v49 = vpop.f32.mrf.mxu0  ;;  %v3252_v3 = vpop.f32.mrf.mxu1  ;;  %v5976_v33 = vmax.f32 %v5974_v45, %v5975_v46  ;;  %v5995_v45 = vld [vmem:[#allocation17_spill] sm:$0xff]  ;;  %v5996_v46 = vld [vmem:[#allocation18_spill] sm:$0xff] }
 0x1bd   : > { %3596 = vst [vmem:[%s5539_s20 + $0x68] sm:$0xff] %v3540_v50  ;;  %v3545_v4 = vmax.f32 %v3489_v23, 0.0  ;;  %v3487_v26 = vadd.f32 %v5527_v39, %v3424_v24  ;;  %v3427_v27 = vmax.f32 %v2833_v48, %v4455_v31  ;;  %v2831_v36 = vmax.f32 %v5968_v35, %v2658_v49  ;;  %v5978_v31 = vld [vmem:[#allocation6_spill] sm:$0xff] }
 0x1be   : > { %v4394_v60 = vpop.f32.mrf.mxu0  ;;  %v4458_v40 = vpop.f32.mrf.mxu1  ;;  %v5979_v50 = vmax.f32 %v5977_v1, %v5978_v31  ;;  %v5998_v1 = vld [vmem:[#allocation19_spill] sm:$0xff]  ;;  %v5999_v31 = vld [vmem:[#allocation20_spill] sm:$0xff] }
 0x1bf   : > { %3601 = vst [vmem:[%s5539_s20 + $0x90] sm:$0xff] %v3545_v4  ;;  %v3543_v54 = vmax.f32 %v3487_v26, 0.0  ;;  %v3490_v37 = vadd.f32 %v5527_v39, %v3427_v27  ;;  %v3425_v38 = vmax.f32 %v2831_v36, %v3252_v3  ;;  %v2836_v9 = vmax.f32 %v5969_v8, %v4394_v60  ;;  %v5980_v4 = vld [vmem:[#allocation7_spill] sm:$0xff]  ;;  %v5981_v26 = vld [vmem:[#allocation8_spill] sm:$0xff]  ;;  %v5984_v8 = vld [vmem:[#allocation10_spill] sm:$0xff] }
 0x1c0   : > { %v2671_v51 = vpop.f32.mrf.mxu0  ;;  %v3265_v52 = vpop.f32.mrf.mxu1  ;;  %v5982_v27 = vmax.f32 %v5980_v4, %v5981_v26  ;;  %v6001_v4 = vld [vmem:[#allocation21_spill] sm:$0xff]  ;;  %v6002_v26 = vld [vmem:[#allocation22_spill] sm:$0xff] }
 0x1c1   : > { %3599 = vst [vmem:[%s5539_s20 + $0x80] sm:$0xff] %v3543_v54  ;;  %v3546_v5 = vmax.f32 %v3490_v37, 0.0  ;;  %v3488_v41 = vadd.f32 %v5527_v39, %v3425_v38  ;;  %v3430_v53 = vmax.f32 %v2836_v9, %v4458_v40  ;;  %v2834_v7 = vmax.f32 %v5970_v2, %v2671_v51  ;;  %v5983_v38 = vld [vmem:[#allocation9_spill] sm:$0xff] }
 0x1c2   : > { %v4395_v11 = vpop.f32.mrf.mxu0  ;;  %v4459_v12 = vpop.f32.mrf.mxu1  ;;  %v5985_v9 = vmax.f32 %v5983_v38, %v5984_v8  ;;  %v6004_v38 = vld [vmem:[#allocation23_spill] sm:$0xff]  ;;  %v6005_v8 = vld [vmem:[#allocation24_spill] sm:$0xff] }
 0x1c3   : > { %3602 = vst [vmem:[%s5539_s20 + $0x98] sm:$0xff] %v3546_v5  ;;  %v3544_v55 = vmax.f32 %v3488_v41, 0.0  ;;  %v3493_v56 = vadd.f32 %v5527_v39, %v3430_v53  ;;  %v3428_v57 = vmax.f32 %v2834_v7, %v3265_v52  ;;  %v2837_v58 = vmax.f32 %v5971_v42, %v4395_v11  ;;  %v5986_v7 = vld [vmem:[#allocation11_spill] sm:$0xff]  ;;  %v5987_v11 = vld [vmem:[#allocation12_spill] sm:$0xff] }
 0x1c4   : > { %v2674_v59 = vpop.f32.mrf.mxu0  ;;  %v3268_v43 = vpop.f32.mrf.mxu1 }
 0x1c5   : > { %3600 = vst [vmem:[%s5539_s20 + $0x88] sm:$0xff] %v3544_v55  ;;  %v3549_v14 = vmax.f32 %v3493_v56, 0.0  ;;  %v3491_v28 = vadd.f32 %v5527_v39, %v3428_v57  ;;  %v3431_v6 = vmax.f32 %v2837_v58, %v4459_v12  ;;  %v2835_v29 = vmax.f32 %v5972_v15, %v2674_v59 }
 0x1c6   : > { %v4398_v30 = vpop.f32.mrf.mxu0  ;;  %v4462_v34 = vpop.f32.mrf.mxu1  ;;  %v5988_v12 = vmax.f32 %v5986_v7, %v5987_v11  ;;  %v6007_v7 = vld [vmem:[#allocation25_spill] sm:$0xff]  ;;  %v6008_v11 = vld [vmem:[#allocation26_spill] sm:$0xff] }
 0x1c7   : > { %3605 = vst [vmem:[%s5539_s20 + $0xb0] sm:$0xff] %v3549_v14  ;;  %v3547_v32 = vmax.f32 %v3491_v28, 0.0  ;;  %v3494_v22 = vadd.f32 %v5527_v39, %v3431_v6  ;;  %v3429_v25 = vmax.f32 %v2835_v29, %v3268_v43  ;;  %v2840_v17 = vmax.f32 %v5973_v61, %v4398_v30  ;;  %v5989_v43 = vld [vmem:[#allocation13_spill] sm:$0xff]  ;;  %v5990_v14 = vld [vmem:[#allocation14_spill] sm:$0xff] }
 0x1c8   : > { %v2687_v18 = vpop.f32.mrf.mxu0  ;;  %v3281_v62 = vpop.f32.mrf.mxu1  ;;  %v5991_v28 = vmax.f32 %v5989_v43, %v5990_v14  ;;  %v6010_v43 = vld [vmem:[#allocation27_spill] sm:$0xff]  ;;  %v6011_v14 = vld [vmem:[#allocation28_spill] sm:$0xff] }
 0x1c9   : > { %3603 = vst [vmem:[%s5539_s20 + $0xa0] sm:$0xff] %v3547_v32  ;;  %v3550_v44 = vmax.f32 %v3494_v22, 0.0  ;;  %v3492_v16 = vadd.f32 %v5527_v39, %v3429_v25  ;;  %v3434_v19 = vmax.f32 %v2840_v17, %v4462_v34  ;;  %v2838_v20 = vmax.f32 %v5976_v33, %v2687_v18  ;;  %v5992_v22 = vld [vmem:[#allocation15_spill] sm:$0xff]  ;;  %v5993_v25 = vld [vmem:[#allocation16_spill] sm:$0xff] }
 0x1ca   : > { %v4399_v21 = vpop.f32.mrf.mxu0  ;;  %v4463_v47 = vpop.f32.mrf.mxu1  ;;  %v5994_v61 = vmax.f32 %v5992_v22, %v5993_v25  ;;  %v5997_v33 = vmax.f32 %v5995_v45, %v5996_v46  ;;  %v6013_v22 = vld [vmem:[#allocation29_spill] sm:$0xff]  ;;  %v6014_v25 = vld [vmem:[#allocation30_spill] sm:$0xff]  ;;  %v6016_v45 = vld [vmem:[#allocation31_spill] sm:$0xff] }
 0x1cb   : > { %3606 = vst [vmem:[%s5539_s20 + $0xb8] sm:$0xff] %v3550_v44  ;;  %v3548_v0 = vmax.f32 %v3492_v16, 0.0  ;;  %v3497_v10 = vadd.f32 %v5527_v39, %v3434_v19  ;;  %v3432_v13 = vmax.f32 %v2838_v20, %v3281_v62  ;;  %v2841_v23 = vmax.f32 %v5979_v50, %v4399_v21  ;;  %v6017_v46 = vld [vmem:[#allocation32_spill] sm:$0xff] }
 0x1cc   : > { %v2690_v24 = vpop.f32.mrf.mxu0  ;;  %v3284_v63 = vpop.f32.mrf.mxu1  ;;  %v6000_v50 = vmax.f32 %v5998_v1, %v5999_v31  ;;  %v6019_v1 = vld [vmem:[#allocation33_spill] sm:$0xff]  ;;  %v6020_v31 = vld [vmem:[#allocation34_spill] sm:$0xff] }
 0x1cd   : > { %3604 = vst [vmem:[%s5539_s20 + $0xa8] sm:$0xff] %v3548_v0  ;;  %v3553_v48 = vmax.f32 %v3497_v10, 0.0  ;;  %v3495_v49 = vadd.f32 %v5527_v39, %v3432_v13  ;;  %v3435_v3 = vmax.f32 %v2841_v23, %v4463_v47  ;;  %v2839_v35 = vmax.f32 %v5982_v27, %v2690_v24 }
 0x1ce   : > { %v4402_v36 = vpop.f32.mrf.mxu0  ;;  %v4466_v60 = vpop.f32.mrf.mxu1  ;;  %v6003_v27 = vmax.f32 %v6001_v4, %v6002_v26  ;;  %v6022_v4 = vld [vmem:[#allocation35_spill] sm:$0xff]  ;;  %v6023_v26 = vld [vmem:[#allocation36_spill] sm:$0xff] }
 0x1cf   : > { %3609 = vst [vmem:[%s5539_s20 + $0xd0] sm:$0xff] %v3553_v48  ;;  %v3551_v40 = vmax.f32 %v3495_v49, 0.0  ;;  %v3498_v54 = vadd.f32 %v5527_v39, %v3435_v3  ;;  %v3433_v37 = vmax.f32 %v2839_v35, %v3284_v63  ;;  %v2844_v51 = vmax.f32 %v5985_v9, %v4402_v36 }
 0x1d0   : > { %v2703_v52 = vpop.f32.mrf.mxu0  ;;  %v3297_v5 = vpop.f32.mrf.mxu1  ;;  %v6006_v9 = vmax.f32 %v6004_v38, %v6005_v8  ;;  %v6025_v38 = vld [vmem:[#allocation37_spill] sm:$0xff]  ;;  %v6026_v8 = vld [vmem:[#allocation38_spill] sm:$0xff] }
 0x1d1   : > { %3607 = vst [vmem:[%s5539_s20 + $0xc0] sm:$0xff] %v3551_v40  ;;  %v3554_v41 = vmax.f32 %v3498_v54, 0.0  ;;  %v3496_v53 = vadd.f32 %v5527_v39, %v3433_v37  ;;  %v3438_v2 = vmax.f32 %v2844_v51, %v4466_v60  ;;  %v2842_v55 = vmax.f32 %v5988_v12, %v2703_v52 }
 0x1d2   : > { %v4403_v56 = vpop.f32.mrf.mxu0  ;;  %v4467_v57 = vpop.f32.mrf.mxu1  ;;  %v6009_v12 = vmax.f32 %v6007_v7, %v6008_v11  ;;  %v6028_v7 = vld [vmem:[#allocation39_spill] sm:$0xff]  ;;  %v6029_v11 = vld [vmem:[#allocation40_spill] sm:$0xff] }
 0x1d3   : > { %3610 = vst [vmem:[%s5539_s20 + $0xd8] sm:$0xff] %v3554_v41  ;;  %v3552_v42 = vmax.f32 %v3496_v53, 0.0  ;;  %v3501_v58 = vadd.f32 %v5527_v39, %v3438_v2  ;;  %v3436_v59 = vmax.f32 %v2842_v55, %v3297_v5  ;;  %v2845_v6 = vmax.f32 %v5991_v28, %v4403_v56 }
 0x1d4   : > { %v2706_v15 = vpop.f32.mrf.mxu0  ;;  %v3300_v29 = vpop.f32.mrf.mxu1  ;;  %v6012_v28 = vmax.f32 %v6010_v43, %v6011_v14  ;;  %v6031_v43 = vld [vmem:[#allocation41_spill] sm:$0xff]  ;;  %v6032_v14 = vld [vmem:[#allocation42_spill] sm:$0xff] }
 0x1d5   : > { %3608 = vst [vmem:[%s5539_s20 + $0xc8] sm:$0xff] %v3552_v42  ;;  %v3557_v30 = vmax.f32 %v3501_v58, 0.0  ;;  %v3499_v34 = vadd.f32 %v5527_v39, %v3436_v59  ;;  %v3439_v32 = vmax.f32 %v2845_v6, %v4467_v57  ;;  %v2843_v17 = vmax.f32 %v5994_v61, %v2706_v15 }
 0x1d6   : > { %v4406_v18 = vpop.f32.mrf.mxu0  ;;  %v4470_v62 = vpop.f32.mrf.mxu1  ;;  %v6015_v61 = vmax.f32 %v6013_v22, %v6014_v25  ;;  %v6034_v22 = vld [vmem:[#allocation43_spill] sm:$0xff]  ;;  %v6035_v25 = vld [vmem:[#allocation44_spill] sm:$0xff] }
 0x1d7   : > { %3613 = vst [vmem:[%s5539_s20 + $0xf0] sm:$0xff] %v3557_v30  ;;  %v3555_v44 = vmax.f32 %v3499_v34, 0.0  ;;  %v3502_v16 = vadd.f32 %v5527_v39, %v3439_v32  ;;  %v3437_v19 = vmax.f32 %v2843_v17, %v3300_v29  ;;  %v2848_v20 = vmax.f32 %v5997_v33, %v4406_v18 }
 0x1d8   : > { %v2719_v21 = vpop.f32.mrf.mxu0  ;;  %v3313_v47 = vpop.f32.mrf.mxu1  ;;  %v6018_v33 = vmax.f32 %v6016_v45, %v6017_v46  ;;  %v6037_v45 = vld [vmem:[#allocation45_spill] sm:$0xff]  ;;  %v6038_v46 = vld [vmem:[#allocation46_spill] sm:$0xff] }
 0x1d9   : > { %3611 = vst [vmem:[%s5539_s20 + $0xe0] sm:$0xff] %v3555_v44  ;;  %v3558_v0 = vmax.f32 %v3502_v16, 0.0  ;;  %v3500_v10 = vadd.f32 %v5527_v39, %v3437_v19  ;;  %v3442_v13 = vmax.f32 %v2848_v20, %v4470_v62  ;;  %v2846_v23 = vmax.f32 %v6000_v50, %v2719_v21 }
 0x1da   : > { %v4407_v24 = vpop.f32.mrf.mxu0  ;;  %v4471_v63 = vpop.f32.mrf.mxu1  ;;  %v6021_v50 = vmax.f32 %v6019_v1, %v6020_v31  ;;  %v6040_v1 = vld [vmem:[#allocation47_spill] sm:$0xff]  ;;  %v6041_v31 = vld [vmem:[#allocation48_spill] sm:$0xff] }
 0x1db   : > { %3614 = vst [vmem:[%s5539_s20 + $0xf8] sm:$0xff] %v3558_v0  ;;  %v3556_v48 = vmax.f32 %v3500_v10, 0.0  ;;  %v3505_v49 = vadd.f32 %v5527_v39, %v3442_v13  ;;  %v3440_v3 = vmax.f32 %v2846_v23, %v3313_v47  ;;  %v2849_v35 = vmax.f32 %v6003_v27, %v4407_v24 }
 0x1dc   : > { %v2722_v36 = vpop.f32.mrf.mxu0  ;;  %v3316_v60 = vpop.f32.mrf.mxu1  ;;  %v6024_v27 = vmax.f32 %v6022_v4, %v6023_v26  ;;  %v6043_v4 = vld [vmem:[#allocation49_spill] sm:$0xff]  ;;  %v6044_v26 = vld [vmem:[#allocation50_spill] sm:$0xff] }
 0x1dd   : > { %3612 = vst [vmem:[%s5539_s20 + $0xe8] sm:$0xff] %v3556_v48  ;;  %v3561_v40 = vmax.f32 %v3505_v49, 0.0  ;;  %v3503_v54 = vadd.f32 %v5527_v39, %v3440_v3  ;;  %v3443_v37 = vmax.f32 %v2849_v35, %v4471_v63  ;;  %v2847_v51 = vmax.f32 %v6006_v9, %v2722_v36 }
 0x1de   : > { %v4410_v52 = vpop.f32.mrf.mxu0  ;;  %v4474_v5 = vpop.f32.mrf.mxu1  ;;  %v6027_v9 = vmax.f32 %v6025_v38, %v6026_v8  ;;  %v6046_v38 = vld [vmem:[#allocation51_spill] sm:$0xff]  ;;  %v6047_v8 = vld [vmem:[#allocation52_spill] sm:$0xff] }
 0x1df   : > { %3617 = vst [vmem:[%s5539_s20 + $0x110] sm:$0xff] %v3561_v40  ;;  %v3559_v41 = vmax.f32 %v3503_v54, 0.0  ;;  %v3506_v53 = vadd.f32 %v5527_v39, %v3443_v37  ;;  %v3441_v2 = vmax.f32 %v2847_v51, %v3316_v60  ;;  %v2852_v55 = vmax.f32 %v6009_v12, %v4410_v52 }
 0x1e0   : > { %v2735_v56 = vpop.f32.mrf.mxu0  ;;  %v3329_v57 = vpop.f32.mrf.mxu1  ;;  %v6030_v12 = vmax.f32 %v6028_v7, %v6029_v11  ;;  %v6049_v7 = vld [vmem:[#allocation53_spill] sm:$0xff]  ;;  %v6050_v11 = vld [vmem:[#allocation54_spill] sm:$0xff] }
 0x1e1   : > { %3615 = vst [vmem:[%s5539_s20 + $0x100] sm:$0xff] %v3559_v41  ;;  %v3562_v42 = vmax.f32 %v3506_v53, 0.0  ;;  %v3504_v58 = vadd.f32 %v5527_v39, %v3441_v2  ;;  %v3446_v59 = vmax.f32 %v2852_v55, %v4474_v5  ;;  %v2850_v6 = vmax.f32 %v6012_v28, %v2735_v56 }
 0x1e2   : > { %v4411_v15 = vpop.f32.mrf.mxu0  ;;  %v4475_v29 = vpop.f32.mrf.mxu1  ;;  %v6033_v28 = vmax.f32 %v6031_v43, %v6032_v14  ;;  %v6052_v43 = vld [vmem:[#allocation55_spill] sm:$0xff]  ;;  %v6053_v14 = vld [vmem:[#allocation56_spill] sm:$0xff] }
 0x1e3   : > { %3618 = vst [vmem:[%s5539_s20 + $0x118] sm:$0xff] %v3562_v42  ;;  %v3560_v30 = vmax.f32 %v3504_v58, 0.0  ;;  %v3509_v34 = vadd.f32 %v5527_v39, %v3446_v59  ;;  %v3444_v32 = vmax.f32 %v2850_v6, %v3329_v57  ;;  %v2853_v17 = vmax.f32 %v6015_v61, %v4411_v15 }
 0x1e4   : > { %v2738_v18 = vpop.f32.mrf.mxu0  ;;  %v3332_v62 = vpop.f32.mrf.mxu1  ;;  %v6036_v61 = vmax.f32 %v6034_v22, %v6035_v25  ;;  %v6055_v22 = vld [vmem:[#allocation57_spill] sm:$0xff]  ;;  %v6056_v25 = vld [vmem:[#allocation58_spill] sm:$0xff] }
 0x1e5   : > { %3616 = vst [vmem:[%s5539_s20 + $0x108] sm:$0xff] %v3560_v30  ;;  %v3565_v44 = vmax.f32 %v3509_v34, 0.0  ;;  %v3507_v16 = vadd.f32 %v5527_v39, %v3444_v32  ;;  %v3447_v19 = vmax.f32 %v2853_v17, %v4475_v29  ;;  %v2851_v20 = vmax.f32 %v6018_v33, %v2738_v18 }
 0x1e6   : > { %v4414_v21 = vpop.f32.mrf.mxu0  ;;  %v4478_v47 = vpop.f32.mrf.mxu1  ;;  %v6039_v33 = vmax.f32 %v6037_v45, %v6038_v46  ;;  %v6058_v45 = vld [vmem:[#allocation59_spill] sm:$0xff]  ;;  %v6059_v46 = vld [vmem:[#allocation60_spill] sm:$0xff] }
 0x1e7   : > { %3621 = vst [vmem:[%s5539_s20 + $0x130] sm:$0xff] %v3565_v44  ;;  %v3563_v0 = vmax.f32 %v3507_v16, 0.0  ;;  %v3510_v10 = vadd.f32 %v5527_v39, %v3447_v19  ;;  %v3445_v13 = vmax.f32 %v2851_v20, %v3332_v62  ;;  %v2856_v23 = vmax.f32 %v6021_v50, %v4414_v21 }
 0x1e8   : > { %v2751_v24 = vpop.f32.mrf.mxu0  ;;  %v3345_v63 = vpop.f32.mrf.mxu1  ;;  %v6042_v50 = vmax.f32 %v6040_v1, %v6041_v31  ;;  %v6061_v1 = vld [vmem:[#allocation61_spill] sm:$0xff]  ;;  %v6062_v31 = vld [vmem:[#allocation62_spill] sm:$0xff] }
 0x1e9   : > { %3619 = vst [vmem:[%s5539_s20 + $0x120] sm:$0xff] %v3563_v0  ;;  %v3566_v48 = vmax.f32 %v3510_v10, 0.0  ;;  %v3508_v49 = vadd.f32 %v5527_v39, %v3445_v13  ;;  %v3450_v3 = vmax.f32 %v2856_v23, %v4478_v47  ;;  %v2854_v35 = vmax.f32 %v6024_v27, %v2751_v24 }
 0x1ea   : > { %v4415_v36 = vpop.f32.mrf.mxu0  ;;  %v4479_v60 = vpop.f32.mrf.mxu1  ;;  %v6045_v27 = vmax.f32 %v6043_v4, %v6044_v26  ;;  %v6065_v4 = vld [vmem:[#allocation64_spill] sm:$0xff] }
 0x1eb   : > { %3622 = vst [vmem:[%s5539_s20 + $0x138] sm:$0xff] %v3566_v48  ;;  %v3564_v40 = vmax.f32 %v3508_v49, 0.0  ;;  %v3513_v54 = vadd.f32 %v5527_v39, %v3450_v3  ;;  %v3448_v37 = vmax.f32 %v2854_v35, %v3345_v63  ;;  %v2857_v51 = vmax.f32 %v6027_v9, %v4415_v36 }
 0x1ec   : > { %v2754_v52 = vpop.f32.mrf.mxu0  ;;  %v3348_v5 = vpop.f32.mrf.mxu1  ;;  %v6048_v9 = vmax.f32 %v6046_v38, %v6047_v8 }
 0x1ed   : > { %3620 = vst [vmem:[%s5539_s20 + $0x128] sm:$0xff] %v3564_v40  ;;  %v3569_v41 = vmax.f32 %v3513_v54, 0.0  ;;  %v3511_v53 = vadd.f32 %v5527_v39, %v3448_v37  ;;  %v3451_v2 = vmax.f32 %v2857_v51, %v4479_v60  ;;  %v2855_v55 = vmax.f32 %v6030_v12, %v2754_v52 }
 0x1ee   : > { %v4418_v56 = vpop.f32.mrf.mxu0  ;;  %v4482_v57 = vpop.f32.mrf.mxu1  ;;  %v6051_v12 = vmax.f32 %v6049_v7, %v6050_v11 }
 0x1ef   : > { %3625 = vst [vmem:[%s5539_s20 + $0x150] sm:$0xff] %v3569_v41  ;;  %v3567_v42 = vmax.f32 %v3511_v53, 0.0  ;;  %v3514_v58 = vadd.f32 %v5527_v39, %v3451_v2  ;;  %v3449_v59 = vmax.f32 %v2855_v55, %v3348_v5  ;;  %v2860_v6 = vmax.f32 %v6033_v28, %v4418_v56 }
 0x1f0   : > { %v2767_v15 = vpop.f32.mrf.mxu0  ;;  %v3361_v29 = vpop.f32.mrf.mxu1  ;;  %v6054_v28 = vmax.f32 %v6052_v43, %v6053_v14 }
 0x1f1   : > { %3623 = vst [vmem:[%s5539_s20 + $0x140] sm:$0xff] %v3567_v42  ;;  %v3570_v30 = vmax.f32 %v3514_v58, 0.0  ;;  %v3512_v34 = vadd.f32 %v5527_v39, %v3449_v59  ;;  %v3454_v32 = vmax.f32 %v2860_v6, %v4482_v57  ;;  %v2858_v17 = vmax.f32 %v6036_v61, %v2767_v15 }
 0x1f2   : > { %v4419_v18 = vpop.f32.mrf.mxu0  ;;  %v4483_v62 = vpop.f32.mrf.mxu1  ;;  %v6057_v61 = vmax.f32 %v6055_v22, %v6056_v25 }
 0x1f3   : > { %3626 = vst [vmem:[%s5539_s20 + $0x158] sm:$0xff] %v3570_v30  ;;  %v3568_v44 = vmax.f32 %v3512_v34, 0.0  ;;  %v3517_v16 = vadd.f32 %v5527_v39, %v3454_v32  ;;  %v3452_v19 = vmax.f32 %v2858_v17, %v3361_v29  ;;  %v2861_v20 = vmax.f32 %v6039_v33, %v4419_v18 }
 0x1f4   : > { %v2770_v21 = vpop.f32.mrf.mxu0  ;;  %v3364_v47 = vpop.f32.mrf.mxu1  ;;  %v6060_v33 = vmax.f32 %v6058_v45, %v6059_v46 }
 0x1f5   : > { %3624 = vst [vmem:[%s5539_s20 + $0x148] sm:$0xff] %v3568_v44  ;;  %v3573_v0 = vmax.f32 %v3517_v16, 0.0  ;;  %v3515_v10 = vadd.f32 %v5527_v39, %v3452_v19  ;;  %v3455_v13 = vmax.f32 %v2861_v20, %v4483_v62  ;;  %v2859_v23 = vmax.f32 %v6042_v50, %v2770_v21 }
 0x1f6   : > { %v4422_v24 = vpop.f32.mrf.mxu0  ;;  %v4486_v63 = vpop.f32.mrf.mxu1  ;;  %v6063_v50 = vmax.f32 %v6061_v1, %v6062_v31 }
 0x1f7   : > { %3629 = vst [vmem:[%s5539_s20 + $0x170] sm:$0xff] %v3573_v0  ;;  %v3571_v48 = vmax.f32 %v3515_v10, 0.0  ;;  %v3518_v49 = vadd.f32 %v5527_v39, %v3455_v13  ;;  %v3453_v3 = vmax.f32 %v2859_v23, %v3364_v47  ;;  %v2864_v35 = vmax.f32 %v6045_v27, %v4422_v24 }
 0x1f8   : > { %v2783_v36 = vpop.f32.mrf.mxu0  ;;  %v3377_v60 = vpop.f32.mrf.mxu1 }
 0x1f9   : > { %3627 = vst [vmem:[%s5539_s20 + $0x160] sm:$0xff] %v3571_v48  ;;  %v3574_v40 = vmax.f32 %v3518_v49, 0.0  ;;  %v3516_v54 = vadd.f32 %v5527_v39, %v3453_v3  ;;  %v3458_v37 = vmax.f32 %v2864_v35, %v4486_v63  ;;  %v2862_v51 = vmax.f32 %v6048_v9, %v2783_v36  ;;  %v6064_v3 = vld [vmem:[#allocation63_spill] sm:$0xff] }
 0x1fa   : > { %v4423_v52 = vpop.f32.mrf.mxu0  ;;  %v4487_v5 = vpop.f32.mrf.mxu1  ;;  %v6066_v26 = vmax.f32 %v6064_v3, %v6065_v4 }
 0x1fb   : > { %3630 = vst [vmem:[%s5539_s20 + $0x178] sm:$0xff] %v3574_v40  ;;  %v3572_v41 = vmax.f32 %v3516_v54, 0.0  ;;  %v3521_v53 = vadd.f32 %v5527_v39, %v3458_v37  ;;  %v3456_v2 = vmax.f32 %v2862_v51, %v3377_v60  ;;  %v2865_v55 = vmax.f32 %v6051_v12, %v4423_v52 }
 0x1fc   : > { %v2786_v56 = vpop.f32.mrf.mxu0  ;;  %v3380_v57 = vpop.f32.mrf.mxu1 }
 0x1fd   : > { %3628 = vst [vmem:[%s5539_s20 + $0x168] sm:$0xff] %v3572_v41  ;;  %v3577_v42 = vmax.f32 %v3521_v53, 0.0  ;;  %v3519_v58 = vadd.f32 %v5527_v39, %v3456_v2  ;;  %v3459_v59 = vmax.f32 %v2865_v55, %v4487_v5  ;;  %v2863_v6 = vmax.f32 %v6054_v28, %v2786_v56 }
 0x1fe   : > { %v4426_v15 = vpop.f32.mrf.mxu0  ;;  %v4490_v29 = vpop.f32.mrf.mxu1 }
 0x1ff   : > { %3633 = vst [vmem:[%s5539_s20 + $0x190] sm:$0xff] %v3577_v42  ;;  %v3575_v30 = vmax.f32 %v3519_v58, 0.0  ;;  %v3522_v34 = vadd.f32 %v5527_v39, %v3459_v59  ;;  %v3457_v32 = vmax.f32 %v2863_v6, %v3380_v57  ;;  %v2868_v17 = vmax.f32 %v6057_v61, %v4426_v15 }
 0x200   : > { %v2799_v18 = vpop.f32.mrf.mxu0  ;;  %v3393_v62 = vpop.f32.mrf.mxu1 }
 0x201   : > { %3631 = vst [vmem:[%s5539_s20 + $0x180] sm:$0xff] %v3575_v30  ;;  %v3578_v44 = vmax.f32 %v3522_v34, 0.0  ;;  %v3520_v16 = vadd.f32 %v5527_v39, %v3457_v32  ;;  %v3462_v19 = vmax.f32 %v2868_v17, %v4490_v29  ;;  %v2866_v20 = vmax.f32 %v6060_v33, %v2799_v18 }
 0x202   : > { %v4427_v21 = vpop.f32.mrf.mxu0  ;;  %v4491_v47 = vpop.f32.mrf.mxu1 }
 0x203   : > { %3634 = vst [vmem:[%s5539_s20 + $0x198] sm:$0xff] %v3578_v44  ;;  %v3576_v0 = vmax.f32 %v3520_v16, 0.0  ;;  %v3525_v10 = vadd.f32 %v5527_v39, %v3462_v19  ;;  %v3460_v13 = vmax.f32 %v2866_v20, %v3393_v62  ;;  %v2869_v23 = vmax.f32 %v6063_v50, %v4427_v21 }
 0x204   : > { %v2802_v24 = vpop.f32.mrf.mxu0  ;;  %v3396_v35 = vpop.f32.mrf.mxu1 }
 0x205   : > { %3632 = vst [vmem:[%s5539_s20 + $0x188] sm:$0xff] %v3576_v0  ;;  %v3581_v63 = vmax.f32 %v3525_v10, 0.0  ;;  %v3523_v48 = vadd.f32 %v5527_v39, %v3460_v13  ;;  %v3463_v49 = vmax.f32 %v2869_v23, %v4491_v47  ;;  %v2867_v27 = vmax.f32 %v6066_v26, %v2802_v24 }
 0x207   : > { %3637 = vst [vmem:[%s5539_s20 + $0x1b0] sm:$0xff] %v3581_v63  ;;  %v3579_v36 = vmax.f32 %v3523_v48, 0.0  ;;  %v3526_v60 = vadd.f32 %v5527_v39, %v3463_v49  ;;  %v3461_v40 = vmax.f32 %v2867_v27, %v3396_v35 }
 0x209   : > { %3635 = vst [vmem:[%s5539_s20 + $0x1a0] sm:$0xff] %v3579_v36  ;;  %v3582_v54 = vmax.f32 %v3526_v60, 0.0  ;;  %v3524_v37 = vadd.f32 %v5527_v39, %v3461_v40 }
 0x20b   : > { %3638 = vst [vmem:[%s5539_s20 + $0x1b8] sm:$0xff] %v3582_v54  ;;  %v3580_v38 = vmax.f32 %v3524_v37, 0.0 }
 0x20d   : > { %3636 = vst [vmem:[%s5539_s20 + $0x1a8] sm:$0xff] %v3580_v38 }
 0x20e PF: > { %p10_p9 = scmp.ge.s32.totalorder %s4697_s16, 4   ;;  %s6067_s12 = smov %s4653_s13 }
 0x20f   : > { %s6068_s13 = smov %s4706_s19  ;;  %s6069_s14 = smov %s4697_s16 }
 0x210   :  { %12 = sbr.rel (!%p10_p9) target bundleno = 2 (0x2), region = 111 }

// kernel: stn_forward.5
= control target key start
LH: loop header
LB: loop body
LE: loop exit
PB: predicated region body
PF: predicated region fallthrough
CT: control target
= control target key end

     0   :  { %s1472_s12 = smov 0   ;;  %s1474_s13 = smov 0   ;;  %s1837_s0 = inlined_call_operand.vmem [shape: bf16[4,128,250], index: 0, kind: input, shape index: {}]   ;;  %s1838_s1 = inlined_call_operand.vmem [shape: bf16[250,128], index: 1, kind: input, shape index: {}]   ;;  %s1839_s2 = inlined_call_operand.vmem [shape: f32[1,128], index: 2, kind: input, shape index: {}]   ;;  %s1840_s3 = inlined_call_operand.vmem [shape: f32[128,128], index: 3, kind: output, shape index: {}]  }
   0x1   :  { %s1476_s14 = smov 0  }
   0x2 LB: > { %s1071_s15 = sadd.s32 4294967295, %s1450_s14   ;;  %s1489_s16 = sadd.s32 1, %s1450_s14   ;;  %s1450_s14 = sphi %s1476_s14, %s1843_s14   ;;  %s1446_s13 = sphi %s1474_s13, %s1842_s13   ;;  %s1442_s12 = sphi %s1472_s12, %s1841_s12  }
   0x3   : > { %s17_s17 = ssub.s32 %s1450_s14, %s1489_s16  ;;  %s20_s18 = sadd.s32 1, %s1446_s13 }
   0x4   : > { %p18_p0 = scmp.eq.s32.totalorder %s17_s17, 0  ;;  %p27_p1 = scmp.ne.s32.totalorder %s1446_s13, %s1442_s12 }
   0x5   : > { %p28_p2 = scmp.eq.s32.totalorder %s1450_s14, 0  ;;  %p1074_p4 = scmp.ge.s32.totalorder %s1450_s14, 2 }
   0x6   : > { %s1498_s19 = scalar_select %p18_p0, %s1446_s13, %s20_s18  }
   0x7   : > { %p29_p3 = por %p28_p2, %p27_p1  ;;  %127 = sbr.rel (%p1074_p4) target bundleno = 32 (0x20), region = 24 }
   0xc   : > { %130 = sbr.rel (!%p29_p3) target bundleno = 32 (0x20), region = 28  ;;  %s132_s20 = sand.u32 (%p29_p3), 1, %s1446_s13  }
   0xd   : > { %s1175_s21 = sshll.u32 (%p29_p3), %s1450_s14, 6  ;;  %s1075_s22 = sshll.u32 (%p29_p3), %s132_s20, 8 }
   0xe   : > { %s1506_s25 = scalar_lea.vmem (%p29_p3), %s1837_s0, %s1175_s21  ;;  %s1511_s26 = scalar_lea.vmem (%p29_p3), [#allocation2], %s1075_s22 }
   0xf   : > { %v229_v0 = vld [vmem:[%s1506_s25] sm:$0xff] (%p29_p3)  ;;  %v231_v1 = vld [vmem:[%s1506_s25 + $0x8] sm:$0xff] (%p29_p3)  ;;  %v233_v2 = vld [vmem:[%s1506_s25 + $0x10] sm:$0xff] (%p29_p3) }
  0x10   : > { %230 = vst [vmem:[%s1511_s26] sm:$0xff] (%p29_p3), %v229_v0  ;;  %232 = vst [vmem:[%s1511_s26 + $0x8] sm:$0xff] (%p29_p3), %v231_v1  ;;  %v235_v3 = vld [vmem:[%s1506_s25 + $0x18] sm:$0xff] (%p29_p3)  ;;  %v237_v4 = vld [vmem:[%s1506_s25 + $0x20] sm:$0xff] (%p29_p3) }
  0x11   : > { %234 = vst [vmem:[%s1511_s26 + $0x10] sm:$0xff] %v233_v2  ;;  %v239_v5 = vld [vmem:[%s1506_s25 + $0x28] sm:$0xff]  ;;  %236 = vst [vmem:[%s1511_s26 + $0x18] sm:$0xff] %v235_v3  ;;  %v241_v6 = vld [vmem:[%s1506_s25 + $0x30] sm:$0xff] }
  0x12   : > { %238 = vst [vmem:[%s1511_s26 + $0x20] sm:$0xff] %v237_v4  ;;  %240 = vst [vmem:[%s1511_s26 + $0x28] sm:$0xff] %v239_v5  ;;  %v243_v7 = vld [vmem:[%s1506_s25 + $0x38] sm:$0xff]  ;;  %v245_v8 = vld [vmem:[%s1506_s25 + $0x80] sm:$0xff] }
  0x13   : > { %242 = vst [vmem:[%s1511_s26 + $0x30] sm:$0xff] %v241_v6  ;;  %244 = vst [vmem:[%s1511_s26 + $0x38] sm:$0xff] %v243_v7  ;;  %v247_v9 = vld [vmem:[%s1506_s25 + $0x88] sm:$0xff]  ;;  %v249_v10 = vld [vmem:[%s1506_s25 + $0x90] sm:$0xff] }
  0x14   : > { %246 = vst [vmem:[%s1511_s26 + $0x40] sm:$0xff] %v245_v8  ;;  %v251_v11 = vld [vmem:[%s1506_s25 + $0x98] sm:$0xff]  ;;  %248 = vst [vmem:[%s1511_s26 + $0x48] sm:$0xff] %v247_v9  ;;  %v253_v12 = vld [vmem:[%s1506_s25 + $0xa0] sm:$0xff] }
  0x15   : > { %250 = vst [vmem:[%s1511_s26 + $0x50] sm:$0xff] %v249_v10  ;;  %252 = vst [vmem:[%s1511_s26 + $0x58] sm:$0xff] %v251_v11  ;;  %v255_v13 = vld [vmem:[%s1506_s25 + $0xa8] sm:$0xff]  ;;  %v257_v14 = vld [vmem:[%s1506_s25 + $0xb0] sm:$0xff] }
  0x16   : > { %254 = vst [vmem:[%s1511_s26 + $0x60] sm:$0xff] %v253_v12  ;;  %256 = vst [vmem:[%s1511_s26 + $0x68] sm:$0xff] %v255_v13  ;;  %v259_v15 = vld [vmem:[%s1506_s25 + $0xb8] sm:$0xff]  ;;  %v261_v16 = vld [vmem:[%s1506_s25 + $0x100] sm:$0xff] }
  0x17   : > { %258 = vst [vmem:[%s1511_s26 + $0x70] sm:$0xff] %v257_v14  ;;  %v263_v17 = vld [vmem:[%s1506_s25 + $0x108] sm:$0xff]  ;;  %260 = vst [vmem:[%s1511_s26 + $0x78] sm:$0xff] %v259_v15  ;;  %v265_v18 = vld [vmem:[%s1506_s25 + $0x110] sm:$0xff] }
  0x18   : > { %262 = vst [vmem:[%s1511_s26 + $0x80] sm:$0xff] %v261_v16  ;;  %264 = vst [vmem:[%s1511_s26 + $0x88] sm:$0xff] %v263_v17  ;;  %v267_v19 = vld [vmem:[%s1506_s25 + $0x118] sm:$0xff]  ;;  %v269_v20 = vld [vmem:[%s1506_s25 + $0x120] sm:$0xff] }
  0x19   : > { %266 = vst [vmem:[%s1511_s26 + $0x90] sm:$0xff] %v265_v18  ;;  %268 = vst [vmem:[%s1511_s26 + $0x98] sm:$0xff] %v267_v19  ;;  %v271_v21 = vld [vmem:[%s1506_s25 + $0x128] sm:$0xff]  ;;  %v273_v22 = vld [vmem:[%s1506_s25 + $0x130] sm:$0xff] }
  0x1a   : > { %270 = vst [vmem:[%s1511_s26 + $0xa0] sm:$0xff] %v269_v20  ;;  %v275_v23 = vld [vmem:[%s1506_s25 + $0x138] sm:$0xff]  ;;  %272 = vst [vmem:[%s1511_s26 + $0xa8] sm:$0xff] %v271_v21  ;;  %v277_v24 = vld [vmem:[%s1506_s25 + $0x180] sm:$0xff] }
  0x1b   : > { %274 = vst [vmem:[%s1511_s26 + $0xb0] sm:$0xff] %v273_v22  ;;  %276 = vst [vmem:[%s1511_s26 + $0xb8] sm:$0xff] %v275_v23  ;;  %v279_v25 = vld [vmem:[%s1506_s25 + $0x188] sm:$0xff]  ;;  %v281_v26 = vld [vmem:[%s1506_s25 + $0x190] sm:$0xff] }
  0x1c   : > { %278 = vst [vmem:[%s1511_s26 + $0xc0] sm:$0xff] %v277_v24  ;;  %280 = vst [vmem:[%s1511_s26 + $0xc8] sm:$0xff] %v279_v25  ;;  %v283_v27 = vld [vmem:[%s1506_s25 + $0x198] sm:$0xff]  ;;  %v285_v28 = vld [vmem:[%s1506_s25 + $0x1a0] sm:$0xff] }
  0x1d   : > { %282 = vst [vmem:[%s1511_s26 + $0xd0] sm:$0xff] %v281_v26  ;;  %v287_v29 = vld [vmem:[%s1506_s25 + $0x1a8] sm:$0xff]  ;;  %284 = vst [vmem:[%s1511_s26 + $0xd8] sm:$0xff] %v283_v27  ;;  %v289_v30 = vld [vmem:[%s1506_s25 + $0x1b0] sm:$0xff] }
  0x1e   : > { %286 = vst [vmem:[%s1511_s26 + $0xe0] sm:$0xff] %v285_v28  ;;  %288 = vst [vmem:[%s1511_s26 + $0xe8] sm:$0xff] %v287_v29  ;;  %v291_v31 = vld [vmem:[%s1506_s25 + $0x1b8] sm:$0xff] }
  0x1f   : > { %290 = vst [vmem:[%s1511_s26 + $0xf0] sm:$0xff] %v289_v30  ;;  %292 = vst [vmem:[%s1511_s26 + $0xf8] sm:$0xff] %v291_v31 }
  0x20 PF: > { %p1079_p5 = scmp.ge.s32.totalorder %s1450_s14, 1  ;;  %p297_p6 = scmp.lt.s32.totalorder %s1450_s14, 3 }
  0x22   : > { %p298_p7 = pnand %p1079_p5, %p297_p6 }
  0x23   : > { %s304_s20 = sand.u32 (!%p298_p7), 1, %s1442_s12   ;;  %s1081_s18 = sshll.u32 (!%p298_p7), %s1071_s15, 3 }
  0x24   : > { %301 = sbr.rel (%p298_p7) target bundleno = 340 (0x154), region = 66  ;;  %s1080_s23 = sshll.u32 (!%p298_p7), %s304_s20, 8 }
  0x25   : > { %s1644_s29 = scalar_lea.vmem (!%p298_p7), [#allocation2], %s1080_s23  ;;  %p329_p8 = scmp.lt.s32.totalorder (!%p298_p7), %s1081_s18, 15 }
  0x29   : > { %v1364_v32 = vld [vmem:[%s1838_s1 + $0x78] sm:$0x1f]   ;;  %vm519_vm0 = vcmask 1044480   ;;  %v1366_v34 = vld [vmem:[%s1838_s1 + $0x70] sm:$0xff]   ;;  %v1599_v36 = vld [vmem:[%s1838_s1 + $0x68] sm:$0xff]   ;;  %vm506_vm1 = vcmask 998400  }
  0x2a   : > { %v1582_v33 = vld [vmem:[%s1838_s1 + $0x38] sm:$0xff]   ;;  %1336 = vmatprep.subr.msk.bf16.mxu0 %vm519_vm0, %v1364_v32  ;;  %1337 = vmatprep.subr.msk.bf16.mxu1 %vm519_vm0, %v1364_v32  ;;  %v1594_v35 = vld [vmem:[%s1838_s1 + $0x30] sm:$0xff]   ;;  %v1606_v37 = vld [vmem:[%s1838_s1 + $0x28] sm:$0xff]   ;;  %s1845_s18 = smov (!%p329_p8, %s1081_s18), 15 }
  0x2b   : > { %1177 = vmatpush3.bf16.msra.mxu0 %v1582_v33  ;;  %1217 = vmatpush3.bf16.msra.mxu1 %v1582_v33  ;;  %v1613_v38 = vld [vmem:[%s1838_s1 + $0x60] sm:$0xff]   ;;  %v1628_v40 = vld [vmem:[%s1838_s1 + $0x58] sm:$0xff]   ;;  %v1642_v42 = vld [vmem:[%s1838_s1 + $0x50] sm:$0xff]   ;;  %s1082_s20 = sshll.u32 %s1845_s18, 3 }
  0x2c   : > { %1178 = vmatprep.subr.bf16.mxu0 %v1366_v34  ;;  %1218 = vmatprep.subr.bf16.mxu1 %v1366_v34  ;;  %v1621_v39 = vld [vmem:[%s1838_s1 + $0x20] sm:$0xff]   ;;  %v1635_v41 = vld [vmem:[%s1838_s1 + $0x18] sm:$0xff]   ;;  %v1653_v45 = vld [vmem:[%s1838_s1 + $0x10] sm:$0xff]   ;;  %s1798_s23 = scalar_lea.vmem %s1840_s3, %s1082_s20 }
  0x2d   : > { %v1382_v43 = vld [vmem:[%s1644_s29 + $0x4] ss:$8 sps:$4 sm:$0xff]   ;;  %v1380_v50 = vld [vmem:[%s1644_s29] ss:$8 sps:$4 sm:$0xff]   ;;  %v1386_v52 = vld [vmem:[%s1644_s29 + $0x14] ss:$8 sps:$4 sm:$0xff]  }
  0x2e   : > { %v1385_v44 = vld [vmem:[%s1644_s29 + $0x44] ss:$8 sps:$4 sm:$0xff]   ;;  %1107 = vmatprep.mubr.msk.bf16.mxu0 %vm506_vm1, %v1382_v43  ;;  %v1383_v51 = vld [vmem:[%s1644_s29 + $0x40] ss:$8 sps:$4 sm:$0xff]   ;;  %v1388_v53 = vld [vmem:[%s1644_s29 + $0x54] ss:$8 sps:$4 sm:$0xff]  }
  0x2f   : > { %1179 = vmatpush3.bf16.msra.mxu0 %v1594_v35  ;;  %1219 = vmatpush3.bf16.msra.mxu1 %v1594_v35  ;;  %v1660_v46 = vld [vmem:[%s1838_s1 + $0x48] sm:$0xff]   ;;  %v1676_v48 = vld [vmem:[%s1838_s1 + $0x40] sm:$0xff]   ;;  %v1390_v54 = vld [vmem:[%s1644_s29 + $0x10] ss:$8 sps:$4 sm:$0xff]  }
  0x30   : > { %1180 = vmatprep.subr.bf16.mxu0 %v1599_v36  ;;  %1220 = vmatprep.subr.bf16.mxu1 %v1599_v36  ;;  %v1669_v47 = vld [vmem:[%s1838_s1 + $0x8] sm:$0xff]   ;;  %v1683_v49 = vld [vmem:[%s1838_s1] sm:$0xff]   ;;  %v1391_v55 = vld [vmem:[%s1644_s29 + $0x50] ss:$8 sps:$4 sm:$0xff]  }
  0x31   : > { %1127 = vmatprep.mubr.msk.bf16.mxu1 %vm506_vm1, %v1385_v44  ;;  %v1392_v56 = vld [vmem:[%s1644_s29 + $0x24] ss:$8 sps:$4 sm:$0xff]   ;;  %v1396_v58 = vld [vmem:[%s1644_s29 + $0x20] ss:$8 sps:$4 sm:$0xff]   ;;  %v1398_v60 = vld [vmem:[%s1644_s29 + $0x34] ss:$8 sps:$4 sm:$0xff]  }
  0x32   : > { %v1394_v57 = vld [vmem:[%s1644_s29 + $0x64] ss:$8 sps:$4 sm:$0xff]   ;;  %v1397_v59 = vld [vmem:[%s1644_s29 + $0x60] ss:$8 sps:$4 sm:$0xff]   ;;  %v1400_v61 = vld [vmem:[%s1644_s29 + $0x74] ss:$8 sps:$4 sm:$0xff]  }
  0x33   : > { %1181 = vmatpush3.bf16.msra.mxu0 %v1606_v37  ;;  %1221 = vmatpush3.bf16.msra.mxu1 %v1606_v37  ;;  %v1402_v62 = vld [vmem:[%s1644_s29 + $0x30] ss:$8 sps:$4 sm:$0xff]   ;;  %v1406_v0 = vld [vmem:[%s1644_s29 + $0x84] ss:$8 sps:$4 sm:$0xff]   ;;  %v1404_v2 = vld [vmem:[%s1644_s29 + $0x80] ss:$8 sps:$4 sm:$0xff]  }
  0x34   : > { %1182 = vmatprep.subr.bf16.mxu0 %v1613_v38  ;;  %1222 = vmatprep.subr.bf16.mxu1 %v1613_v38  ;;  %v1403_v63 = vld [vmem:[%s1644_s29 + $0x70] ss:$8 sps:$4 sm:$0xff]   ;;  %v1409_v1 = vld [vmem:[%s1644_s29 + $0xc4] ss:$8 sps:$4 sm:$0xff]   ;;  %v1407_v3 = vld [vmem:[%s1644_s29 + $0xc0] ss:$8 sps:$4 sm:$0xff]  }
  0x35   : > { %v1410_v4 = vld [vmem:[%s1644_s29 + $0x94] ss:$8 sps:$4 sm:$0xff]   ;;  %v1414_v6 = vld [vmem:[%s1644_s29 + $0x90] ss:$8 sps:$4 sm:$0xff]   ;;  %v1416_v8 = vld [vmem:[%s1644_s29 + $0xa4] ss:$8 sps:$4 sm:$0xff]  }
  0x36   : > { %v1412_v5 = vld [vmem:[%s1644_s29 + $0xd4] ss:$8 sps:$4 sm:$0xff]   ;;  %v1415_v7 = vld [vmem:[%s1644_s29 + $0xd0] ss:$8 sps:$4 sm:$0xff]   ;;  %v1418_v9 = vld [vmem:[%s1644_s29 + $0xe4] ss:$8 sps:$4 sm:$0xff]  }
  0x37   : > { %1183 = vmatpush3.bf16.msra.mxu0 %v1621_v39  ;;  %1223 = vmatpush3.bf16.msra.mxu1 %v1621_v39  ;;  %v1420_v10 = vld [vmem:[%s1644_s29 + $0xa0] ss:$8 sps:$4 sm:$0xff]   ;;  %v1422_v12 = vld [vmem:[%s1644_s29 + $0xb4] ss:$8 sps:$4 sm:$0xff]   ;;  %v1426_v14 = vld [vmem:[%s1644_s29 + $0xb0] ss:$8 sps:$4 sm:$0xff]  }
  0x38   : > { %1184 = vmatprep.subr.bf16.mxu0 %v1628_v40  ;;  %1224 = vmatprep.subr.bf16.mxu1 %v1628_v40  ;;  %v1421_v11 = vld [vmem:[%s1644_s29 + $0xe0] ss:$8 sps:$4 sm:$0xff]   ;;  %v1424_v13 = vld [vmem:[%s1644_s29 + $0xf4] ss:$8 sps:$4 sm:$0xff]   ;;  %v1427_v15 = vld [vmem:[%s1644_s29 + $0xf0] ss:$8 sps:$4 sm:$0xff]  }
  0x3b   : > { %1185 = vmatpush3.bf16.msra.mxu0 %v1635_v41  ;;  %1225 = vmatpush3.bf16.msra.mxu1 %v1635_v41 }
  0x3c   : > { %1186 = vmatprep.subr.bf16.mxu0 %v1642_v42  ;;  %1226 = vmatprep.subr.bf16.mxu1 %v1642_v42 }
  0x3f   : > { %1187 = vmatpush3.bf16.msra.mxu0 %v1653_v45  ;;  %1227 = vmatpush3.bf16.msra.mxu1 %v1653_v45 }
  0x40   : > { %1188 = vmatprep.subr.bf16.mxu0 %v1660_v46  ;;  %1228 = vmatprep.subr.bf16.mxu1 %v1660_v46 }
  0x43   : > { %1189 = vmatpush3.bf16.msra.mxu0 %v1669_v47  ;;  %1229 = vmatpush3.bf16.msra.mxu1 %v1669_v47 }
  0x44   : > { %1190 = vmatprep.subr.bf16.mxu0 %v1676_v48  ;;  %1230 = vmatprep.subr.bf16.mxu1 %v1676_v48 }
  0x47   : > { %1191 = vmatpush3.bf16.msra.mxu0 %v1683_v49  ;;  %1231 = vmatpush3.bf16.msra.mxu1 %v1683_v49 }
  0x48   : > { %1338 = vmatprep.subr.msk.bf16.mxu0 %vm519_vm0, %v1364_v32  ;;  %1339 = vmatprep.subr.msk.bf16.mxu1 %vm519_vm0, %v1364_v32 }
  0x4a   : > { %556 = vmatmul.mubr.bf16.vlgmr.msra.gmra.mxu0 %v1380_v50  ;;  %678 = vmatmul.mubr.bf16.vlgmr.msra.gmra.mxu1 %v1383_v51 }
  0x4b   : > { %1257 = vmatpush3.bf16.msra.mxu0 %v1582_v33  ;;  %1297 = vmatpush3.bf16.msra.mxu1 %v1582_v33 }
  0x4c   : > { %1258 = vmatprep.subr.bf16.mxu0 %v1366_v34  ;;  %1298 = vmatprep.subr.bf16.mxu1 %v1366_v34 }
  0x4d   : > { %1108 = vmatprep.mubr.msk.bf16.mxu0 %vm506_vm1, %v1386_v52  ;;  %1128 = vmatprep.mubr.msk.bf16.mxu1 %vm506_vm1, %v1388_v53 }
  0x4f   : > { %1259 = vmatpush3.bf16.msra.mxu0 %v1594_v35  ;;  %1299 = vmatpush3.bf16.msra.mxu1 %v1594_v35 }
  0x50   : > { %1260 = vmatprep.subr.bf16.mxu0 %v1599_v36  ;;  %1300 = vmatprep.subr.bf16.mxu1 %v1599_v36 }
  0x52   : > { %564 = vmatmul.mubr.bf16.gmra.mxu0 %v1390_v54  ;;  %686 = vmatmul.mubr.bf16.gmra.mxu1 %v1391_v55 }
  0x53   : > { %1261 = vmatpush3.bf16.msra.mxu0 %v1606_v37  ;;  %1301 = vmatpush3.bf16.msra.mxu1 %v1606_v37 }
  0x54   : > { %1262 = vmatprep.subr.bf16.mxu0 %v1613_v38  ;;  %1302 = vmatprep.subr.bf16.mxu1 %v1613_v38 }
  0x55   : > { %1109 = vmatprep.mubr.msk.bf16.mxu0 %vm506_vm1, %v1392_v56  ;;  %1129 = vmatprep.mubr.msk.bf16.mxu1 %vm506_vm1, %v1394_v57 }
  0x57   : > { %1263 = vmatpush3.bf16.msra.mxu0 %v1621_v39  ;;  %1303 = vmatpush3.bf16.msra.mxu1 %v1621_v39 }
  0x58   : > { %1264 = vmatprep.subr.bf16.mxu0 %v1628_v40  ;;  %1304 = vmatprep.subr.bf16.mxu1 %v1628_v40 }
  0x5a   : > { %572 = vmatmul.mubr.bf16.gmra.mxu0 %v1396_v58  ;;  %694 = vmatmul.mubr.bf16.gmra.mxu1 %v1397_v59 }
  0x5b   : > { %1265 = vmatpush3.bf16.msra.mxu0 %v1635_v41  ;;  %1305 = vmatpush3.bf16.msra.mxu1 %v1635_v41 }
  0x5c   : > { %1266 = vmatprep.subr.bf16.mxu0 %v1642_v42  ;;  %1306 = vmatprep.subr.bf16.mxu1 %v1642_v42 }
  0x5d   : > { %1110 = vmatprep.mubr.msk.bf16.mxu0 %vm506_vm1, %v1398_v60  ;;  %1130 = vmatprep.mubr.msk.bf16.mxu1 %vm506_vm1, %v1400_v61 }
  0x5f   : > { %1267 = vmatpush3.bf16.msra.mxu0 %v1653_v45  ;;  %1307 = vmatpush3.bf16.msra.mxu1 %v1653_v45 }
  0x60   : > { %1268 = vmatprep.subr.bf16.mxu0 %v1660_v46  ;;  %1308 = vmatprep.subr.bf16.mxu1 %v1660_v46 }
  0x62   : > { %580 = vmatmul.mubr.bf16.gmra.mxu0 %v1402_v62  ;;  %702 = vmatmul.mubr.bf16.gmra.mxu1 %v1403_v63 }
  0x63   : > { %1269 = vmatpush3.bf16.msra.mxu0 %v1669_v47  ;;  %1309 = vmatpush3.bf16.msra.mxu1 %v1669_v47 }
  0x64   : > { %1270 = vmatprep.subr.bf16.mxu0 %v1676_v48  ;;  %1310 = vmatprep.subr.bf16.mxu1 %v1676_v48 }
  0x65   : > { %1147 = vmatprep.mubr.msk.bf16.mxu0 %vm506_vm1, %v1406_v0  ;;  %1167 = vmatprep.mubr.msk.bf16.mxu1 %vm506_vm1, %v1409_v1  ;;  %v1792_v0 = vld [vmem:[%s1839_s2] ss:$0 sm:$0xff] }
  0x67   : > { %1271 = vmatpush3.bf16.msra.mxu0 %v1683_v49  ;;  %1311 = vmatpush3.bf16.msra.mxu1 %v1683_v49 }
  0x6a   : > { %808 = vmatmul.mubr.bf16.vlgmr.msra.gmra.mxu0 %v1404_v2  ;;  %938 = vmatmul.mubr.bf16.vlgmr.msra.gmra.mxu1 %v1407_v3 }
  0x6b   : > { %1148 = vmatprep.mubr.msk.bf16.mxu0 %vm506_vm1, %v1410_v4  ;;  %1168 = vmatprep.mubr.msk.bf16.mxu1 %vm506_vm1, %v1412_v5 }
  0x72   : > { %816 = vmatmul.mubr.bf16.gmra.mxu0 %v1414_v6  ;;  %946 = vmatmul.mubr.bf16.gmra.mxu1 %v1415_v7 }
  0x73   : > { %1149 = vmatprep.mubr.msk.bf16.mxu0 %vm506_vm1, %v1416_v8  ;;  %1169 = vmatprep.mubr.msk.bf16.mxu1 %vm506_vm1, %v1418_v9 }
  0x7a   : > { %824 = vmatmul.mubr.bf16.gmra.mxu0 %v1420_v10  ;;  %954 = vmatmul.mubr.bf16.gmra.mxu1 %v1421_v11 }
  0x7b   : > { %1150 = vmatprep.mubr.msk.bf16.mxu0 %vm506_vm1, %v1422_v12  ;;  %1170 = vmatprep.mubr.msk.bf16.mxu1 %vm506_vm1, %v1424_v13 }
  0x82   : > { %832 = vmatmul.mubr.bf16.gmra.mxu0 %v1426_v14  ;;  %962 = vmatmul.mubr.bf16.gmra.mxu1 %v1427_v15 }
 0x10a   : > { %v1192_v16 = vpop.f32.mrf.mxu0  ;;  %v1232_v17 = vpop.f32.mrf.mxu1 }
 0x10c   : > { %v1193_v18 = vpop.f32.mrf.mxu0  ;;  %v1233_v19 = vpop.f32.mrf.mxu1 }
 0x10d   : > { %v1194_v48 = vadd.f32 %v1193_v18, %v1192_v16  ;;  %v1234_v49 = vadd.f32 %v1233_v19, %v1232_v17 }
 0x10e   : > { %v1195_v20 = vpop.f32.mrf.mxu0  ;;  %v1235_v21 = vpop.f32.mrf.mxu1 }
 0x10f   : > { %v710_v54 = vmax.f32 %v1194_v48, %v1234_v49 }
 0x110   : > { %v1196_v22 = vpop.f32.mrf.mxu0  ;;  %v1236_v23 = vpop.f32.mrf.mxu1 }
 0x111   : > { %v1197_v55 = vadd.f32 %v1196_v22, %v1195_v20  ;;  %v1237_v56 = vadd.f32 %v1236_v23, %v1235_v21 }
 0x112   : > { %v1198_v24 = vpop.f32.mrf.mxu0  ;;  %v1238_v25 = vpop.f32.mrf.mxu1 }
 0x113   : > { %v711_v3 = vmax.f32 %v1197_v55, %v1237_v56 }
 0x114   : > { %v1199_v26 = vpop.f32.mrf.mxu0  ;;  %v1239_v27 = vpop.f32.mrf.mxu1 }
 0x115   : > { %v1200_v62 = vadd.f32 %v1199_v26, %v1198_v24  ;;  %v1240_v63 = vadd.f32 %v1239_v27, %v1238_v25 }
 0x116   : > { %v1201_v28 = vpop.f32.mrf.mxu0  ;;  %v1241_v29 = vpop.f32.mrf.mxu1 }
 0x117   : > { %v712_v11 = vmax.f32 %v1200_v62, %v1240_v63 }
 0x118   : > { %v1202_v30 = vpop.f32.mrf.mxu0  ;;  %v1242_v31 = vpop.f32.mrf.mxu1 }
 0x119   : > { %v1203_v12 = vadd.f32 %v1202_v30, %v1201_v28  ;;  %v1243_v15 = vadd.f32 %v1242_v31, %v1241_v29 }
 0x11a   : > { %v1204_v32 = vpop.f32.mrf.mxu0  ;;  %v1244_v33 = vpop.f32.mrf.mxu1 }
 0x11b   : > { %v713_v28 = vmax.f32 %v1203_v12, %v1243_v15 }
 0x11c   : > { %v1205_v34 = vpop.f32.mrf.mxu0  ;;  %v1245_v35 = vpop.f32.mrf.mxu1 }
 0x11d   : > { %v1206_v24 = vadd.f32 %v1205_v34, %v1204_v32  ;;  %v1246_v25 = vadd.f32 %v1245_v35, %v1244_v33 }
 0x11e   : > { %v1763_v36 = vpop.f32.mrf.mxu0  ;;  %v1765_v37 = vpop.f32.mrf.mxu1 }
 0x120   : > { %v1767_v38 = vpop.f32.mrf.mxu0  ;;  %v1769_v39 = vpop.f32.mrf.mxu1 }
 0x121   : > { %v1249_v34 = vadd.f32 %v1769_v39, %v1765_v37 }
 0x122   : > { %v1771_v40 = vpop.f32.mrf.mxu0  ;;  %v1773_v41 = vpop.f32.mrf.mxu1 }
 0x124   : > { %v1775_v42 = vpop.f32.mrf.mxu0  ;;  %v1777_v43 = vpop.f32.mrf.mxu1 }
 0x125   : > { %v1212_v62 = vadd.f32 %v1775_v42, %v1771_v40 }
 0x126   : > { %v1779_v44 = vpop.f32.mrf.mxu0  ;;  %v1781_v45 = vpop.f32.mrf.mxu1 }
 0x128   : > { %v1785_v46 = vpop.f32.mrf.mxu0  ;;  %v1787_v47 = vpop.f32.mrf.mxu1 }
 0x129   : > { %v1215_v40 = vadd.f32 %v1785_v46, %v1779_v44 }
 0x12a   : > { %v1272_v50 = vpop.f32.mrf.mxu0  ;;  %v1312_v51 = vpop.f32.mrf.mxu1 }
 0x12c   : > { %v1273_v52 = vpop.f32.mrf.mxu0  ;;  %v1313_v53 = vpop.f32.mrf.mxu1 }
 0x12d   : > { %v1274_v57 = vadd.f32 %v1273_v52, %v1272_v50  ;;  %v1314_v61 = vadd.f32 %v1313_v53, %v1312_v51  ;;  %v714_v53 = vmax.f32 %v1206_v24, %v1246_v25 }
 0x12e   : > { %v1275_v58 = vpop.f32.mrf.mxu0  ;;  %v1315_v59 = vpop.f32.mrf.mxu1 }
 0x12f   : > { %v840_v60 = vmax.f32 %v710_v54, %v1274_v57  ;;  %v1209_v54 = vadd.f32 %v1767_v38, %v1763_v36  ;;  %v1252_v36 = vadd.f32 %v1777_v43, %v1773_v41  ;;  %v1255_v43 = vadd.f32 %v1787_v47, %v1781_v45 }
 0x130   : > { %v1276_v1 = vpop.f32.mrf.mxu0  ;;  %v1316_v2 = vpop.f32.mrf.mxu1 }
 0x131   : > { %v970_v4 = vmax.f32 %v840_v60, %v1314_v61  ;;  %v1277_v5 = vadd.f32 %v1276_v1, %v1275_v58  ;;  %v1317_v10 = vadd.f32 %v1316_v2, %v1315_v59  ;;  %v715_v37 = vmax.f32 %v1209_v54, %v1249_v34 }
 0x132   : > { %v1278_v6 = vpop.f32.mrf.mxu0  ;;  %v1318_v7 = vpop.f32.mrf.mxu1  ;;  %v717_v46 = vmax.f32 %v1215_v40, %v1255_v43 }
 0x133   : > { %v985_v8 = vadd.f32 %v1792_v0, %v970_v4  ;;  %v841_v9 = vmax.f32 %v711_v3, %v1277_v5 }
 0x134   : > { %v1279_v13 = vpop.f32.mrf.mxu0  ;;  %v1319_v14 = vpop.f32.mrf.mxu1 }
 0x135   : > { %v993_v16 = vmax.f32 %v985_v8, 0.0  ;;  %v971_v17 = vmax.f32 %v841_v9, %v1317_v10  ;;  %v1280_v18 = vadd.f32 %v1279_v13, %v1278_v6  ;;  %v1320_v23 = vadd.f32 %v1319_v14, %v1318_v7 }
 0x136   : > { %v1281_v19 = vpop.f32.mrf.mxu0  ;;  %v1321_v20 = vpop.f32.mrf.mxu1  ;;  %v716_v8 = vmax.f32 %v1212_v62, %v1252_v36 }
 0x137   : > { %1001 = vst [vmem:[%s1798_s23] sm:$0xff] %v993_v16  ;;  %v986_v21 = vadd.f32 %v1792_v0, %v971_v17  ;;  %v842_v22 = vmax.f32 %v712_v11, %v1280_v18 }
 0x138   : > { %v1282_v26 = vpop.f32.mrf.mxu0  ;;  %v1322_v27 = vpop.f32.mrf.mxu1 }
 0x139   : > { %v994_v30 = vmax.f32 %v986_v21, 0.0  ;;  %v972_v48 = vmax.f32 %v842_v22, %v1320_v23  ;;  %v1283_v49 = vadd.f32 %v1282_v26, %v1281_v19  ;;  %v1323_v52 = vadd.f32 %v1322_v27, %v1321_v20 }
 0x13a   : > { %v1284_v29 = vpop.f32.mrf.mxu0  ;;  %v1324_v31 = vpop.f32.mrf.mxu1 }
 0x13b   : > { %1002 = vst [vmem:[%s1798_s23 + $0x8] sm:$0xff] %v994_v30  ;;  %v987_v50 = vadd.f32 %v1792_v0, %v972_v48  ;;  %v843_v51 = vmax.f32 %v713_v28, %v1283_v49 }
 0x13c   : > { %v1285_v32 = vpop.f32.mrf.mxu0  ;;  %v1325_v33 = vpop.f32.mrf.mxu1 }
 0x13d   : > { %v995_v35 = vmax.f32 %v987_v50, 0.0  ;;  %v973_v55 = vmax.f32 %v843_v51, %v1323_v52  ;;  %v1286_v56 = vadd.f32 %v1285_v32, %v1284_v29  ;;  %v1326_v61 = vadd.f32 %v1325_v33, %v1324_v31 }
 0x13e   : > { %v1287_v57 = vpop.f32.mrf.mxu0  ;;  %v1327_v58 = vpop.f32.mrf.mxu1 }
 0x13f   : > { %1003 = vst [vmem:[%s1798_s23 + $0x10] sm:$0xff] %v995_v35  ;;  %v988_v59 = vadd.f32 %v1792_v0, %v973_v55  ;;  %v844_v60 = vmax.f32 %v714_v53, %v1286_v56 }
 0x140   : > { %v1288_v38 = vpop.f32.mrf.mxu0  ;;  %v1328_v63 = vpop.f32.mrf.mxu1 }
 0x141   : > { %v996_v39 = vmax.f32 %v988_v59, 0.0  ;;  %v974_v1 = vmax.f32 %v844_v60, %v1326_v61  ;;  %v1289_v2 = vadd.f32 %v1288_v38, %v1287_v57  ;;  %v1329_v7 = vadd.f32 %v1328_v63, %v1327_v58 }
 0x142   : > { %v1290_v3 = vpop.f32.mrf.mxu0  ;;  %v1330_v4 = vpop.f32.mrf.mxu1 }
 0x143   : > { %1004 = vst [vmem:[%s1798_s23 + $0x18] sm:$0xff] %v996_v39  ;;  %v989_v5 = vadd.f32 %v1792_v0, %v974_v1  ;;  %v845_v6 = vmax.f32 %v715_v37, %v1289_v2 }
 0x144   : > { %v1291_v42 = vpop.f32.mrf.mxu0  ;;  %v1331_v41 = vpop.f32.mrf.mxu1 }
 0x145   : > { %v997_v9 = vmax.f32 %v989_v5, 0.0  ;;  %v975_v10 = vmax.f32 %v845_v6, %v1329_v7  ;;  %v1292_v11 = vadd.f32 %v1291_v42, %v1290_v3  ;;  %v1332_v16 = vadd.f32 %v1331_v41, %v1330_v4 }
 0x146   : > { %v1293_v12 = vpop.f32.mrf.mxu0  ;;  %v1333_v13 = vpop.f32.mrf.mxu1 }
 0x147   : > { %1005 = vst [vmem:[%s1798_s23 + $0x20] sm:$0xff] %v997_v9  ;;  %v990_v14 = vadd.f32 %v1792_v0, %v975_v10  ;;  %v846_v15 = vmax.f32 %v716_v8, %v1292_v11 }
 0x148   : > { %v1294_v17 = vpop.f32.mrf.mxu0  ;;  %v1334_v44 = vpop.f32.mrf.mxu1 }
 0x149   : > { %v998_v18 = vmax.f32 %v990_v14, 0.0  ;;  %v976_v19 = vmax.f32 %v846_v15, %v1332_v16  ;;  %v1295_v20 = vadd.f32 %v1294_v17, %v1293_v12  ;;  %v1335_v21 = vadd.f32 %v1334_v44, %v1333_v13 }
 0x14b   : > { %1006 = vst [vmem:[%s1798_s23 + $0x28] sm:$0xff] %v998_v18  ;;  %v991_v45 = vadd.f32 %v1792_v0, %v976_v19  ;;  %v847_v47 = vmax.f32 %v717_v46, %v1295_v20 }
 0x14d   : > { %v999_v22 = vmax.f32 %v991_v45, 0.0  ;;  %v977_v23 = vmax.f32 %v847_v47, %v1335_v21 }
 0x14f   : > { %1007 = vst [vmem:[%s1798_s23 + $0x30] sm:$0xff] %v999_v22  ;;  %v992_v24 = vadd.f32 %v1792_v0, %v977_v23 }
 0x151   : > { %v1000_v25 = vmax.f32 %v992_v24, 0.0 }
 0x153   : > { %1008 = vst [vmem:[%s1798_s23 + $0x38] sm:$0xff] %v1000_v25 }
 0x154 PF: > { %p10_p9 = scmp.ge.s32.totalorder %s1489_s16, 4   ;;  %s1841_s12 = smov %s1446_s13 }
 0x155   : > { %s1842_s13 = smov %s1498_s19  ;;  %s1843_s14 = smov %s1489_s16 }
 0x156   :  { %12 = sbr.rel (!%p10_p9) target bundleno = 2 (0x2), region = 108 }

// kernel: stn_forward.6
= control target key start
LH: loop header
LB: loop body
LE: loop exit
PB: predicated region body
PF: predicated region fallthrough
CT: control target
= control target key end

     0   :  { %s1296_s12 = smov 0   ;;  %s1298_s13 = smov 0   ;;  %s1659_s0 = inlined_call_operand.vmem [shape: bf16[4,16,500], index: 0, kind: input, shape index: {}]   ;;  %s1660_s1 = inlined_call_operand.vmem [shape: bf16[500,128], index: 1, kind: input, shape index: {}]   ;;  %s1661_s2 = inlined_call_operand.vmem [shape: f32[1,128], index: 2, kind: input, shape index: {}]   ;;  %s1662_s3 = inlined_call_operand.vmem [shape: f32[16,128], index: 3, kind: output, shape index: {}]  }
   0x1   :  { %s1300_s14 = smov 0  }
   0x2 LB: > { %s928_s15 = sadd.s32 4294967295, %s1274_s14   ;;  %s1313_s16 = sadd.s32 1, %s1274_s14   ;;  %s1274_s14 = sphi %s1300_s14, %s1665_s14   ;;  %s1270_s13 = sphi %s1298_s13, %s1664_s13   ;;  %s1266_s12 = sphi %s1296_s12, %s1663_s12  }
   0x3   : > { %s17_s17 = ssub.s32 %s1274_s14, %s1313_s16  ;;  %s20_s18 = sadd.s32 1, %s1270_s13 }
   0x4   : > { %p18_p0 = scmp.eq.s32.totalorder %s17_s17, 0  ;;  %p27_p1 = scmp.ne.s32.totalorder %s1270_s13, %s1266_s12 }
   0x5   : > { %p28_p2 = scmp.eq.s32.totalorder %s1274_s14, 0  ;;  %p931_p4 = scmp.ge.s32.totalorder %s1274_s14, 2 }
   0x6   : > { %s1322_s19 = scalar_select %p18_p0, %s1270_s13, %s20_s18  }
   0x7   : > { %p29_p3 = por %p28_p2, %p27_p1  ;;  %127 = sbr.rel (%p931_p4) target bundleno = 20 (0x14), region = 24 }
   0xc   : > { %130 = sbr.rel (!%p29_p3) target bundleno = 20 (0x14), region = 28  ;;  %s132_s20 = sand.u32 (%p29_p3), 1, %s1270_s13  }
   0xd   : > { %s999_s21 = sshll.u32 (%p29_p3), %s1274_s14, 4  ;;  %s932_s22 = sshll.u32 (%p29_p3), %s132_s20, 6 }
   0xe   : > { %s137_s25 = scalar_lea.vmem (%p29_p3), %s1659_s0, %s999_s21  ;;  %s134_s26 = scalar_lea.vmem (%p29_p3), [#allocation2], %s932_s22 }
   0xf   : > { %v150_v0 = vld [vmem:[%s137_s25] sm:$0xff] (%p29_p3)  ;;  %v152_v1 = vld [vmem:[%s137_s25 + $0x8] sm:$0xff] (%p29_p3) }
  0x10   : > { %v154_v2 = vld [vmem:[%s137_s25 + $0x20] sm:$0xff] (%p29_p3)  ;;  %151 = vst [vmem:[%s134_s26] sm:$0xff] (%p29_p3), %v150_v0  ;;  %153 = vst [vmem:[%s134_s26 + $0x8] sm:$0xff] (%p29_p3), %v152_v1  ;;  %v156_v3 = vld [vmem:[%s137_s25 + $0x28] sm:$0xff] (%p29_p3) }
  0x11   : > { %155 = vst [vmem:[%s134_s26 + $0x10] sm:$0xff] %v154_v2  ;;  %v158_v4 = vld [vmem:[%s137_s25 + $0x40] sm:$0xff]  ;;  %v160_v5 = vld [vmem:[%s137_s25 + $0x48] sm:$0xff]  ;;  %157 = vst [vmem:[%s134_s26 + $0x18] sm:$0xff] %v156_v3 }
  0x12   : > { %159 = vst [vmem:[%s134_s26 + $0x20] sm:$0xff] %v158_v4  ;;  %161 = vst [vmem:[%s134_s26 + $0x28] sm:$0xff] %v160_v5  ;;  %v162_v6 = vld [vmem:[%s137_s25 + $0x60] sm:$0xff]  ;;  %v164_v7 = vld [vmem:[%s137_s25 + $0x68] sm:$0xff] }
  0x13   : > { %163 = vst [vmem:[%s134_s26 + $0x30] sm:$0xff] %v162_v6  ;;  %165 = vst [vmem:[%s134_s26 + $0x38] sm:$0xff] %v164_v7 }
  0x14 PF: > { %p935_p5 = scmp.ge.s32.totalorder %s1274_s14, 1  ;;  %p170_p6 = scmp.lt.s32.totalorder %s1274_s14, 3 }
  0x16   : > { %p171_p7 = pnand %p935_p5, %p170_p6 }
  0x17   : > { %s177_s4 = sand.u32 (!%p171_p7), 1, %s1266_s12   ;;  %p199_p8 = scmp.lt.s32.totalorder (!%p171_p7), %s928_s15, 1 }
  0x18   : > { %174 = sbr.rel (%p171_p7) target bundleno = 366 (0x16e), region = 51  ;;  %s936_s12 = sshll.u32 (!%p171_p7), %s177_s4, 6 }
  0x19   : > { %s1524_s29 = scalar_lea.vmem (!%p171_p7), [#allocation2], %s936_s12 }
  0x1d   : > { %v1335_v8 = vld [vmem:[%s1660_s1 + $0x78] sm:$0xff]   ;;  %vm475_vm0 = vcmask 1041408   ;;  %v1359_v12 = vld [vmem:[%s1660_s1 + $0x70] sm:$0xff]   ;;  %v1383_v16 = vld [vmem:[%s1660_s1 + $0x68] sm:$0xff]   ;;  %vm471_vm1 = vcmask 949248   ;;  %s1667_s15 = smov (!%p199_p8, %s928_s15), 1 }
  0x1e   : > { %v1340_v9 = vld [vmem:[%s1660_s1 + $0xf8] ss:$0 sps:$4 sm:$0x33]   ;;  %1000 = vmatprep.subr.bf16.mxu0 %v1335_v8  ;;  %v1365_v13 = vld [vmem:[%s1660_s1 + $0xf0] sm:$0xff]   ;;  %v1389_v17 = vld [vmem:[%s1660_s1 + $0xe8] sm:$0xff]   ;;  %s937_s5 = sshll.u32 %s1667_s15, 3 }
  0x1f   : > { %v1345_v10 = vld [vmem:[%s1660_s1 + $0x38] sm:$0xff]   ;;  %1176 = vmatprep.subr.msk.bf16.mxu1 %vm475_vm0, %v1340_v9  ;;  %v1371_v14 = vld [vmem:[%s1660_s1 + $0x30] sm:$0xff]   ;;  %v1395_v18 = vld [vmem:[%s1660_s1 + $0x28] sm:$0xff]   ;;  %s202_s8 = scalar_lea.vmem %s1662_s3, %s937_s5 }
  0x20   : > { %1001 = vmatpush3.bf16.msra.mxu0 %v1345_v10  ;;  %v1354_v11 = vld [vmem:[%s1660_s1 + $0xb8] sm:$0xff]   ;;  %v1377_v15 = vld [vmem:[%s1660_s1 + $0xb0] sm:$0xff]   ;;  %v1401_v19 = vld [vmem:[%s1660_s1 + $0xa8] sm:$0xff]  }
  0x21   : > { %1023 = vmatpush3.bf16.msra.mxu1 %v1354_v11  ;;  %1002 = vmatprep.subr.bf16.mxu0 %v1359_v12  ;;  %v1407_v20 = vld [vmem:[%s1660_s1 + $0x60] sm:$0xff]   ;;  %v1431_v24 = vld [vmem:[%s1660_s1 + $0x58] sm:$0xff]   ;;  %v1455_v28 = vld [vmem:[%s1660_s1 + $0x50] sm:$0xff]  }
  0x22   : > { %1024 = vmatprep.subr.bf16.mxu1 %v1365_v13  ;;  %v1413_v21 = vld [vmem:[%s1660_s1 + $0xe0] sm:$0xff]   ;;  %v1437_v25 = vld [vmem:[%s1660_s1 + $0xd8] sm:$0xff]   ;;  %v1461_v29 = vld [vmem:[%s1660_s1 + $0xd0] sm:$0xff]  }
  0x23   : > { %v1419_v22 = vld [vmem:[%s1660_s1 + $0x20] sm:$0xff]   ;;  %v1443_v26 = vld [vmem:[%s1660_s1 + $0x18] sm:$0xff]   ;;  %v1467_v30 = vld [vmem:[%s1660_s1 + $0x10] sm:$0xff]  }
  0x24   : > { %1003 = vmatpush3.bf16.msra.mxu0 %v1371_v14  ;;  %v1425_v23 = vld [vmem:[%s1660_s1 + $0xa0] sm:$0xff]   ;;  %v1449_v27 = vld [vmem:[%s1660_s1 + $0x98] sm:$0xff]   ;;  %v1474_v31 = vld [vmem:[%s1660_s1 + $0x90] sm:$0xff]  }
  0x25   : > { %1025 = vmatpush3.bf16.msra.mxu1 %v1377_v15  ;;  %1004 = vmatprep.subr.bf16.mxu0 %v1383_v16  ;;  %v1480_v32 = vld [vmem:[%s1660_s1 + $0x48] sm:$0xff]   ;;  %v1504_v36 = vld [vmem:[%s1660_s1 + $0x40] sm:$0xff]   ;;  %v975_v44 = vld [vmem:[%s1524_s29 + $0x10] sm:$0xff] }
  0x26   : > { %1026 = vmatprep.subr.bf16.mxu1 %v1389_v17  ;;  %v1486_v33 = vld [vmem:[%s1660_s1 + $0xc8] sm:$0xff]   ;;  %v1510_v37 = vld [vmem:[%s1660_s1 + $0xc0] sm:$0xff]   ;;  %v976_v45 = vld [vmem:[%s1524_s29 + $0x18] sm:$0xff]  ;;  %v978_v48 = vcombine.high %v975_v44, %v975_v44  ;;  %v977_v50 = vcombine.low %v975_v44, %v975_v44 }
  0x27   : > { %v1492_v34 = vld [vmem:[%s1660_s1 + $0x8] sm:$0xff]   ;;  %v1516_v38 = vld [vmem:[%s1660_s1] sm:$0xff]   ;;  %v980_v49 = vcombine.high %v976_v45, %v976_v45  ;;  %v979_v52 = vcombine.low %v976_v45, %v976_v45  ;;  %v989_v57 = vld [vmem:[%s1524_s29 + $0x30] sm:$0xff] }
  0x28   : > { %1005 = vmatpush3.bf16.msra.mxu0 %v1395_v18  ;;  %v1498_v35 = vld [vmem:[%s1660_s1 + $0x88] sm:$0xff]   ;;  %v1522_v39 = vld [vmem:[%s1660_s1 + $0x80] sm:$0xff]   ;;  %v990_v59 = vld [vmem:[%s1524_s29 + $0x38] sm:$0xff]  ;;  %v992_v60 = vcombine.high %v989_v57, %v989_v57  ;;  %v991_v62 = vcombine.low %v989_v57, %v989_v57 }
  0x29   : > { %1027 = vmatpush3.bf16.msra.mxu1 %v1401_v19  ;;  %1006 = vmatprep.subr.bf16.mxu0 %v1407_v20  ;;  %v267_v40 = vld [vmem:[%s1524_s29] sm:$0xff]  ;;  %v268_v43 = vld [vmem:[%s1524_s29 + $0x8] sm:$0xff]  ;;  %v994_v61 = vcombine.high %v990_v59, %v990_v59  ;;  %v993_v63 = vcombine.low %v990_v59, %v990_v59 }
  0x2a   : > { %1028 = vmatprep.subr.bf16.mxu1 %v1413_v21  ;;  %v938_v41 = vcombine.low %v267_v40, %v267_v40  ;;  %v939_v42 = vcombine.high %v267_v40, %v267_v40  ;;  %v940_v46 = vcombine.low %v268_v43, %v268_v43  ;;  %v941_v47 = vcombine.high %v268_v43, %v268_v43  ;;  %v982_v51 = vld [vmem:[%s1524_s29 + $0x20] sm:$0xff]  ;;  %v983_v53 = vld [vmem:[%s1524_s29 + $0x28] sm:$0xff] }
  0x2b   : > { %v985_v54 = vcombine.high %v982_v51, %v982_v51  ;;  %v987_v55 = vcombine.high %v983_v53, %v983_v53  ;;  %v984_v56 = vcombine.low %v982_v51, %v982_v51  ;;  %v986_v58 = vcombine.low %v983_v53, %v983_v53  ;;  %v996_v45 = vld [vmem:[%s1661_s2] ss:$0 sm:$0xff] }
  0x2c   : > { %1007 = vmatpush3.bf16.msra.mxu0 %v1419_v22  ;;  %511 = vmatprep.mubr.bf16.mxu0 %v939_v42 }
  0x2d   : > { %1029 = vmatpush3.bf16.msra.mxu1 %v1425_v23  ;;  %1008 = vmatprep.subr.bf16.mxu0 %v1431_v24 }
  0x2e   : > { %1030 = vmatprep.subr.bf16.mxu1 %v1437_v25  ;;  %974 = vmatprep.mubr.msk.bf16.mxu1 %vm471_vm1, %v941_v47 }
  0x30   : > { %1009 = vmatpush3.bf16.msra.mxu0 %v1443_v26 }
  0x31   : > { %1031 = vmatpush3.bf16.msra.mxu1 %v1449_v27  ;;  %1010 = vmatprep.subr.bf16.mxu0 %v1455_v28 }
  0x32   : > { %1032 = vmatprep.subr.bf16.mxu1 %v1461_v29 }
  0x34   : > { %1011 = vmatpush3.bf16.msra.mxu0 %v1467_v30 }
  0x35   : > { %1033 = vmatpush3.bf16.msra.mxu1 %v1474_v31  ;;  %1012 = vmatprep.subr.bf16.mxu0 %v1480_v32 }
  0x36   : > { %1034 = vmatprep.subr.bf16.mxu1 %v1486_v33 }
  0x38   : > { %1013 = vmatpush3.bf16.msra.mxu0 %v1492_v34 }
  0x39   : > { %1035 = vmatpush3.bf16.msra.mxu1 %v1498_v35  ;;  %1014 = vmatprep.subr.bf16.mxu0 %v1504_v36 }
  0x3a   : > { %1036 = vmatprep.subr.bf16.mxu1 %v1510_v37 }
  0x3c   : > { %1015 = vmatpush3.bf16.msra.mxu0 %v1516_v38 }
  0x3d   : > { %1037 = vmatpush3.bf16.msra.mxu1 %v1522_v39  ;;  %1044 = vmatprep.subr.bf16.mxu0 %v1335_v8 }
  0x3e   : > { %1177 = vmatprep.subr.msk.bf16.mxu1 %vm475_vm0, %v1340_v9 }
  0x3f   : > { %512 = vmatmul.mubr.bf16.vlgmr.msra.gmra.mxu0 %v938_v41 }
  0x40   : > { %552 = vmatmul.mubr.bf16.vlgmr.msra.gmra.mxu1 %v940_v46  ;;  %1045 = vmatpush3.bf16.msra.mxu0 %v1345_v10 }
  0x41   : > { %1067 = vmatpush3.bf16.msra.mxu1 %v1354_v11  ;;  %1046 = vmatprep.subr.bf16.mxu0 %v1359_v12 }
  0x42   : > { %1068 = vmatprep.subr.bf16.mxu1 %v1365_v13  ;;  %610 = vmatprep.mubr.bf16.mxu0 %v978_v48 }
  0x43   : > { %981 = vmatprep.mubr.msk.bf16.mxu1 %vm471_vm1, %v980_v49 }
  0x44   : > { %1047 = vmatpush3.bf16.msra.mxu0 %v1371_v14 }
  0x45   : > { %1069 = vmatpush3.bf16.msra.mxu1 %v1377_v15  ;;  %1048 = vmatprep.subr.bf16.mxu0 %v1383_v16 }
  0x46   : > { %1070 = vmatprep.subr.bf16.mxu1 %v1389_v17 }
  0x48   : > { %1049 = vmatpush3.bf16.msra.mxu0 %v1395_v18 }
  0x49   : > { %1071 = vmatpush3.bf16.msra.mxu1 %v1401_v19  ;;  %1050 = vmatprep.subr.bf16.mxu0 %v1407_v20 }
  0x4a   : > { %1072 = vmatprep.subr.bf16.mxu1 %v1413_v21 }
  0x4c   : > { %1051 = vmatpush3.bf16.msra.mxu0 %v1419_v22 }
  0x4d   : > { %1073 = vmatpush3.bf16.msra.mxu1 %v1425_v23  ;;  %1052 = vmatprep.subr.bf16.mxu0 %v1431_v24 }
  0x4e   : > { %1074 = vmatprep.subr.bf16.mxu1 %v1437_v25 }
  0x50   : > { %1053 = vmatpush3.bf16.msra.mxu0 %v1443_v26 }
  0x51   : > { %1075 = vmatpush3.bf16.msra.mxu1 %v1449_v27  ;;  %1054 = vmatprep.subr.bf16.mxu0 %v1455_v28 }
  0x52   : > { %1076 = vmatprep.subr.bf16.mxu1 %v1461_v29 }
  0x54   : > { %1055 = vmatpush3.bf16.msra.mxu0 %v1467_v30 }
  0x55   : > { %1077 = vmatpush3.bf16.msra.mxu1 %v1474_v31  ;;  %1056 = vmatprep.subr.bf16.mxu0 %v1480_v32 }
  0x56   : > { %1078 = vmatprep.subr.bf16.mxu1 %v1486_v33 }
  0x58   : > { %1057 = vmatpush3.bf16.msra.mxu0 %v1492_v34 }
  0x59   : > { %1079 = vmatpush3.bf16.msra.mxu1 %v1498_v35  ;;  %1058 = vmatprep.subr.bf16.mxu0 %v1504_v36 }
  0x5a   : > { %1080 = vmatprep.subr.bf16.mxu1 %v1510_v37 }
  0x5c   : > { %1059 = vmatpush3.bf16.msra.mxu0 %v1516_v38 }
  0x5d   : > { %1081 = vmatpush3.bf16.msra.mxu1 %v1522_v39  ;;  %1088 = vmatprep.subr.bf16.mxu0 %v1335_v8 }
  0x5e   : > { %1178 = vmatprep.subr.msk.bf16.mxu1 %vm475_vm0, %v1340_v9 }
  0x5f   : > { %611 = vmatmul.mubr.bf16.vlgmr.msra.gmra.mxu0 %v977_v50 }
  0x60   : > { %651 = vmatmul.mubr.bf16.vlgmr.msra.gmra.mxu1 %v979_v52  ;;  %1089 = vmatpush3.bf16.msra.mxu0 %v1345_v10 }
  0x61   : > { %1111 = vmatpush3.bf16.msra.mxu1 %v1354_v11  ;;  %1090 = vmatprep.subr.bf16.mxu0 %v1359_v12 }
  0x62   : > { %1112 = vmatprep.subr.bf16.mxu1 %v1365_v13  ;;  %710 = vmatprep.mubr.bf16.mxu0 %v985_v54 }
  0x63   : > { %988 = vmatprep.mubr.msk.bf16.mxu1 %vm471_vm1, %v987_v55 }
  0x64   : > { %1091 = vmatpush3.bf16.msra.mxu0 %v1371_v14 }
  0x65   : > { %1113 = vmatpush3.bf16.msra.mxu1 %v1377_v15  ;;  %1092 = vmatprep.subr.bf16.mxu0 %v1383_v16 }
  0x66   : > { %1114 = vmatprep.subr.bf16.mxu1 %v1389_v17 }
  0x68   : > { %1093 = vmatpush3.bf16.msra.mxu0 %v1395_v18 }
  0x69   : > { %1115 = vmatpush3.bf16.msra.mxu1 %v1401_v19  ;;  %1094 = vmatprep.subr.bf16.mxu0 %v1407_v20 }
  0x6a   : > { %1116 = vmatprep.subr.bf16.mxu1 %v1413_v21 }
  0x6c   : > { %1095 = vmatpush3.bf16.msra.mxu0 %v1419_v22 }
  0x6d   : > { %1117 = vmatpush3.bf16.msra.mxu1 %v1425_v23  ;;  %1096 = vmatprep.subr.bf16.mxu0 %v1431_v24 }
  0x6e   : > { %1118 = vmatprep.subr.bf16.mxu1 %v1437_v25 }
  0x70   : > { %1097 = vmatpush3.bf16.msra.mxu0 %v1443_v26 }
  0x71   : > { %1119 = vmatpush3.bf16.msra.mxu1 %v1449_v27  ;;  %1098 = vmatprep.subr.bf16.mxu0 %v1455_v28 }
  0x72   : > { %1120 = vmatprep.subr.bf16.mxu1 %v1461_v29 }
  0x74   : > { %1099 = vmatpush3.bf16.msra.mxu0 %v1467_v30 }
  0x75   : > { %1121 = vmatpush3.bf16.msra.mxu1 %v1474_v31  ;;  %1100 = vmatprep.subr.bf16.mxu0 %v1480_v32 }
  0x76   : > { %1122 = vmatprep.subr.bf16.mxu1 %v1486_v33 }
  0x78   : > { %1101 = vmatpush3.bf16.msra.mxu0 %v1492_v34 }
  0x79   : > { %1123 = vmatpush3.bf16.msra.mxu1 %v1498_v35  ;;  %1102 = vmatprep.subr.bf16.mxu0 %v1504_v36 }
  0x7a   : > { %1124 = vmatprep.subr.bf16.mxu1 %v1510_v37 }
  0x7c   : > { %1103 = vmatpush3.bf16.msra.mxu0 %v1516_v38 }
  0x7d   : > { %1125 = vmatpush3.bf16.msra.mxu1 %v1522_v39  ;;  %1132 = vmatprep.subr.bf16.mxu0 %v1335_v8 }
  0x7e   : > { %1179 = vmatprep.subr.msk.bf16.mxu1 %vm475_vm0, %v1340_v9 }
  0x7f   : > { %711 = vmatmul.mubr.bf16.vlgmr.msra.gmra.mxu0 %v984_v56 }
  0x80   : > { %751 = vmatmul.mubr.bf16.vlgmr.msra.gmra.mxu1 %v986_v58  ;;  %1133 = vmatpush3.bf16.msra.mxu0 %v1345_v10 }
  0x81   : > { %1155 = vmatpush3.bf16.msra.mxu1 %v1354_v11  ;;  %1134 = vmatprep.subr.bf16.mxu0 %v1359_v12 }
  0x82   : > { %1156 = vmatprep.subr.bf16.mxu1 %v1365_v13  ;;  %810 = vmatprep.mubr.bf16.mxu0 %v992_v60 }
  0x83   : > { %995 = vmatprep.mubr.msk.bf16.mxu1 %vm471_vm1, %v994_v61 }
  0x84   : > { %1135 = vmatpush3.bf16.msra.mxu0 %v1371_v14 }
  0x85   : > { %1157 = vmatpush3.bf16.msra.mxu1 %v1377_v15  ;;  %1136 = vmatprep.subr.bf16.mxu0 %v1383_v16 }
  0x86   : > { %1158 = vmatprep.subr.bf16.mxu1 %v1389_v17 }
  0x88   : > { %1137 = vmatpush3.bf16.msra.mxu0 %v1395_v18 }
  0x89   : > { %1159 = vmatpush3.bf16.msra.mxu1 %v1401_v19  ;;  %1138 = vmatprep.subr.bf16.mxu0 %v1407_v20 }
  0x8a   : > { %1160 = vmatprep.subr.bf16.mxu1 %v1413_v21 }
  0x8c   : > { %1139 = vmatpush3.bf16.msra.mxu0 %v1419_v22 }
  0x8d   : > { %1161 = vmatpush3.bf16.msra.mxu1 %v1425_v23  ;;  %1140 = vmatprep.subr.bf16.mxu0 %v1431_v24 }
  0x8e   : > { %1162 = vmatprep.subr.bf16.mxu1 %v1437_v25 }
  0x90   : > { %1141 = vmatpush3.bf16.msra.mxu0 %v1443_v26 }
  0x91   : > { %1163 = vmatpush3.bf16.msra.mxu1 %v1449_v27  ;;  %1142 = vmatprep.subr.bf16.mxu0 %v1455_v28 }
  0x92   : > { %1164 = vmatprep.subr.bf16.mxu1 %v1461_v29 }
  0x94   : > { %1143 = vmatpush3.bf16.msra.mxu0 %v1467_v30 }
  0x95   : > { %1165 = vmatpush3.bf16.msra.mxu1 %v1474_v31  ;;  %1144 = vmatprep.subr.bf16.mxu0 %v1480_v32 }
  0x96   : > { %1166 = vmatprep.subr.bf16.mxu1 %v1486_v33 }
  0x98   : > { %1145 = vmatpush3.bf16.msra.mxu0 %v1492_v34 }
  0x99   : > { %1167 = vmatpush3.bf16.msra.mxu1 %v1498_v35  ;;  %1146 = vmatprep.subr.bf16.mxu0 %v1504_v36 }
  0x9a   : > { %1168 = vmatprep.subr.bf16.mxu1 %v1510_v37 }
  0x9c   : > { %1147 = vmatpush3.bf16.msra.mxu0 %v1516_v38 }
  0x9d   : > { %1169 = vmatpush3.bf16.msra.mxu1 %v1522_v39 }
  0x9f   : > { %811 = vmatmul.mubr.bf16.vlgmr.msra.gmra.mxu0 %v991_v62 }
  0xa0   : > { %851 = vmatmul.mubr.bf16.vlgmr.msra.gmra.mxu1 %v993_v63 }
  0xff   : > { %v1016_v0 = vpop.f32.mrf.mxu0 }
 0x100   : > { %v1038_v1 = vpop.f32.mrf.mxu1 }
 0x101   : > { %v1017_v2 = vpop.f32.mrf.mxu0 }
 0x102   : > { %v1018_v3 = vadd.f32 %v1017_v2, %v1016_v0  ;;  %v1039_v4 = vpop.f32.mrf.mxu1 }
 0x103   : > { %v1040_v5 = vadd.f32 %v1039_v4, %v1038_v1  ;;  %v1019_v6 = vpop.f32.mrf.mxu0 }
 0x104   : > { %v1041_v7 = vpop.f32.mrf.mxu1 }
 0x105   : > { %v554_v8 = vadd.f32 %v1040_v5, %v1018_v3  ;;  %v1020_v9 = vpop.f32.mrf.mxu0 }
 0x106   : > { %v1042_v10 = vpop.f32.mrf.mxu1 }
 0x11f   : > { %v1060_v11 = vpop.f32.mrf.mxu0 }
 0x120   : > { %v1082_v12 = vpop.f32.mrf.mxu1 }
 0x121   : > { %v1061_v13 = vpop.f32.mrf.mxu0 }
 0x122   : > { %v1083_v14 = vpop.f32.mrf.mxu1  ;;  %v1062_v27 = vadd.f32 %v1061_v13, %v1060_v11 }
 0x123   : > { %v1063_v15 = vpop.f32.mrf.mxu0  ;;  %v1084_v28 = vadd.f32 %v1083_v14, %v1082_v12 }
 0x124   : > { %v1085_v16 = vpop.f32.mrf.mxu1 }
 0x125   : > { %v1064_v17 = vpop.f32.mrf.mxu0  ;;  %v653_v31 = vadd.f32 %v1084_v28, %v1062_v27 }
 0x126   : > { %v1086_v18 = vpop.f32.mrf.mxu1 }
 0x127   : > { %v658_v38 = vmax.f32 %v554_v8, %v653_v31 }
 0x13f   : > { %v1104_v19 = vpop.f32.mrf.mxu0 }
 0x140   : > { %v1126_v20 = vpop.f32.mrf.mxu1 }
 0x141   : > { %v1105_v21 = vpop.f32.mrf.mxu0 }
 0x142   : > { %v1127_v22 = vpop.f32.mrf.mxu1  ;;  %v1106_v29 = vadd.f32 %v1105_v21, %v1104_v19 }
 0x143   : > { %v1107_v23 = vpop.f32.mrf.mxu0  ;;  %v1128_v30 = vadd.f32 %v1127_v22, %v1126_v20 }
 0x144   : > { %v1129_v24 = vpop.f32.mrf.mxu1 }
 0x145   : > { %v1108_v25 = vpop.f32.mrf.mxu0  ;;  %v753_v34 = vadd.f32 %v1128_v30, %v1106_v29 }
 0x146   : > { %v1130_v26 = vpop.f32.mrf.mxu1 }
 0x147   : > { %v758_v42 = vmax.f32 %v658_v38, %v753_v34 }
 0x15f   : > { %v1148_v32 = vpop.f32.mrf.mxu0 }
 0x160   : > { %v1170_v33 = vpop.f32.mrf.mxu1 }
 0x161   : > { %v1149_v35 = vpop.f32.mrf.mxu0 }
 0x162   : > { %v1150_v36 = vadd.f32 %v1149_v35, %v1148_v32  ;;  %v1171_v37 = vpop.f32.mrf.mxu1 }
 0x163   : > { %v1172_v39 = vadd.f32 %v1171_v37, %v1170_v33  ;;  %v1151_v40 = vpop.f32.mrf.mxu0 }
 0x164   : > { %v1173_v41 = vpop.f32.mrf.mxu1 }
 0x165   : > { %v853_v43 = vadd.f32 %v1172_v39, %v1150_v36  ;;  %v1152_v44 = vpop.f32.mrf.mxu0 }
 0x166   : > { %v1174_v46 = vpop.f32.mrf.mxu1 }
 0x167   : > { %v858_v47 = vmax.f32 %v758_v42, %v853_v43 }
 0x169   : > { %v866_v48 = vadd.f32 %v996_v45, %v858_v47 }
 0x16b   : > { %v867_v49 = vmax.f32 %v866_v48, 0.0 }
 0x16d   : > { %868 = vst [vmem:[%s202_s8] sm:$0xff] %v867_v49 }
 0x16e PF: > { %p10_p9 = scmp.ge.s32.totalorder %s1313_s16, 4   ;;  %s1663_s12 = smov %s1270_s13 }
 0x16f   : > { %s1664_s13 = smov %s1322_s19  ;;  %s1665_s14 = smov %s1313_s16 }
 0x170   :  { %12 = sbr.rel (!%p10_p9) target bundleno = 2 (0x2), region = 93 }

// kernel: stn_forward.7
= control target key start
LH: loop header
LB: loop body
LE: loop exit
PB: predicated region body
PF: predicated region fallthrough
CT: control target
= control target key end

     0   :  { %7 = vsyncpa [#allocation3], 0  ;;  %s2026_s9 = smov 0   ;;  %s2028_s10 = smov 0   ;;  %s2832_s0 = inlined_call_operand.vmem [shape: f32[2,6], index: 0, kind: input, shape index: {}]   ;;  %s2833_s1 = inlined_call_operand.vmem [shape: f32[2,48,48], index: 1, kind: input, shape index: {}]   ;;  %s2834_s2 = inlined_call_operand.vmem [shape: f32[2,1,2304], index: 2, kind: output, shape index: {}]  }
   0x1   :  { %s2030_s11 = smov 0   ;;  %s2032_s12 = smov 0  }
   0x2   :  { %s2034_s13 = smov 0  }
   0x3 LB: > { %s1772_s14 = sadd.s32 4294967295, %s2006_s13   ;;  %s22_s15 = sadd.s32 1, %s1998_s11  ;;  %s2006_s13 = sphi %s2034_s13, %s13_s13   ;;  %s2002_s12 = sphi %s2032_s12, %s2862_s12   ;;  %s1998_s11 = sphi %s2030_s11, %s2861_s11   ;;  %s1994_s10 = sphi %s2028_s10, %s2860_s10   ;;  %s1990_s9 = sphi %s2026_s9, %s2859_s9  }
   0x4   : > { %p23_p0 = scmp.ge.s32.totalorder %s22_s15, 2  ;;  %s25_s16 = sadd.s32 1, %s2002_s12 }
   0x5   : > { %p1774_p1 = scmp.ge.s32.totalorder %s2006_s13, 1  ;;  %p105_p2 = scmp.lt.s32.totalorder %s2006_s13, 5 }
   0x6   : > { %s2864_s15 = smov (%p23_p0, %s22_s15), 0  ;;  %s2866_s16 = smov (!%p23_p0, %s25_s16), %s2002_s12 }
   0x7   : > { %p2059_p3 = pnand %p1774_p1, %p105_p2  ;;  %p27_p4 = scmp.ge.s32.totalorder %s2866_s16, 2 }
   0x8   : > { %p2063_p5 = scmp.eq.s32.totalorder %s1772_s14, 0  ;;  %s118_s21 = sshll.u32 %s2832_s0, 4  ;;  %s119_s21 = int_to_ptr.vmem [resolvable:$true] %s118_s21 }
   0x9   : > { %p1900_p6 = pneg %p2059_p3  ;;  %s2868_s16 = smov (%p27_p4, %s2866_s16), 0 }
   0xa   : > { %s1949_s22 = scalar_lea.vmem %s119_s21, 32  ;;  %p1957_p12 = scmp.lt.s32.totalorder %s119_s21, %s119_s21 }
   0xb   : > { %p1901_p7 = pnand %p2063_p5, %p1900_p6  ;;  %p1950_p8 = scmp.ne.s32.totalorder %s119_s21, %s1949_s22 }
   0xc   : > { %p1958_p13 = scmp.lt.s32.totalorder %s1949_s22, %s1949_s22 }
   0xd   : > { %p1951_p9 = pneg %p1901_p7 }
   0xe   : > { %p1959_p0 = por %p1958_p13, %p1957_p12 }
   0xf   : > { %p1952_p10 = pnand %p1951_p9, %p1950_p8 }
  0x11   : > { %p1953_p11 = pneg %p1952_p10 }
  0x13   : > { %p1960_p1 = pnand %p1959_p0, %p1953_p11 }
  0x15   : > { %1963 = shalt.err (!%p1960_p1)
}
  0x16   : > { %s2008_s23 = smov [#allocation2]   ;;  %139 = sbr.rel (%p2059_p3) target bundleno = 400 (0x190), region = 28 }
  0x17   : > { %1903 = dma.vmem_to_smem (!%p1901_p7), %s119_s21, 32, %s2008_s23, [#allocation3]  }
  0x1b   : > { %1985 = dma.done.wait (%p2063_p5), [#allocation3], 32  }
  0x1c   : > { %1987 = vsyncadd (%p2063_p5), [#allocation3], 4294967264 }
  0x1d   : > { %145 = sfence }
  0x1e   : > { %s179_s24 = smul.u32 1152, %s1990_s9  ;;  %v2835_v0 = vlaneseq  ;;  %s2084_s25 = sshll.u32 %s1994_s10, 7  ;;  %v2009_v1 = vmov 0.0   ;;  %vm931_vm0 = vcmask 392192  }
  0x1f   : > { %s319_s26 = sld [smem:[#allocation2 + %s2084_s25]]  ;;  %s320_s27 = sadd.s32 1, %s2084_s25  ;;  %1014 = vmatprep.mubr.f32.mxu0 %v2009_v1  ;;  %1115 = vmatprep.mubr.f32.mxu1 %v2009_v1 }
  0x20   : > { %v2091_v2 = vand.u32 127, %v2835_v0  ;;  %s321_s28 = sld [smem:[#allocation2 + %s320_s27]]  ;;  %s322_s29 = sadd.s32 2, %s2084_s25  ;;  %v2095_v3 = vshrl.u32 %v2835_v0, 7  ;;  %v2097_v4 = vstv %s179_s24 }
  0x21   : > { %s323_s30 = sld [smem:[#allocation2 + %s322_s29]]  ;;  %p165_p2 = scmp.lt.s32.totalorder %s1994_s10, 1 }
  0x22   : > { %v182_v5 = vadd.s32 128, %v2091_v2  ;;  %v482_v6 = vadd.s32 8, %v2095_v3  ;;  %v483_v7 = vadd.s32 16, %v2095_v3  ;;  %v484_v8 = vadd.s32 24, %v2095_v3  ;;  %s324_s3 = sadd.s32 3, %s2084_s25  ;;  %s326_s14 = sadd.s32 4, %s2084_s25 }
  0x23   : > { %v485_v9 = vadd.s32 32, %v2095_v3  ;;  %v486_v10 = vadd.s32 40, %v2095_v3  ;;  %v2106_v11 = vcvt.s32.f32 %v2095_v3  ;;  %v184_v12 = vadd.s32 384, %v2091_v2  ;;  %s2870_s10 = smov (!%p165_p2, %s1994_s10), 1  ;;  %s2275_s5 = sld [smem:[#allocation2 + %s324_s3]] }
  0x24   : > { %v192_v13 = vadd.s32 %v2097_v4, %v182_v5  ;;  %v2110_v14 = vcvt.s32.f32 %v482_v6  ;;  %v2112_v15 = vcvt.s32.f32 %v483_v7  ;;  %v2114_v16 = vcvt.s32.f32 %v484_v8  ;;  %s1894_s4 = smul.u32 48, %s2870_s10  ;;  %s2397_s17 = sld [smem:[#allocation2 + %s326_s14]] }
  0x25   : > { %v2116_v17 = vstv %s319_s26  ;;  %v2118_v18 = vcvt.s32.f32 %v485_v9  ;;  %v2120_v19 = vcvt.s32.f32 %v486_v10  ;;  %v194_v20 = vadd.s32 %v2097_v4, %v184_v12  ;;  %s328_s18 = sadd.s32 5, %s2084_s25  ;;  %s170_s20 = smul.u32 9, %s1990_s9 }
  0x26   : > { %2847 = vst [vmem:[#allocation5_spill] sm:$0xff] %v2112_v15  ;;  %2848 = vst [vmem:[#allocation6_spill] sm:$0xff] %v2114_v16  ;;  %v201_v21 = vcvt.s32.f32 %v192_v13  ;;  %v2123_v22 = vstv %s321_s28  ;;  %v191_v23 = vadd.s32 %v2097_v4, %v2091_v2  ;;  %v183_v24 = vadd.s32 256, %v2091_v2  ;;  %s2286_s8 = scalar_lea.vmem %s2833_s1, %s1894_s4  ;;  %s2436_s19 = sld [smem:[#allocation2 + %s328_s18]] }
  0x27   : > { %2849 = vst [vmem:[#allocation7_spill] sm:$0xff] %v2118_v18  ;;  %2850 = vst [vmem:[#allocation8_spill] sm:$0xff] %v2120_v19  ;;  %v2128_v25 = vstv %s323_s30  ;;  %v203_v26 = vcvt.s32.f32 %v194_v20  ;;  %v186_v27 = vadd.s32 640, %v2091_v2  ;;  %v185_v28 = vadd.s32 512, %v2091_v2  ;;  %p173_p3 = scmp.lt.s32.totalorder %s170_s20, 17  ;;  %s1895_s9 = smul.u32 18, %s2870_s10 }
  0x28   : > { %v211_v29 = vmul.f32 0.020833334, %v201_v21  ;;  %v200_v30 = vcvt.s32.f32 %v191_v23  ;;  %v193_v31 = vadd.s32 %v2097_v4, %v183_v24  ;;  %v188_v32 = vadd.s32 896, %v2091_v2 }
  0x29   : > { %v213_v33 = vmul.f32 0.020833334, %v203_v26  ;;  %v196_v34 = vadd.s32 %v2097_v4, %v186_v27  ;;  %v2136_v35 = vadd.s32 %v2097_v4, %v185_v28  ;;  %v187_v36 = vadd.s32 768, %v2091_v2  ;;  %s2872_s20 = smov (!%p173_p3, %s170_s20), 17 }
  0x2a   : > { %v220_v37 = vfloor.f32 %v211_v29  ;;  %v210_v38 = vmul.f32 0.020833334, %v200_v30  ;;  %v202_v39 = vcvt.s32.f32 %v193_v31  ;;  %v2140_v40 = vadd.s32 %v2097_v4, %v188_v32  ;;  %s176_s21 = sadd.s32 %s1895_s9, %s2872_s20 }
  0x2b   : > { %v222_v41 = vfloor.f32 %v213_v33  ;;  %v205_v42 = vcvt.s32.f32 %v196_v34  ;;  %v204_v43 = vcvt.s32.f32 %v2136_v35  ;;  %v2144_v44 = vadd.s32 %v2097_v4, %v187_v36  ;;  %s177_s23 = scalar_lea.vmem %s2834_s2, %s176_s21 }
  0x2c   : > { %v229_v45 = vmul.f32 48.0, %v220_v37  ;;  %v283_v46 = vmul.f32 2.0, %v220_v37  ;;  %v219_v47 = vfloor.f32 %v210_v38  ;;  %v212_v48 = vmul.f32 0.020833334, %v202_v39 }
  0x2d   : > { %v231_v49 = vmul.f32 48.0, %v222_v41  ;;  %v285_v50 = vmul.f32 2.0, %v222_v41  ;;  %v215_v51 = vmul.f32 0.020833334, %v205_v42  ;;  %v214_v52 = vmul.f32 0.020833334, %v204_v43 }
  0x2e   : > { %v238_v53 = vsub.f32 %v201_v21, %v229_v45  ;;  %v292_v54 = vadd.f32 1.0, %v283_v46  ;;  %v228_v55 = vmul.f32 48.0, %v219_v47  ;;  %v282_v56 = vmul.f32 2.0, %v219_v47 }
  0x2f   : > { %v240_v57 = vsub.f32 %v203_v26, %v231_v49  ;;  %v294_v58 = vadd.f32 1.0, %v285_v50  ;;  %v221_v59 = vfloor.f32 %v212_v48  ;;  %v224_v60 = vfloor.f32 %v215_v51 }
  0x30   : > { %v247_v61 = vmul.f32 2.0, %v238_v53  ;;  %v301_v62 = vmul.f32 0.020833334, %v292_v54  ;;  %v237_v63 = vsub.f32 %v200_v30, %v228_v55  ;;  %v291_v5 = vadd.f32 1.0, %v282_v56 }
  0x31   : > { %v249_v6 = vmul.f32 2.0, %v240_v57  ;;  %v303_v7 = vmul.f32 0.020833334, %v294_v58  ;;  %v230_v8 = vmul.f32 48.0, %v221_v59  ;;  %v284_v9 = vmul.f32 2.0, %v221_v59 }
  0x32   : > { %v256_v10 = vadd.f32 1.0, %v247_v61  ;;  %v2148_v12 = vadd.f32 -1.0, %v301_v62  ;;  %v246_v13 = vmul.f32 2.0, %v237_v63  ;;  %v300_v20 = vmul.f32 0.020833334, %v291_v5 }
  0x33   : > { %v258_v21 = vadd.f32 1.0, %v249_v6  ;;  %v2150_v23 = vadd.f32 -1.0, %v303_v7  ;;  %v239_v24 = vsub.f32 %v202_v39, %v230_v8  ;;  %v293_v26 = vadd.f32 1.0, %v284_v9 }
  0x34   : > { %v265_v27 = vmul.f32 0.020833334, %v256_v10  ;;  %v342_v28 = vmul.f32 %v2148_v12, %v2123_v22  ;;  %v255_v29 = vadd.f32 1.0, %v246_v13  ;;  %v2154_v30 = vadd.f32 -1.0, %v300_v20 }
  0x35   : > { %v267_v31 = vmul.f32 0.020833334, %v258_v21  ;;  %v344_v32 = vmul.f32 %v2150_v23, %v2123_v22  ;;  %v248_v33 = vmul.f32 2.0, %v239_v24  ;;  %v302_v34 = vmul.f32 0.020833334, %v293_v26 }
  0x36   : > { %v2158_v36 = vadd.f32 -1.0, %v265_v27  ;;  %v264_v37 = vmul.f32 0.020833334, %v255_v29  ;;  %v341_v38 = vmul.f32 %v2154_v30, %v2123_v22  ;;  %v233_v39 = vmul.f32 48.0, %v224_v60 }
  0x37   : > { %v2162_v41 = vadd.f32 -1.0, %v267_v31  ;;  %v257_v45 = vadd.f32 1.0, %v248_v33  ;;  %v2164_v46 = vadd.f32 -1.0, %v302_v34  ;;  %v287_v47 = vmul.f32 2.0, %v224_v60 }
  0x38   : > { %v332_v48 = vmul.f32 %v2158_v36, %v2116_v17  ;;  %v2168_v49 = vadd.f32 -1.0, %v264_v37  ;;  %v242_v50 = vsub.f32 %v205_v42, %v233_v39  ;;  %v223_v51 = vfloor.f32 %v214_v52 }
  0x39   : > { %v334_v53 = vmul.f32 %v2162_v41, %v2116_v17  ;;  %v266_v54 = vmul.f32 0.020833334, %v257_v45  ;;  %v343_v55 = vmul.f32 %v2164_v46, %v2123_v22  ;;  %v296_v56 = vadd.f32 1.0, %v287_v47 }
  0x3a   : > { %v351_v57 = vadd.f32 %v342_v28, %v332_v48  ;;  %v331_v58 = vmul.f32 %v2168_v49, %v2116_v17  ;;  %v251_v59 = vmul.f32 2.0, %v242_v50  ;;  %v232_v60 = vmul.f32 48.0, %v223_v51 }
  0x3b   : > { %v353_v61 = vadd.f32 %v344_v32, %v334_v53  ;;  %v2176_v62 = vadd.f32 -1.0, %v266_v54  ;;  %v305_v63 = vmul.f32 0.020833334, %v296_v56  ;;  %v286_v42 = vmul.f32 2.0, %v223_v51 }
  0x3c   : > { %v361_v52 = vadd.f32 %v2128_v25, %v351_v57  ;;  %v350_v5 = vadd.f32 %v341_v38, %v331_v58  ;;  %v260_v6 = vadd.f32 1.0, %v251_v59  ;;  %v241_v7 = vsub.f32 %v204_v43, %v232_v60 }
  0x3d   : > { %v363_v8 = vadd.f32 %v2128_v25, %v353_v61  ;;  %v333_v9 = vmul.f32 %v2176_v62, %v2116_v17  ;;  %v2184_v10 = vadd.f32 -1.0, %v305_v63  ;;  %v295_v13 = vadd.f32 1.0, %v286_v42 }
  0x3e   : > { %v409_v20 = vadd.f32 1.0, %v361_v52  ;;  %v360_v21 = vadd.f32 %v2128_v25, %v350_v5  ;;  %v269_v24 = vmul.f32 0.020833334, %v260_v6  ;;  %v250_v26 = vmul.f32 2.0, %v241_v7 }
  0x3f   : > { %v411_v27 = vadd.f32 1.0, %v363_v8  ;;  %v352_v28 = vadd.f32 %v343_v55, %v333_v9  ;;  %v346_v29 = vmul.f32 %v2184_v10, %v2123_v22  ;;  %v304_v35 = vmul.f32 0.020833334, %v295_v13 }
  0x40   : > { %v418_v43 = vmul.f32 48.0, %v409_v20  ;;  %v408_v31 = vadd.f32 1.0, %v360_v21  ;;  %v2189_v32 = vadd.f32 -1.0, %v269_v24  ;;  %v259_v33 = vadd.f32 1.0, %v250_v26 }
  0x41   : > { %v420_v34 = vmul.f32 48.0, %v411_v27  ;;  %v362_v37 = vadd.f32 %v2128_v25, %v352_v28  ;;  %v2192_v38 = vadd.f32 -1.0, %v304_v35  ;;  %v207_v39 = vcvt.s32.f32 %v2140_v40 }
  0x42   : > { %v1800_v45 = vadd.f32 -1.0, %v418_v43  ;;  %v417_v47 = vmul.f32 48.0, %v408_v31  ;;  %v336_v48 = vmul.f32 %v2189_v32, %v2116_v17  ;;  %v268_v50 = vmul.f32 0.020833334, %v259_v33 }
  0x43   : > { %v1802_v51 = vadd.f32 -1.0, %v420_v34  ;;  %v410_v53 = vadd.f32 1.0, %v362_v37  ;;  %v2199_v54 = vmul.f32 %v2192_v38, %v2123_v22  ;;  %v2203_v55 = vmul.f32 0.020833334, %v207_v39 }
  0x44   : > { %v2205_v56 = vmul.f32 0.5, %v1800_v45  ;;  %v1799_v57 = vadd.f32 -1.0, %v417_v47  ;;  %v2207_v58 = vadd.f32 %v346_v29, %v336_v48  ;;  %v2209_v59 = vadd.f32 -1.0, %v268_v50 }
  0x45   : > { %v2211_v60 = vmul.f32 0.5, %v1802_v51  ;;  %v419_v61 = vmul.f32 48.0, %v410_v53  ;;  %v226_v63 = vfloor.f32 %v2203_v55  ;;  %v206_v42 = vcvt.s32.f32 %v2144_v44 }
  0x46   : > { %v539_v52 = vsub.f32 %v2120_v19, %v2205_v56  ;;  %v2217_v5 = vmul.f32 0.5, %v1799_v57  ;;  %v530_v6 = vsub.f32 %v2118_v18, %v2205_v56  ;;  %v521_v7 = vsub.f32 %v2114_v16, %v2205_v56 }
  0x47   : > { %v541_v8 = vsub.f32 %v2120_v19, %v2211_v60  ;;  %v1801_v9 = vadd.f32 -1.0, %v419_v61  ;;  %v532_v13 = vsub.f32 %v2118_v18, %v2211_v60  ;;  %v523_v20 = vsub.f32 %v2114_v16, %v2211_v60 }
  0x48   : > { %v593_v21 = vand.u32 2147483647, %v539_v52  ;;  %v538_v24 = vsub.f32 %v2120_v19, %v2217_v5  ;;  %v584_v26 = vand.u32 2147483647, %v530_v6  ;;  %v529_v27 = vsub.f32 %v2118_v18, %v2217_v5 }
  0x49   : > { %v595_v28 = vand.u32 2147483647, %v541_v8  ;;  %v2233_v29 = vmul.f32 0.5, %v1801_v9  ;;  %v586_v35 = vand.u32 2147483647, %v532_v13  ;;  %v520_v43 = vsub.f32 %v2114_v16, %v2217_v5 }
  0x4a   : > { %v647_v31 = vsub.f32 1.0, %v593_v21  ;;  %v592_v33 = vand.u32 2147483647, %v538_v24  ;;  %v638_v34 = vsub.f32 1.0, %v584_v26  ;;  %v583_v37 = vand.u32 2147483647, %v529_v27 }
  0x4b   : > { %v649_v45 = vsub.f32 1.0, %v595_v28  ;;  %v540_v47 = vsub.f32 %v2120_v19, %v2233_v29  ;;  %v640_v48 = vsub.f32 1.0, %v586_v35  ;;  %v531_v50 = vsub.f32 %v2118_v18, %v2233_v29 }
  0x4c   : > { %v701_v51 = vmax.f32 %v647_v31, 0.0  ;;  %v646_v53 = vsub.f32 1.0, %v592_v33  ;;  %v692_v57 = vmax.f32 %v638_v34, 0.0  ;;  %v637_v61 = vsub.f32 1.0, %v583_v37 }
  0x4d   : > { %v703_v52 = vmax.f32 %v649_v45, 0.0  ;;  %v594_v6 = vand.u32 2147483647, %v540_v47  ;;  %v694_v8 = vmax.f32 %v640_v48, 0.0  ;;  %v585_v9 = vand.u32 2147483647, %v531_v50 }
  0x4e   : > { %970 = vmatprep.subr.mxu0 %v701_v51  ;;  %v700_v13 = vmax.f32 %v646_v53, 0.0  ;;  %v691_v21 = vmax.f32 %v637_v61, 0.0  ;;  %v575_v24 = vand.u32 2147483647, %v521_v7  ;;  %v577_v26 = vand.u32 2147483647, %v523_v20 }
  0x4f   : > { %1071 = vmatprep.subr.mxu1 %v703_v52  ;;  %v648_v27 = vsub.f32 1.0, %v594_v6  ;;  %v639_v28 = vsub.f32 1.0, %v585_v9  ;;  %v574_v35 = vand.u32 2147483647, %v520_v43  ;;  %v522_v31 = vsub.f32 %v2114_v16, %v2233_v29 }
  0x50   : > { %971 = vmatpush1.msra.mxu0 %v700_v13  ;;  %v629_v33 = vsub.f32 1.0, %v575_v24  ;;  %v631_v34 = vsub.f32 1.0, %v577_v26  ;;  %v512_v37 = vsub.f32 %v2112_v15, %v2205_v56  ;;  %v514_v45 = vsub.f32 %v2112_v15, %v2211_v60 }
  0x51   : > { %v702_v47 = vmax.f32 %v648_v27, 0.0  ;;  %972 = vmatprep.subr.mxu0 %v692_v57  ;;  %v693_v7 = vmax.f32 %v639_v28, 0.0  ;;  %v628_v20 = vsub.f32 1.0, %v574_v35  ;;  %v576_v48 = vand.u32 2147483647, %v522_v31 }
  0x52   : > { %973 = vmatpush1.msra.mxu0 %v691_v21  ;;  %v683_v43 = vmax.f32 %v629_v33, 0.0  ;;  %v685_v50 = vmax.f32 %v631_v34, 0.0  ;;  %v566_v51 = vand.u32 2147483647, %v512_v37  ;;  %v568_v53 = vand.u32 2147483647, %v514_v45 }
  0x53   : > { %1072 = vmatpush1.msra.mxu1 %v702_v47  ;;  %v682_v61 = vmax.f32 %v628_v20, 0.0  ;;  %v630_v52 = vsub.f32 1.0, %v576_v48  ;;  %v511_v6 = vsub.f32 %v2112_v15, %v2217_v5  ;;  %v513_v57 = vsub.f32 %v2112_v15, %v2233_v29 }
  0x54   : > { %1073 = vmatprep.subr.mxu1 %v694_v8  ;;  %974 = vmatprep.subr.mxu0 %v683_v43  ;;  %v620_v9 = vsub.f32 1.0, %v566_v51  ;;  %v622_v13 = vsub.f32 1.0, %v568_v53  ;;  %v503_v21 = vsub.f32 %v2110_v14, %v2205_v56  ;;  %v505_v24 = vsub.f32 %v2110_v14, %v2211_v60 }
  0x55   : > { %1074 = vmatpush1.msra.mxu1 %v693_v7  ;;  %975 = vmatpush1.msra.mxu0 %v682_v61  ;;  %v684_v26 = vmax.f32 %v630_v52, 0.0  ;;  %v565_v27 = vand.u32 2147483647, %v511_v6  ;;  %v567_v28 = vand.u32 2147483647, %v513_v57  ;;  %v502_v35 = vsub.f32 %v2110_v14, %v2217_v5 }
  0x56   : > { %1075 = vmatprep.subr.mxu1 %v685_v50  ;;  %v674_v8 = vmax.f32 %v620_v9, 0.0  ;;  %v676_v31 = vmax.f32 %v622_v13, 0.0  ;;  %v557_v33 = vand.u32 2147483647, %v503_v21  ;;  %v559_v34 = vand.u32 2147483647, %v505_v24 }
  0x57   : > { %1076 = vmatpush1.msra.mxu1 %v684_v26  ;;  %v619_v37 = vsub.f32 1.0, %v565_v27  ;;  %v621_v45 = vsub.f32 1.0, %v567_v28  ;;  %v556_v47 = vand.u32 2147483647, %v502_v35  ;;  %v504_v7 = vsub.f32 %v2110_v14, %v2233_v29 }
  0x58   : > { %976 = vmatprep.subr.mxu0 %v674_v8  ;;  %1077 = vmatprep.subr.mxu1 %v676_v31  ;;  %v611_v20 = vsub.f32 1.0, %v557_v33  ;;  %v613_v48 = vsub.f32 1.0, %v559_v34  ;;  %v494_v43 = vsub.f32 %v2106_v11, %v2205_v56  ;;  %v496_v50 = vsub.f32 %v2106_v11, %v2211_v60 }
  0x59   : > { %v673_v51 = vmax.f32 %v619_v37, 0.0  ;;  %v675_v53 = vmax.f32 %v621_v45, 0.0  ;;  %v610_v61 = vsub.f32 1.0, %v556_v47  ;;  %v558_v52 = vand.u32 2147483647, %v504_v7 }
  0x5a   : > { %v665_v6 = vmax.f32 %v611_v20, 0.0  ;;  %v667_v57 = vmax.f32 %v613_v48, 0.0  ;;  %v548_v9 = vand.u32 2147483647, %v494_v43  ;;  %v550_v13 = vand.u32 2147483647, %v496_v50 }
  0x5b   : > { %977 = vmatpush1.msra.mxu0 %v673_v51  ;;  %1078 = vmatpush1.msra.mxu1 %v675_v53  ;;  %v664_v21 = vmax.f32 %v610_v61, 0.0  ;;  %v612_v24 = vsub.f32 1.0, %v558_v52  ;;  %v493_v56 = vsub.f32 %v2106_v11, %v2217_v5  ;;  %v495_v60 = vsub.f32 %v2106_v11, %v2233_v29  ;;  %v2298_v61 = vld [vmem:[%s2286_s8] sm:$0xff] }
  0x5c   : > { %978 = vmatprep.subr.mxu0 %v665_v6  ;;  %1079 = vmatprep.subr.mxu1 %v667_v57  ;;  %v602_v26 = vsub.f32 1.0, %v548_v9  ;;  %v604_v27 = vsub.f32 1.0, %v550_v13  ;;  %v365_v28 = vadd.f32 %v2128_v25, %v2207_v58  ;;  %v335_v35 = vmul.f32 %v2209_v59, %v2116_v17 }
  0x5d   : > { %979 = vmatpush1.msra.mxu0 %v664_v21  ;;  %v666_v8 = vmax.f32 %v612_v24, 0.0  ;;  %v547_v31 = vand.u32 2147483647, %v493_v56  ;;  %v549_v33 = vand.u32 2147483647, %v495_v60  ;;  %v235_v5 = vmul.f32 48.0, %v226_v63 }
  0x5e   : > { %v656_v29 = vmax.f32 %v602_v26, 0.0  ;;  %v658_v34 = vmax.f32 %v604_v27, 0.0  ;;  %v413_v37 = vadd.f32 1.0, %v365_v28  ;;  %v354_v58 = vadd.f32 %v2199_v54, %v335_v35  ;;  %v2317_v26 = vld [vmem:[%s2286_s8 + $0x8] sm:$0xff] }
  0x5f   : > { %1080 = vmatpush1.msra.mxu1 %v666_v8  ;;  %v601_v45 = vsub.f32 1.0, %v547_v31  ;;  %v603_v47 = vsub.f32 1.0, %v549_v33  ;;  %v244_v7 = vsub.f32 %v207_v39, %v235_v5  ;;  %v289_v20 = vmul.f32 2.0, %v226_v63 }
  0x60   : > { %980 = vmatprep.subr.mxu0 %v656_v29  ;;  %1081 = vmatprep.subr.mxu1 %v658_v34  ;;  %v422_v48 = vmul.f32 48.0, %v413_v37  ;;  %v364_v43 = vadd.f32 %v2128_v25, %v354_v58  ;;  %v216_v50 = vmul.f32 0.020833334, %v206_v42  ;;  %v189_v54 = vadd.s32 1024, %v2091_v2 }
  0x61   : > { %v655_v51 = vmax.f32 %v601_v45, 0.0  ;;  %v657_v53 = vmax.f32 %v603_v47, 0.0  ;;  %v253_v40 = vmul.f32 2.0, %v244_v7  ;;  %v298_v39 = vadd.f32 1.0, %v289_v20  ;;  %v2346_v47 = vld [vmem:[%s2286_s8 + $0x10] sm:$0xff] }
  0x62   : > { %v1804_v52 = vadd.f32 -1.0, %v422_v48  ;;  %v412_v55 = vadd.f32 1.0, %v364_v43  ;;  %v225_v63 = vfloor.f32 %v216_v50  ;;  %v2301_v6 = vadd.s32 %v2097_v4, %v189_v54 }
  0x63   : > { %981 = vmatpush1.msra.mxu0 %v655_v51  ;;  %1082 = vmatpush1.msra.mxu1 %v657_v53  ;;  %v262_v57 = vadd.f32 1.0, %v253_v40  ;;  %v307_v9 = vmul.f32 0.020833334, %v298_v39  ;;  %v2304_v13 = vstv %s2275_s5 }
  0x64   : > { %1817 = vmatmul.mubr.msk.f32.vlgmr.msra.gmra.mxu0 %vm931_vm0, %v2298_v61  ;;  %1823 = vmatmul.mubr.msk.f32.vlgmr.msra.gmra.mxu1 %vm931_vm0, %v2298_v61  ;;  %v2310_v2 = vmul.f32 0.5, %v1804_v52  ;;  %v421_v21 = vmul.f32 48.0, %v412_v55  ;;  %v234_v24 = vmul.f32 48.0, %v225_v63  ;;  %v288_v56 = vmul.f32 2.0, %v225_v63 }
  0x65   : > { %v271_v4 = vmul.f32 0.020833334, %v262_v57  ;;  %v2312_v60 = vadd.f32 -1.0, %v307_v9  ;;  %1020 = vmatprep.mubr.f32.mxu0 %v2009_v1  ;;  %1121 = vmatprep.mubr.f32.mxu1 %v2009_v1  ;;  %v2321_v27 = vmul.f32 %v2168_v49, %v2304_v13 }
  0x66   : > { %v543_v28 = vsub.f32 %v2120_v19, %v2310_v2  ;;  %v1803_v35 = vadd.f32 -1.0, %v421_v21  ;;  %v243_v8 = vsub.f32 %v206_v42, %v234_v24  ;;  %v297_v31 = vadd.f32 1.0, %v288_v56 }
  0x67   : > { %v2327_v33 = vadd.f32 -1.0, %v271_v4  ;;  %v348_v5 = vmul.f32 %v2312_v60, %v2123_v22  ;;  %v534_v29 = vsub.f32 %v2118_v18, %v2310_v2  ;;  %v525_v49 = vsub.f32 %v2114_v16, %v2310_v2  ;;  %v2366_v4 = vld [vmem:[%s2286_s8 + $0x18] sm:$0xff] }
  0x68   : > { %v597_v34 = vand.u32 2147483647, %v543_v28  ;;  %v2335_v37 = vmul.f32 0.5, %v1803_v35  ;;  %v252_v58 = vmul.f32 2.0, %v243_v8  ;;  %v306_v45 = vmul.f32 0.020833334, %v297_v31  ;;  %1818 = vmatmul.mubr.msk.f32.gmra.mxu0 %vm931_vm0, %v2317_v26  ;;  %1824 = vmatmul.mubr.msk.f32.gmra.mxu1 %vm931_vm0, %v2317_v26 }
  0x69   : > { %v338_v44 = vmul.f32 %v2327_v33, %v2116_v17  ;;  %v588_v42 = vand.u32 2147483647, %v534_v29  ;;  %1026 = vmatprep.mubr.f32.mxu0 %v2009_v1  ;;  %1127 = vmatprep.mubr.f32.mxu1 %v2009_v1  ;;  %v579_v7 = vand.u32 2147483647, %v525_v49  ;;  %v516_v20 = vsub.f32 %v2112_v15, %v2310_v2 }
  0x6a   : > { %v651_v48 = vsub.f32 1.0, %v597_v34  ;;  %v542_v43 = vsub.f32 %v2120_v19, %v2335_v37  ;;  %v261_v50 = vadd.f32 1.0, %v252_v58  ;;  %v2352_v54 = vadd.f32 -1.0, %v306_v45 }
  0x6b   : > { %v357_v51 = vadd.f32 %v348_v5, %v338_v44  ;;  %v642_v53 = vsub.f32 1.0, %v588_v42  ;;  %v533_v40 = vsub.f32 %v2118_v18, %v2335_v37  ;;  %v633_v39 = vsub.f32 1.0, %v579_v7  ;;  %v2383_v7 = vld [vmem:[%s2286_s8 + $0x20] sm:$0xff] }
  0x6c   : > { %v705_v52 = vmax.f32 %v651_v48, 0.0  ;;  %v596_v55 = vand.u32 2147483647, %v542_v43  ;;  %v270_v63 = vmul.f32 0.020833334, %v261_v50  ;;  %v347_v57 = vmul.f32 %v2352_v54, %v2123_v22  ;;  %1819 = vmatmul.mubr.msk.f32.gmra.mxu0 %vm931_vm0, %v2346_v47  ;;  %1825 = vmatmul.mubr.msk.f32.gmra.mxu1 %vm931_vm0, %v2346_v47 }
  0x6d   : > { %v367_v9 = vadd.f32 %v2128_v25, %v357_v51  ;;  %v696_v21 = vmax.f32 %v642_v53, 0.0  ;;  %v587_v24 = vand.u32 2147483647, %v533_v40  ;;  %v687_v56 = vmax.f32 %v633_v39, 0.0  ;;  %1032 = vmatprep.mubr.f32.mxu0 %v2009_v1  ;;  %1133 = vmatprep.mubr.f32.mxu1 %v2009_v1 }
  0x6e   : > { %1172 = vmatprep.subr.mxu0 %v705_v52  ;;  %v650_v28 = vsub.f32 1.0, %v596_v55  ;;  %v2368_v35 = vadd.f32 -1.0, %v270_v63  ;;  %v524_v8 = vsub.f32 %v2114_v16, %v2335_v37  ;;  %v570_v31 = vand.u32 2147483647, %v516_v20 }
  0x6f   : > { %v415_v5 = vadd.f32 1.0, %v367_v9  ;;  %v641_v29 = vsub.f32 1.0, %v587_v24  ;;  %v515_v49 = vsub.f32 %v2112_v15, %v2335_v37  ;;  %v507_v34 = vsub.f32 %v2110_v14, %v2310_v2 }
  0x70   : > { %v704_v58 = vmax.f32 %v650_v28, 0.0  ;;  %v337_v45 = vmul.f32 %v2368_v35, %v2116_v17  ;;  %v578_v44 = vand.u32 2147483647, %v524_v8  ;;  %1820 = vmatmul.mubr.msk.f32.gmra.mxu0 %vm931_vm0, %v2366_v4  ;;  %1826 = vmatmul.mubr.msk.f32.gmra.mxu1 %vm931_vm0, %v2366_v4  ;;  %v624_v42 = vsub.f32 1.0, %v570_v31 }
  0x71   : > { %v424_v20 = vmul.f32 48.0, %v415_v5  ;;  %v695_v48 = vmax.f32 %v641_v29, 0.0  ;;  %v569_v43 = vand.u32 2147483647, %v515_v49  ;;  %1038 = vmatprep.mubr.f32.mxu0 %v2009_v1  ;;  %1139 = vmatprep.mubr.f32.mxu1 %v2009_v1  ;;  %v561_v50 = vand.u32 2147483647, %v507_v34 }
  0x72   : > { %1173 = vmatpush1.msra.mxu0 %v704_v58  ;;  %v356_v51 = vadd.f32 %v347_v57, %v337_v45  ;;  %v632_v53 = vsub.f32 1.0, %v578_v44  ;;  %v678_v40 = vmax.f32 %v624_v42, 0.0  ;;  %v506_v39 = vsub.f32 %v2110_v14, %v2335_v37  ;;  %v2405_v34 = vld [vmem:[%s2286_s8 + $0x28] sm:$0xff] }
  0x73   : > { %v1806_v52 = vadd.f32 -1.0, %v424_v20  ;;  %1174 = vmatprep.subr.mxu0 %v696_v21  ;;  %v623_v55 = vsub.f32 1.0, %v569_v43  ;;  %v615_v63 = vsub.f32 1.0, %v561_v50  ;;  %v498_v9 = vsub.f32 %v2106_v11, %v2310_v2 }
  0x74   : > { %v366_v24 = vadd.f32 %v2128_v25, %v356_v51  ;;  %1175 = vmatpush1.msra.mxu0 %v695_v48  ;;  %v686_v28 = vmax.f32 %v632_v53, 0.0  ;;  %1827 = vmatmul.mubr.msk.f32.gmra.mxu1 %vm931_vm0, %v2383_v7  ;;  %v560_v57 = vand.u32 2147483647, %v506_v39  ;;  %v497_v8 = vsub.f32 %v2106_v11, %v2335_v37 }
  0x75   : > { %v2399_v21 = vmul.f32 0.5, %v1806_v52  ;;  %1176 = vmatprep.subr.mxu0 %v687_v56  ;;  %v677_v31 = vmax.f32 %v623_v55, 0.0  ;;  %1821 = vmatmul.mubr.msk.f32.gmra.mxu0 %vm931_vm0, %v2383_v7  ;;  %v669_v2 = vmax.f32 %v615_v63, 0.0  ;;  %v552_v5 = vand.u32 2147483647, %v498_v9 }
  0x76   : > { %v414_v29 = vadd.f32 1.0, %v366_v24  ;;  %1177 = vmatpush1.msra.mxu0 %v686_v28  ;;  %v614_v49 = vsub.f32 1.0, %v560_v57  ;;  %1044 = vmatprep.mubr.f32.mxu0 %v2009_v1  ;;  %v551_v56 = vand.u32 2147483647, %v497_v8  ;;  %v208_v20 = vcvt.s32.f32 %v2301_v6 }
  0x77   : > { %v545_v37 = vsub.f32 %v2120_v19, %v2399_v21  ;;  %v536_v58 = vsub.f32 %v2118_v18, %v2399_v21  ;;  %1178 = vmatprep.subr.mxu0 %v678_v40  ;;  %1145 = vmatprep.mubr.f32.mxu1 %v2009_v1  ;;  %v606_v42 = vsub.f32 1.0, %v552_v5  ;;  %v527_v43 = vsub.f32 %v2114_v16, %v2399_v21 }
  0x78   : > { %v423_v45 = vmul.f32 48.0, %v414_v29  ;;  %1179 = vmatpush1.msra.mxu0 %v677_v31  ;;  %v668_v44 = vmax.f32 %v614_v49, 0.0  ;;  %v518_v50 = vsub.f32 %v2112_v15, %v2399_v21  ;;  %1828 = vmatmul.mubr.msk.f32.gmra.mxu1 %vm931_vm0, %v2405_v34  ;;  %v509_v39 = vsub.f32 %v2110_v14, %v2399_v21 }
  0x79   : > { %v599_v48 = vand.u32 2147483647, %v545_v37  ;;  %1180 = vmatprep.subr.mxu0 %v669_v2  ;;  %1822 = vmatmul.mubr.msk.f32.gmra.mxu0 %vm931_vm0, %v2405_v34  ;;  %v660_v53 = vmax.f32 %v606_v42, 0.0  ;;  %v590_v40 = vand.u32 2147483647, %v536_v58  ;;  %v605_v52 = vsub.f32 1.0, %v551_v56 }
  0x7a   : > { %v1805_v51 = vadd.f32 -1.0, %v423_v45  ;;  %1181 = vmatpush1.msra.mxu0 %v668_v44  ;;  %1216 = vmatprep.mubr.f32.mxu0 %v2009_v1  ;;  %v218_v63 = vmul.f32 0.020833334, %v208_v20  ;;  %v2427_v9 = vstv %s2397_s17  ;;  %v581_v28 = vand.u32 2147483647, %v527_v43 }
  0x7b   : > { %v653_v6 = vsub.f32 1.0, %v599_v48  ;;  %1317 = vmatprep.mubr.f32.mxu1 %v2009_v1  ;;  %1182 = vmatprep.subr.mxu0 %v660_v53  ;;  %v572_v57 = vand.u32 2147483647, %v518_v50  ;;  %v659_v8 = vmax.f32 %v605_v52, 0.0  ;;  %v500_v29 = vsub.f32 %v2106_v11, %v2399_v21 }
  0x7c   : > { %v441_v55 = vmul.f32 0.5, %v1805_v51  ;;  %v644_v49 = vsub.f32 1.0, %v590_v40  ;;  %v563_v58 = vand.u32 2147483647, %v509_v39  ;;  %v635_v43 = vsub.f32 1.0, %v581_v28 }
  0x7d   : > { %v707_v24 = vmax.f32 %v653_v6, 0.0  ;;  %1183 = vmatpush1.msra.mxu0 %v659_v8  ;;  %v626_v21 = vsub.f32 1.0, %v572_v57  ;;  %v227_v51 = vfloor.f32 %v218_v63 }
  0x7e   : > { %v544_v31 = vsub.f32 %v2120_v19, %v441_v55  ;;  %v535_v2 = vsub.f32 %v2118_v18, %v441_v55  ;;  %v526_v5 = vsub.f32 %v2114_v16, %v441_v55  ;;  %v517_v37 = vsub.f32 %v2112_v15, %v441_v55  ;;  %1829 = vmatmul.mubr.msk.f32.vlgmr.msra.gmra.mxu0 %vm931_vm0, %v2298_v61 }
  0x7f   : > { %1273 = vmatprep.subr.mxu1 %v707_v24  ;;  %v508_v56 = vsub.f32 %v2110_v14, %v441_v55  ;;  %v499_v48 = vsub.f32 %v2106_v11, %v441_v55  ;;  %1222 = vmatprep.mubr.f32.mxu0 %v2009_v1  ;;  %v698_v52 = vmax.f32 %v644_v49, 0.0  ;;  %v554_v24 = vand.u32 2147483647, %v500_v29 }
  0x80   : > { %v598_v45 = vand.u32 2147483647, %v544_v31  ;;  %v589_v44 = vand.u32 2147483647, %v535_v2  ;;  %v580_v42 = vand.u32 2147483647, %v526_v5 }
  0x81   : > { %v571_v50 = vand.u32 2147483647, %v517_v37  ;;  %v562_v39 = vand.u32 2147483647, %v508_v56  ;;  %v236_v8 = vmul.f32 48.0, %v227_v51  ;;  %v290_v31 = vmul.f32 2.0, %v227_v51 }
  0x82   : > { %v652_v53 = vsub.f32 1.0, %v598_v45  ;;  %v643_v6 = vsub.f32 1.0, %v589_v44  ;;  %v634_v40 = vsub.f32 1.0, %v580_v42  ;;  %v553_v0 = vand.u32 2147483647, %v499_v48  ;;  %1830 = vmatmul.mubr.msk.f32.gmra.mxu0 %vm931_vm0, %v2317_v26 }
  0x83   : > { %v625_v55 = vsub.f32 1.0, %v571_v50  ;;  %v689_v28 = vmax.f32 %v635_v43, 0.0  ;;  %v617_v63 = vsub.f32 1.0, %v563_v58  ;;  %v245_v57 = vsub.f32 %v208_v20, %v236_v8  ;;  %1228 = vmatprep.mubr.f32.mxu0 %v2009_v1 }
  0x84   : > { %v706_v2 = vmax.f32 %v652_v53, 0.0  ;;  %v697_v5 = vmax.f32 %v643_v6, 0.0  ;;  %v299_v37 = vadd.f32 1.0, %v290_v31  ;;  %v688_v56 = vmax.f32 %v634_v40, 0.0 }
  0x85   : > { %v680_v49 = vmax.f32 %v626_v21, 0.0  ;;  %v616_v29 = vsub.f32 1.0, %v562_v39  ;;  %v380_v45 = vmul.f32 %v2154_v30, %v2427_v9  ;;  %v608_v44 = vsub.f32 1.0, %v554_v24 }
  0x86   : > { %1274 = vmatpush1.msra.mxu1 %v706_v2  ;;  %v254_v42 = vmul.f32 2.0, %v245_v57  ;;  %v308_v48 = vmul.f32 0.020833334, %v299_v37  ;;  %v2448_v50 = vstv %s2436_s19  ;;  %v679_v43 = vmax.f32 %v625_v55, 0.0  ;;  %1831 = vmatmul.mubr.msk.f32.gmra.mxu0 %vm931_vm0, %v2346_v47 }
  0x87   : > { %1275 = vmatprep.subr.mxu1 %v698_v52  ;;  %2851 = vst [vmem:[#allocation9_spill] sm:$0xff] %v2448_v50  ;;  %v607_v58 = vsub.f32 1.0, %v553_v0  ;;  %v389_v20 = vadd.f32 %v380_v45, %v2321_v27  ;;  %v671_v21 = vmax.f32 %v617_v63, 0.0  ;;  %1234 = vmatprep.mubr.f32.mxu0 %v2009_v1  ;;  %v670_v30 = vmax.f32 %v616_v29, 0.0 }
  0x88   : > { %1276 = vmatpush1.msra.mxu1 %v697_v5  ;;  %v263_v51 = vadd.f32 1.0, %v254_v42  ;;  %v2453_v53 = vadd.f32 -1.0, %v308_v48  ;;  %v662_v40 = vmax.f32 %v608_v44, 0.0 }
  0x89   : > { %1277 = vmatprep.subr.mxu1 %v689_v28  ;;  %v2457_v6 = vadd.f32 %v2448_v50, %v389_v20  ;;  %v661_v39 = vmax.f32 %v607_v58, 0.0 }
  0x8a   : > { %1278 = vmatpush1.msra.mxu1 %v688_v56  ;;  %v272_v0 = vmul.f32 0.020833334, %v263_v51  ;;  %1832 = vmatmul.mubr.msk.f32.gmra.mxu0 %vm931_vm0, %v2366_v4  ;;  %v349_v52 = vmul.f32 %v2453_v53, %v2123_v22 }
  0x8b   : > { %1279 = vmatprep.subr.mxu1 %v680_v49  ;;  %1240 = vmatprep.mubr.f32.mxu0 %v2009_v1 }
  0x8c   : > { %1280 = vmatpush1.msra.mxu1 %v679_v43  ;;  %v2461_v27 = vadd.f32 -1.0, %v272_v0 }
  0x8d   : > { %1281 = vmatprep.subr.mxu1 %v671_v21 }
  0x8e   : > { %1282 = vmatpush1.msra.mxu1 %v670_v30  ;;  %v339_v24 = vmul.f32 %v2461_v27, %v2116_v17  ;;  %1833 = vmatmul.mubr.msk.f32.gmra.mxu0 %vm931_vm0, %v2383_v7 }
  0x8f   : > { %1283 = vmatprep.subr.mxu1 %v662_v40  ;;  %1246 = vmatprep.mubr.f32.mxu0 %v2009_v1 }
  0x90   : > { %1284 = vmatpush1.msra.mxu1 %v661_v39  ;;  %v358_v8 = vadd.f32 %v349_v52, %v339_v24  ;;  %v372_v52 = vmul.f32 %v2176_v62, %v2304_v13  ;;  %v382_v24 = vmul.f32 %v2164_v46, %v2427_v9 }
  0x91   : > { %1835 = vmatmul.mubr.msk.f32.vlgmr.msra.gmra.mxu1 %vm931_vm0, %v2298_v61 }
  0x92   : > { %1323 = vmatprep.mubr.f32.mxu1 %v2009_v1  ;;  %v368_v22 = vadd.f32 %v2128_v25, %v358_v8  ;;  %1834 = vmatmul.mubr.msk.f32.gmra.mxu0 %vm931_vm0, %v2405_v34  ;;  %v391_v8 = vadd.f32 %v382_v24, %v372_v52 }
  0x93   : > { %1873 = vmatprep.mubr.msk.f32.mxu0 %vm931_vm0, %v2298_v61 }
  0x94   : > { %v416_v31 = vadd.f32 1.0, %v368_v22  ;;  %v401_v62 = vadd.f32 %v2448_v50, %v391_v8 }
  0x95   : > { %1836 = vmatmul.mubr.msk.f32.gmra.mxu1 %vm931_vm0, %v2317_v26 }
  0x96   : > { %1329 = vmatprep.mubr.f32.mxu1 %v2009_v1  ;;  %v425_v17 = vmul.f32 48.0, %v416_v31  ;;  %v444_v31 = vadd.f32 1.0, %v2457_v6 }
  0x98   : > { %v1807_v2 = vadd.f32 -1.0, %v425_v17  ;;  %v446_v17 = vadd.f32 1.0, %v401_v62 }
  0x99   : > { %1837 = vmatmul.mubr.msk.f32.gmra.mxu1 %vm931_vm0, %v2346_v47 }
  0x9a   : > { %1335 = vmatprep.mubr.f32.mxu1 %v2009_v1  ;;  %v443_v25 = vmul.f32 0.5, %v1807_v2  ;;  %v453_v2 = vmul.f32 48.0, %v444_v31 }
  0x9c   : > { %v546_v5 = vsub.f32 %v2120_v19, %v443_v25  ;;  %v537_v55 = vsub.f32 %v2118_v18, %v443_v25  ;;  %v528_v28 = vsub.f32 %v2114_v16, %v443_v25  ;;  %v519_v61 = vsub.f32 %v2112_v15, %v443_v25 }
  0x9d   : > { %1838 = vmatmul.mubr.msk.f32.gmra.mxu1 %vm931_vm0, %v2366_v4  ;;  %v510_v63 = vsub.f32 %v2110_v14, %v443_v25  ;;  %v501_v49 = vsub.f32 %v2106_v11, %v443_v25 }
  0x9e   : > { %1341 = vmatprep.mubr.f32.mxu1 %v2009_v1  ;;  %v600_v57 = vand.u32 2147483647, %v546_v5  ;;  %v591_v37 = vand.u32 2147483647, %v537_v55  ;;  %v582_v56 = vand.u32 2147483647, %v528_v28 }
  0x9f   : > { %v573_v29 = vand.u32 2147483647, %v519_v61  ;;  %v564_v48 = vand.u32 2147483647, %v510_v63  ;;  %v555_v21 = vand.u32 2147483647, %v501_v49 }
  0xa0   : > { %v654_v45 = vsub.f32 1.0, %v600_v57  ;;  %v645_v44 = vsub.f32 1.0, %v591_v37  ;;  %v636_v42 = vsub.f32 1.0, %v582_v56  ;;  %v455_v5 = vmul.f32 48.0, %v446_v17 }
  0xa1   : > { %1839 = vmatmul.mubr.msk.f32.gmra.mxu1 %vm931_vm0, %v2383_v7  ;;  %v627_v20 = vsub.f32 1.0, %v573_v29  ;;  %v618_v30 = vsub.f32 1.0, %v564_v48  ;;  %v609_v0 = vsub.f32 1.0, %v555_v21 }
  0xa2   : > { %1347 = vmatprep.mubr.f32.mxu1 %v2009_v1  ;;  %v708_v43 = vmax.f32 %v654_v45, 0.0  ;;  %v699_v58 = vmax.f32 %v645_v44, 0.0  ;;  %v690_v51 = vmax.f32 %v636_v42, 0.0 }
  0xa3   : > { %v681_v40 = vmax.f32 %v627_v20, 0.0  ;;  %v672_v39 = vmax.f32 %v618_v30, 0.0  ;;  %v663_v1 = vmax.f32 %v609_v0, 0.0 }
  0xa4   : > { %1861 = vmatprep.subr.mxu0 %v708_v43  ;;  %1882 = vmatprep.subr.mxu1 %v708_v43 }
  0xa5   : > { %1862 = vmatpush3.msra.mxu0 %v708_v43  ;;  %1888 = vmatpush3.msra.mxu1 %v708_v43 }
  0xa6   : > { %1863 = vmatprep.subr.mxu0 %v699_v58  ;;  %1883 = vmatprep.subr.mxu1 %v699_v58 }
  0xa7   : > { %1864 = vmatpush3.msra.mxu0 %v699_v58  ;;  %1889 = vmatpush3.msra.mxu1 %v699_v58 }
  0xa8   : > { %1865 = vmatprep.subr.mxu0 %v690_v51  ;;  %1884 = vmatprep.subr.mxu1 %v690_v51 }
  0xa9   : > { %1866 = vmatpush3.msra.mxu0 %v690_v51  ;;  %1890 = vmatpush3.msra.mxu1 %v690_v51 }
  0xaa   : > { %1867 = vmatprep.subr.mxu0 %v681_v40  ;;  %1885 = vmatprep.subr.mxu1 %v681_v40 }
  0xab   : > { %1868 = vmatpush3.msra.mxu0 %v681_v40  ;;  %1891 = vmatpush3.msra.mxu1 %v681_v40 }
  0xac   : > { %1869 = vmatprep.subr.mxu0 %v672_v39  ;;  %1886 = vmatprep.subr.mxu1 %v672_v39 }
  0xad   : > { %1870 = vmatpush3.msra.mxu0 %v672_v39  ;;  %1892 = vmatpush3.msra.mxu1 %v672_v39 }
  0xae   : > { %1840 = vmatmul.mubr.msk.f32.gmra.mxu1 %vm931_vm0, %v2405_v34  ;;  %1871 = vmatprep.subr.mxu0 %v663_v1 }
  0xaf   : > { %1872 = vmatpush3.msra.mxu0 %v663_v1  ;;  %1887 = vmatprep.subr.mxu1 %v663_v1 }
  0xb0   : > { %1893 = vmatpush3.msra.mxu1 %v663_v1  ;;  %1874 = vmatmul.mubr.msk.f32.vlgmr.msra.gmra.mxu0 %vm931_vm0, %v2317_v26  ;;  %v371_v26 = vmul.f32 %v2158_v36, %v2304_v13 }
  0xb1   : > { %1876 = vmatprep.mubr.msk.f32.mxu1 %vm931_vm0, %v2346_v47  ;;  %v381_v47 = vmul.f32 %v2148_v12, %v2427_v9 }
  0xb2   : > { %1877 = vmatmul.mubr.msk.f32.vlgmr.msra.gmra.mxu1 %vm931_vm0, %v2366_v4  ;;  %v373_v4 = vmul.f32 %v2162_v41, %v2304_v13  ;;  %v1808_v41 = vadd.f32 -1.0, %v453_v2 }
  0xb3   : > { %1879 = vmatprep.mubr.msk.f32.mxu1 %vm931_vm0, %v2383_v7  ;;  %v383_v7 = vmul.f32 %v2150_v23, %v2427_v9  ;;  %v1810_v23 = vadd.f32 -1.0, %v455_v5 }
  0xb4   : > { %v2525_v61 = vmul.f32 0.5, %v1808_v41 }
  0xb5   : > { %v392_v22 = vadd.f32 %v383_v7, %v373_v4  ;;  %v2527_v37 = vmul.f32 0.5, %v1810_v23 }
  0xb6   : > { %1880 = vmatmul.mubr.msk.f32.gmra.mxu1 %vm931_vm0, %v2405_v34  ;;  %v390_v34 = vadd.f32 %v381_v47, %v371_v26  ;;  %v709_v6 = vsub.f32 %v2106_v11, %v2525_v61  ;;  %v718_v56 = vsub.f32 %v2110_v14, %v2525_v61  ;;  %v727_v44 = vsub.f32 %v2112_v15, %v2525_v61 }
  0xb7   : > { %v402_v36 = vadd.f32 %v2448_v50, %v392_v22  ;;  %v711_v45 = vsub.f32 %v2106_v11, %v2527_v37  ;;  %v720_v58 = vsub.f32 %v2110_v14, %v2527_v37  ;;  %v729_v30 = vsub.f32 %v2112_v15, %v2527_v37 }
  0xb8   : > { %v400_v46 = vadd.f32 %v2448_v50, %v390_v34  ;;  %v763_v42 = vand.u32 2147483647, %v709_v6  ;;  %v772_v48 = vand.u32 2147483647, %v718_v56  ;;  %v781_v0 = vand.u32 2147483647, %v727_v44 }
  0xb9   : > { %v447_v25 = vadd.f32 1.0, %v402_v36  ;;  %v765_v40 = vand.u32 2147483647, %v711_v45  ;;  %v774_v26 = vand.u32 2147483647, %v720_v58  ;;  %v384_v36 = vmul.f32 %v2192_v38, %v2427_v9 }
  0xba   : > { %v445_v12 = vadd.f32 1.0, %v400_v46  ;;  %v817_v1 = vsub.f32 1.0, %v763_v42  ;;  %v826_v52 = vsub.f32 1.0, %v772_v48  ;;  %v783_v8 = vand.u32 2147483647, %v729_v30 }
  0xbb   : > { %v456_v28 = vmul.f32 48.0, %v447_v25  ;;  %v819_v34 = vsub.f32 1.0, %v765_v40  ;;  %v835_v22 = vsub.f32 1.0, %v781_v0  ;;  %v374_v46 = vmul.f32 %v2209_v59, %v2304_v13 }
  0xbc   : > { %v454_v55 = vmul.f32 48.0, %v445_v12  ;;  %v2561_v17 = vmax.f32 %v817_v1, 0.0  ;;  %v2563_v12 = vmax.f32 %v826_v52, 0.0  ;;  %v828_v25 = vsub.f32 1.0, %v774_v26 }
  0xbd   : > { %v1811_v57 = vadd.f32 -1.0, %v456_v28  ;;  %v837_v28 = vsub.f32 1.0, %v783_v8  ;;  %v2565_v23 = vmax.f32 %v819_v34, 0.0  ;;  %v736_v59 = vsub.f32 %v2114_v16, %v2525_v61 }
  0xbe   : > { %v1809_v63 = vadd.f32 -1.0, %v454_v55  ;;  %v393_v38 = vadd.f32 %v384_v36, %v374_v46  ;;  %v376_v56 = vmul.f32 %v2368_v35, %v2304_v13  ;;  %v386_v45 = vmul.f32 %v2352_v54, %v2427_v9 }
  0xbf   : > { %v2535_v29 = vmul.f32 0.5, %v1811_v57  ;;  %v2577_v42 = vmax.f32 %v828_v25, 0.0  ;;  %v375_v48 = vmul.f32 %v2189_v32, %v2304_v13  ;;  %v2589_v35 = vmax.f32 %v837_v28, 0.0 }
  0xc0   : > { %v2533_v49 = vmul.f32 0.5, %v1809_v63  ;;  %v2567_v63 = vmax.f32 %v835_v22, 0.0  ;;  %v790_v54 = vand.u32 2147483647, %v736_v59  ;;  %v738_v30 = vsub.f32 %v2114_v16, %v2527_v37 }
  0xc1   : > { %v712_v21 = vsub.f32 %v2106_v11, %v2535_v29  ;;  %v721_v51 = vsub.f32 %v2110_v14, %v2535_v29  ;;  %v730_v31 = vsub.f32 %v2112_v15, %v2535_v29  ;;  %v403_v0 = vadd.f32 %v2448_v50, %v393_v38 }
  0xc2   : > { %v710_v43 = vsub.f32 %v2106_v11, %v2533_v49  ;;  %v719_v20 = vsub.f32 %v2110_v14, %v2533_v49  ;;  %v728_v39 = vsub.f32 %v2112_v15, %v2533_v49  ;;  %v737_v32 = vsub.f32 %v2114_v16, %v2533_v49 }
  0xc3   : > { %v766_v4 = vand.u32 2147483647, %v712_v21  ;;  %v775_v7 = vand.u32 2147483647, %v721_v51  ;;  %v784_v6 = vand.u32 2147483647, %v730_v31  ;;  %v745_v1 = vsub.f32 %v2118_v18, %v2525_v61 }
  0xc4   : > { %v764_v24 = vand.u32 2147483647, %v710_v43  ;;  %v773_v47 = vand.u32 2147483647, %v719_v20  ;;  %v782_v62 = vand.u32 2147483647, %v728_v39  ;;  %v385_v43 = vmul.f32 %v2184_v10, %v2427_v9 }
  0xc5   : > { %v820_v5 = vsub.f32 1.0, %v766_v4  ;;  %v829_v55 = vsub.f32 1.0, %v775_v7  ;;  %v838_v40 = vsub.f32 1.0, %v784_v6  ;;  %v739_v10 = vsub.f32 %v2114_v16, %v2535_v29 }
  0xc6   : > { %v818_v2 = vsub.f32 1.0, %v764_v24  ;;  %v827_v41 = vsub.f32 1.0, %v773_v47  ;;  %v836_v57 = vsub.f32 1.0, %v782_v62  ;;  %v395_v39 = vadd.f32 %v386_v45, %v376_v56 }
  0xc7   : > { %v2583_v58 = vmax.f32 %v820_v5, 0.0  ;;  %v2587_v21 = vmax.f32 %v829_v55, 0.0  ;;  %v747_v52 = vsub.f32 %v2118_v18, %v2527_v37  ;;  %v746_v24 = vsub.f32 %v2118_v18, %v2533_v49 }
  0xc8   : > { %v2575_v44 = vmax.f32 %v818_v2, 0.0  ;;  %v2585_v20 = vmax.f32 %v827_v41, 0.0  ;;  %v2591_v51 = vmax.f32 %v836_v57, 0.0  ;;  %v394_v26 = vadd.f32 %v385_v43, %v375_v48 }
  0xc9   : > { %v748_v47 = vsub.f32 %v2118_v18, %v2535_v29  ;;  %v754_v4 = vsub.f32 %v2120_v19, %v2525_v61  ;;  %v377_v7 = vmul.f32 %v2327_v33, %v2304_v13  ;;  %v387_v8 = vmul.f32 %v2312_v60, %v2427_v9 }
  0xca   : > { %v792_v62 = vand.u32 2147483647, %v738_v30  ;;  %v791_v31 = vand.u32 2147483647, %v737_v32  ;;  %v756_v46 = vsub.f32 %v2120_v19, %v2527_v37  ;;  %v755_v36 = vsub.f32 %v2120_v19, %v2533_v49 }
  0xcb   : > { %v844_v2 = vsub.f32 1.0, %v790_v54  ;;  %v793_v61 = vand.u32 2147483647, %v739_v10  ;;  %v448_v25 = vadd.f32 1.0, %v403_v0  ;;  %v405_v33 = vadd.f32 %v2448_v50, %v395_v39 }
  0xcc   : > { %v2627_v41 = vmax.f32 %v838_v40, 0.0  ;;  %v799_v55 = vand.u32 2147483647, %v745_v1  ;;  %v801_v28 = vand.u32 2147483647, %v747_v52  ;;  %v404_v57 = vadd.f32 %v2448_v50, %v394_v26 }
  0xcd   : > { %v800_v59 = vand.u32 2147483647, %v746_v24  ;;  %v802_v37 = vand.u32 2147483647, %v748_v47  ;;  %v808_v6 = vand.u32 2147483647, %v754_v4  ;;  %v396_v38 = vadd.f32 %v387_v8, %v377_v7 }
  0xce   : > { %v846_v45 = vsub.f32 1.0, %v792_v62  ;;  %v845_v48 = vsub.f32 1.0, %v791_v31  ;;  %v810_v43 = vand.u32 2147483647, %v756_v46  ;;  %v809_v54 = vand.u32 2147483647, %v755_v36 }
  0xcf   : > { %v898_v30 = vmax.f32 %v844_v2, 0.0  ;;  %v757_v32 = vsub.f32 %v2120_v19, %v2535_v29  ;;  %v457_v40 = vmul.f32 48.0, %v448_v25  ;;  %v450_v10 = vadd.f32 1.0, %v405_v33 }
  0xd0   : > { %v847_v1 = vsub.f32 1.0, %v793_v61  ;;  %v853_v52 = vsub.f32 1.0, %v799_v55  ;;  %v855_v24 = vsub.f32 1.0, %v801_v28  ;;  %v449_v26 = vadd.f32 1.0, %v404_v57 }
  0xd1   : > { %v854_v47 = vsub.f32 1.0, %v800_v59  ;;  %v856_v4 = vsub.f32 1.0, %v802_v37  ;;  %v862_v7 = vsub.f32 1.0, %v808_v6  ;;  %v406_v8 = vadd.f32 %v2448_v50, %v396_v38 }
  0xd2   : > { %v900_v46 = vmax.f32 %v846_v45, 0.0  ;;  %v899_v36 = vmax.f32 %v845_v48, 0.0  ;;  %v864_v2 = vsub.f32 1.0, %v810_v43  ;;  %v863_v18 = vsub.f32 1.0, %v809_v54 }
  0xd3   : > { %v811_v29 = vand.u32 2147483647, %v757_v32  ;;  %v1812_v25 = vadd.f32 -1.0, %v457_v40  ;;  %v459_v33 = vmul.f32 48.0, %v450_v10  ;;  %v901_v61 = vmax.f32 %v847_v1, 0.0 }
  0xd4   : > { %v907_v55 = vmax.f32 %v853_v52, 0.0  ;;  %v909_v28 = vmax.f32 %v855_v24, 0.0  ;;  %v458_v57 = vmul.f32 48.0, %v449_v26  ;;  %v908_v59 = vmax.f32 %v854_v47, 0.0 }
  0xd5   : > { %v910_v37 = vmax.f32 %v856_v4, 0.0  ;;  %v916_v6 = vmax.f32 %v862_v7, 0.0  ;;  %v451_v15 = vadd.f32 1.0, %v406_v8  ;;  %v918_v48 = vmax.f32 %v864_v2, 0.0 }
  0xd6   : > { %v917_v43 = vmax.f32 %v863_v18, 0.0  ;;  %v2010_v54 = vmov 1966171168   ;;  %v865_v10 = vsub.f32 1.0, %v811_v29  ;;  %v2637_v1 = vmul.f32 0.5, %v1812_v25 }
  0xd7   : > { %v2634_v32 = vunpack.c.l.s4 %v2010_v54  ;;  %v1814_v52 = vadd.f32 -1.0, %v459_v33  ;;  %v1813_v4 = vadd.f32 -1.0, %v458_v57 }
  0xd8   : > { %v919_v33 = vmax.f32 %v865_v10, 0.0 }
 0x124   : > { %v2614_v34 = vpop.f32.mrf.mxu0  ;;  %v2616_v22 = vpop.f32.mrf.mxu1 }
 0x125   : > { %v1449_v24 = vmul.f32 %v2614_v34, %v2561_v17  ;;  %v1451_v18 = vmul.f32 %v2616_v22, %v2565_v23 }
 0x126   : > { %v2623_v5 = vpop.f32.mrf.mxu0  ;;  %v2625_v60 = vpop.f32.mrf.mxu1 }
 0x127   : > { %v1450_v8 = vmul.f32 %v2623_v5, %v2575_v44 }
 0x128   : > { %v1022_v49 = vpop.f32.mrf.mxu0  ;;  %v1123_v56 = vpop.f32.mrf.mxu1 }
 0x129   : > { %v1458_v38 = vmul.f32 %v1022_v49, %v2563_v12  ;;  %v1460_v40 = vmul.f32 %v1123_v56, %v2577_v42  ;;  %v460_v56 = vmul.f32 48.0, %v451_v15 }
 0x12a   : > { %v1024_v0 = vpop.f32.mrf.mxu0  ;;  %v1125_v39 = vpop.f32.mrf.mxu1 }
 0x12b   : > { %v1459_v26 = vmul.f32 %v1024_v0, %v2585_v20  ;;  %v1461_v7 = vmul.f32 %v1125_v39, %v2587_v21  ;;  %v1503_v2 = vadd.f32 %v1458_v38, %v1449_v24  ;;  %v1525_v0 = vadd.f32 %v1460_v40, %v1451_v18 }
 0x12c   : > { %v1028_v62 = vpop.f32.mrf.mxu0  ;;  %v1129_v31 = vpop.f32.mrf.mxu1 }
 0x12d   : > { %v1467_v12 = vmul.f32 %v1028_v62, %v2567_v63  ;;  %v1469_v42 = vmul.f32 %v1129_v31, %v2589_v35  ;;  %v1452_v63 = vmul.f32 %v2625_v60, %v2583_v58  ;;  %v1514_v21 = vadd.f32 %v1459_v26, %v1450_v8 }
 0x12e   : > { %v1030_v19 = vpop.f32.mrf.mxu0  ;;  %v1131_v16 = vpop.f32.mrf.mxu1 }
 0x12f   : > { %v1468_v17 = vmul.f32 %v1030_v19, %v2591_v51  ;;  %v1470_v62 = vmul.f32 %v1131_v16, %v2627_v41  ;;  %v1504_v39 = vadd.f32 %v1503_v2, %v1467_v12  ;;  %v1536_v29 = vadd.f32 %v1461_v7, %v1452_v63 }
 0x130   : > { %v1034_v50 = vpop.f32.mrf.mxu0  ;;  %v1135_v45 = vpop.f32.mrf.mxu1  ;;  %v1526_v44 = vadd.f32 %v1525_v0, %v1469_v42  ;;  %v713_v41 = vsub.f32 %v2106_v11, %v2637_v1  ;;  %v2659_v12 = vmul.f32 0.5, %v1813_v4  ;;  %v1617_v42 = vunpack.c.0.s8 %v2634_v32 }
 0x131   : > { %v1476_v20 = vmul.f32 %v1034_v50, %v898_v30  ;;  %v1478_v23 = vmul.f32 %v1135_v45, %v900_v46  ;;  %v1515_v50 = vadd.f32 %v1514_v21, %v1468_v17  ;;  %v1537_v58 = vadd.f32 %v1536_v29, %v1470_v62 }
 0x132   : > { %v1036_v49 = vpop.f32.mrf.mxu0  ;;  %v1137_v47 = vpop.f32.mrf.mxu1  ;;  %v2655_v45 = vmul.f32 0.5, %v1814_v52  ;;  %v767_v8 = vand.u32 2147483647, %v713_v41  ;;  %v714_v4 = vsub.f32 %v2106_v11, %v2659_v12  ;;  %v2673_v21 = vsub.s32 %v1617_v42, %v2095_v3 }
 0x133   : > { %v1477_v35 = vmul.f32 %v1036_v49, %v899_v36  ;;  %v1479_v5 = vmul.f32 %v1137_v47, %v901_v61  ;;  %v1505_v51 = vadd.f32 %v1504_v39, %v1476_v20  ;;  %v1527_v60 = vadd.f32 %v1526_v44, %v1478_v23 }
 0x134   : > { %v1141_v34 = vpop.f32.mrf.mxu1  ;;  %v715_v17 = vsub.f32 %v2106_v11, %v2655_v45  ;;  %v821_v39 = vsub.f32 1.0, %v767_v8  ;;  %v378_v41 = vmul.f32 %v2461_v27, %v2304_v13  ;;  %v2854_v8 = vld [vmem:[#allocation7_spill] sm:$0xff] }
 0x135   : > { %v1040_v22 = vpop.f32.mrf.mxu0  ;;  %v1487_v25 = vmul.f32 %v1141_v34, %v909_v28  ;;  %v1516_v46 = vadd.f32 %v1515_v50, %v1477_v35  ;;  %v1538_v61 = vadd.f32 %v1537_v58, %v1479_v5  ;;  %v723_v58 = vsub.f32 %v2110_v14, %v2659_v12 }
 0x136   : > { %v1485_v15 = vmul.f32 %v1040_v22, %v907_v55  ;;  %v1143_v31 = vpop.f32.mrf.mxu1  ;;  %v2677_v29 = vand.u32 2147483647, %v715_v17 }
 0x137   : > { %v1042_v19 = vpop.f32.mrf.mxu0  ;;  %v1488_v57 = vmul.f32 %v1143_v31, %v910_v37  ;;  %v1528_v28 = vadd.f32 %v1527_v60, %v1487_v25  ;;  %v777_v27 = vand.u32 2147483647, %v723_v58 }
 0x138   : > { %v1486_v30 = vmul.f32 %v1042_v19, %v908_v59  ;;  %v1506_v36 = vadd.f32 %v1505_v51, %v1485_v15  ;;  %v1147_v38 = vpop.f32.mrf.mxu1  ;;  %v722_v59 = vsub.f32 %v2110_v14, %v2637_v1  ;;  %v2679_v19 = vand.u32 2147483647, %v714_v4 }
 0x139   : > { %v1046_v16 = vpop.f32.mrf.mxu0  ;;  %v1496_v54 = vmul.f32 %v1147_v38, %v918_v48  ;;  %v1539_v49 = vadd.f32 %v1538_v61, %v1488_v57  ;;  %v2852_v61 = vld [vmem:[#allocation5_spill] sm:$0xff] }
 0x13a   : > { %v1494_v55 = vmul.f32 %v1046_v16, %v916_v6  ;;  %v1517_v10 = vadd.f32 %v1516_v46, %v1486_v30  ;;  %v1149_v26 = vpop.f32.mrf.mxu1  ;;  %v1815_v6 = vadd.f32 -1.0, %v460_v56  ;;  %v776_v20 = vand.u32 2147483647, %v722_v59 }
 0x13b   : > { %v1048_v40 = vpop.f32.mrf.mxu0  ;;  %v1529_v47 = vadd.f32 %v1528_v28, %v1496_v54  ;;  %v1497_v18 = vmul.f32 %v1149_v26, %v919_v33  ;;  %v724_v56 = vsub.f32 %v2110_v14, %v2655_v45  ;;  %v388_v46 = vmul.f32 %v2453_v53, %v2427_v9  ;;  %v2853_v53 = vld [vmem:[#allocation6_spill] sm:$0xff] }
 0x13c   : > { %v1507_v24 = vadd.f32 %v1506_v36, %v1494_v55  ;;  %v1495_v37 = vmul.f32 %v1048_v40, %v917_v43  ;;  %v2670_v32 = vmul.f32 0.5, %v1815_v6  ;;  %v830_v44 = vsub.f32 1.0, %v776_v20 }
 0x13d   : > { %v1530_v48 = vrot.slane %v1529_v47, 4  ;;  %v1540_v2 = vadd.f32 %v1539_v49, %v1497_v18  ;;  %v2683_v51 = vand.u32 2147483647, %v724_v56  ;;  %v732_v28 = vsub.f32 %v2852_v61, %v2659_v12 }
 0x13e   : > { %v1508_v7 = vrot.slane %v1507_v24, 4  ;;  %v1518_v52 = vadd.f32 %v1517_v10, %v1495_v37  ;;  %v2664_v63 = vpop.f32.mrf.mxu0  ;;  %v716_v3 = vsub.f32 %v2106_v11, %v2670_v32  ;;  %v725_v38 = vsub.f32 %v2110_v14, %v2670_v32 }
 0x13f   : > { %v1531_v0 = vadd.f32 %v1530_v48, %v1529_v47  ;;  %v1541_v62 = vrot.slane %v1540_v2, 4  ;;  %v2699_v40 = vmax.f32 %v821_v39, 0.0  ;;  %v823_v59 = vsub.f32 1.0, %v2677_v29  ;;  %v2856_v29 = vld [vmem:[#allocation9_spill] sm:$0xff] }
 0x140   : > { %v1509_v34 = vadd.f32 %v1508_v7, %v1507_v24  ;;  %v1519_v43 = vrot.slane %v1518_v52, 4  ;;  %v2675_v35 = vpop.f32.mrf.mxu0  ;;  %v2702_v10 = vmax.f32 %v830_v44, 0.0  ;;  %v731_v9 = vsub.f32 %v2852_v61, %v2637_v1 }
 0x141   : > { %v1532_v15 = vrot.slane %v1531_v0, 2  ;;  %v1542_v31 = vadd.f32 %v1541_v62, %v1540_v2  ;;  %v741_v37 = vsub.f32 %v2853_v53, %v2659_v12  ;;  %v740_v18 = vsub.f32 %v2853_v53, %v2637_v1 }
 0x142   : > { %v1510_v23 = vrot.slane %v1509_v34, 2  ;;  %v1520_v22 = vadd.f32 %v1519_v43, %v1518_v52  ;;  %v2681_v50 = vpop.f32.mrf.mxu0  ;;  %v397_v6 = vadd.f32 %v388_v46, %v378_v41  ;;  %v786_v42 = vand.u32 2147483647, %v732_v28  ;;  %v2855_v43 = vld [vmem:[#allocation8_spill] sm:$0xff] }
 0x143   : > { %v1533_v30 = vadd.f32 %v1532_v15, %v1531_v0  ;;  %v1543_v33 = vrot.slane %v1542_v31, 2  ;;  %v750_v48 = vsub.f32 %v2854_v8, %v2659_v12  ;;  %v832_v17 = vsub.f32 1.0, %v2683_v51 }
 0x144   : > { %v1511_v5 = vadd.f32 %v1510_v23, %v1509_v34  ;;  %v1521_v25 = vrot.slane %v1520_v22, 2  ;;  %v2689_v16 = vpop.f32.mrf.mxu0  ;;  %v749_v34 = vsub.f32 %v2854_v8, %v2637_v1  ;;  %v759_v4 = vsub.f32 %v2855_v43, %v2659_v12 }
 0x145   : > { %v1534_v36 = vrot.slane %v1533_v30, 1  ;;  %v1544_v55 = vadd.f32 %v1543_v33, %v1542_v31  ;;  %v831_v0 = vsub.f32 1.0, %v777_v27  ;;  %v785_v62 = vand.u32 2147483647, %v731_v9 }
 0x146   : > { %v1512_v60 = vrot.slane %v1511_v5, 1  ;;  %v1522_v57 = vadd.f32 %v1521_v25, %v1520_v22  ;;  %v2704_v24 = vpop.f32.mrf.mxu0  ;;  %v795_v23 = vand.u32 2147483647, %v741_v37  ;;  %v794_v39 = vand.u32 2147483647, %v740_v18 }
 0x147   : > { %v1545_v13 = vrot.slane %v1544_v55, 1  ;;  %v1535_v7 = vadd.f32 %v1534_v36, %v1533_v30  ;;  %v758_v31 = vsub.f32 %v2855_v43, %v2637_v1  ;;  %v407_v44 = vadd.f32 %v2856_v29, %v397_v6 }
 0x148   : > { %v1523_v54 = vrot.slane %v1522_v57, 1  ;;  %v1513_v26 = vadd.f32 %v1512_v60, %v1511_v5  ;;  %v1232_v47 = vpop.f32.mrf.mxu0  ;;  %v822_v25 = vsub.f32 1.0, %v2679_v19  ;;  %v840_v12 = vsub.f32 1.0, %v786_v42 }
 0x149   : > { %v1546_v52 = vadd.f32 %v1545_v13, %v1544_v55  ;;  %v804_v30 = vand.u32 2147483647, %v750_v48  ;;  %v2731_v33 = vand.u32 2147483647, %v716_v3  ;;  %v733_v58 = vsub.f32 %v2852_v61, %v2655_v45 }
 0x14a   : > { %v1524_v49 = vadd.f32 %v1523_v54, %v1522_v57  ;;  %v2715_v20 = vpop.f32.mrf.mxu0  ;;  %v803_v60 = vand.u32 2147483647, %v749_v34  ;;  %v813_v41 = vand.u32 2147483647, %v759_v4  ;;  %v885_v36 = vmax.f32 %v831_v0, 0.0 }
 0x14b   : > { %v1612_v56 = vcombine.low %v1535_v7, %v1546_v52  ;;  %v839_v55 = vsub.f32 1.0, %v785_v62  ;;  %v849_v28 = vsub.f32 1.0, %v795_v23  ;;  %v2739_v54 = vmax.f32 %v823_v59, 0.0 }
 0x14c   : > { %v1611_v2 = vcombine.low %v1513_v26, %v1524_v49  ;;  %v1238_v15 = vpop.f32.mrf.mxu0  ;;  %v848_v19 = vsub.f32 1.0, %v794_v39  ;;  %v812_v3 = vand.u32 2147483647, %v758_v31  ;;  %v452_v27 = vadd.f32 1.0, %v407_v44 }
 0x14d   : > { %v2728_v5 = vrot.slane %v1612_v56, %v2673_v21  ;;  %v876_v9 = vmax.f32 %v822_v25, 0.0  ;;  %v2743_v26 = vand.u32 2147483647, %v725_v38  ;;  %v894_v49 = vmax.f32 %v840_v12, 0.0 }
 0x14e   : > { %v2722_v22 = vrot.slane %v1611_v2, %v2673_v21  ;;  %v1242_v57 = vpop.f32.mrf.mxu0  ;;  %v858_v18 = vsub.f32 1.0, %v804_v30  ;;  %v824_v6 = vsub.f32 1.0, %v2731_v33  ;;  %v2746_v7 = vand.u32 2147483647, %v733_v58 }
 0x14f   : > { %v857_v52 = vsub.f32 1.0, %v803_v60  ;;  %v867_v42 = vsub.f32 1.0, %v813_v41  ;;  %v1463_v59 = vmul.f32 %v2689_v16, %v885_v36  ;;  %v893_v2 = vmax.f32 %v839_v55, 0.0 }
 0x150   : > { %v1244_v13 = vpop.f32.mrf.mxu0  ;;  %v734_v34 = vsub.f32 %v2852_v61, %v2670_v32  ;;  %v903_v4 = vmax.f32 %v849_v28, 0.0  ;;  %v902_v56 = vmax.f32 %v848_v19, 0.0  ;;  %v742_v38 = vsub.f32 %v2853_v53, %v2655_v45 }
 0x151   : > { %v2737_v46 = vpop.f32.mrf.mxu1  ;;  %v866_v0 = vsub.f32 1.0, %v812_v3  ;;  %v461_v23 = vmul.f32 48.0, %v452_v27  ;;  %v1454_v39 = vmul.f32 %v2675_v35, %v876_v9  ;;  %v1462_v31 = vmul.f32 %v2681_v50, %v2702_v10 }
 0x152   : > { %v1248_v62 = vpop.f32.mrf.mxu0  ;;  %v1472_v16 = vmul.f32 %v1232_v47, %v894_v49  ;;  %v912_v44 = vmax.f32 %v858_v18, 0.0  ;;  %v743_v25 = vsub.f32 %v2853_v53, %v2670_v32  ;;  %v911_v12 = vmax.f32 %v857_v52, 0.0 }
 0x153   : > { %v2741_v37 = vpop.f32.mrf.mxu1  ;;  %v751_v30 = vsub.f32 %v2854_v8, %v2655_v45  ;;  %v921_v58 = vmax.f32 %v867_v42, 0.0  ;;  %v1453_v60 = vmul.f32 %v2664_v63, %v2699_v40  ;;  %v1558_v41 = vadd.f32 %v1463_v59, %v1454_v39 }
 0x154   : > { %v1471_v35 = vmul.f32 %v2704_v24, %v893_v2  ;;  %v1481_v50 = vmul.f32 %v1238_v15, %v903_v4  ;;  %v752_v10 = vsub.f32 %v2854_v8, %v2670_v32  ;;  %v920_v47 = vmax.f32 %v866_v0, 0.0  ;;  %v1250_v28 = vpop.f32.mrf.mxu0 }
 0x155   : > { %v2748_v48 = vpop.f32.mrf.mxu1  ;;  %v760_v55 = vsub.f32 %v2855_v43, %v2655_v45  ;;  %v1816_v19 = vadd.f32 -1.0, %v461_v23  ;;  %v1547_v3 = vadd.f32 %v1462_v31, %v1453_v60  ;;  %v1559_v27 = vadd.f32 %v1558_v41, %v1472_v16 }
 0x156   : > { %v1480_v63 = vmul.f32 %v2715_v20, %v902_v56  ;;  %v1490_v40 = vmul.f32 %v1244_v13, %v912_v44  ;;  %v788_v49 = vand.u32 2147483647, %v734_v34  ;;  %v796_v24 = vand.u32 2147483647, %v742_v38 }
 0x157   : > { %v2758_v29 = vpop.f32.mrf.mxu1  ;;  %v797_v18 = vand.u32 2147483647, %v743_v25  ;;  %v1548_v52 = vadd.f32 %v1547_v3, %v1471_v35  ;;  %v1560_v15 = vadd.f32 %v1559_v27, %v1481_v50  ;;  %v1489_v42 = vmul.f32 %v1242_v57, %v911_v12 }
 0x158   : > { %v1499_v59 = vmul.f32 %v1250_v28, %v921_v58  ;;  %v805_v2 = vand.u32 2147483647, %v751_v30  ;;  %v806_v4 = vand.u32 2147483647, %v752_v10  ;;  %v814_v0 = vand.u32 2147483647, %v760_v55 }
 0x159   : > { %v2767_v36 = vpop.f32.mrf.mxu1  ;;  %v1549_v39 = vadd.f32 %v1548_v52, %v1480_v63  ;;  %v1561_v1 = vadd.f32 %v1560_v15, %v1490_v40  ;;  %v1498_v23 = vmul.f32 %v1248_v62, %v920_v47  ;;  %v2774_v31 = vmul.f32 0.5, %v1816_v19 }
 0x15a   : > { %v833_v16 = vsub.f32 1.0, %v2743_v26  ;;  %v841_v20 = vsub.f32 1.0, %v2746_v7  ;;  %v842_v13 = vsub.f32 1.0, %v788_v49  ;;  %v761_v34 = vsub.f32 %v2855_v43, %v2670_v32 }
 0x15b   : > { %v1333_v9 = vpop.f32.mrf.mxu1  ;;  %v850_v56 = vsub.f32 1.0, %v796_v24  ;;  %v851_v57 = vsub.f32 1.0, %v797_v18  ;;  %v1550_v38 = vadd.f32 %v1549_v39, %v1489_v42  ;;  %v1562_v44 = vadd.f32 %v1561_v1, %v1499_v59 }
 0x15c   : > { %v886_v25 = vmax.f32 %v832_v17, 0.0  ;;  %v859_v12 = vsub.f32 1.0, %v805_v2  ;;  %v860_v30 = vsub.f32 1.0, %v806_v4  ;;  %v868_v62 = vsub.f32 1.0, %v814_v0 }
 0x15d   : > { %v1337_v45 = vpop.f32.mrf.mxu1  ;;  %v878_v58 = vmax.f32 %v824_v6, 0.0  ;;  %v1551_v60 = vadd.f32 %v1550_v38, %v1498_v23  ;;  %v726_v7 = vsub.f32 %v2110_v14, %v2774_v31  ;;  %v717_v32 = vsub.f32 %v2106_v11, %v2774_v31 }
 0x15e   : > { %v887_v41 = vmax.f32 %v833_v16, 0.0  ;;  %v895_v35 = vmax.f32 %v841_v20, 0.0  ;;  %v896_v1 = vmax.f32 %v842_v13, 0.0  ;;  %v815_v50 = vand.u32 2147483647, %v761_v34 }
 0x15f   : > { %v1339_v26 = vpop.f32.mrf.mxu1  ;;  %v904_v51 = vmax.f32 %v850_v56, 0.0  ;;  %v905_v17 = vmax.f32 %v851_v57, 0.0  ;;  %v1563_v10 = vrot.slane %v1562_v44, 4  ;;  %v735_v47 = vsub.f32 %v2852_v61, %v2774_v31 }
 0x160   : > { %v1464_v33 = vmul.f32 %v2748_v48, %v886_v25  ;;  %v913_v6 = vmax.f32 %v859_v12, 0.0  ;;  %v914_v55 = vmax.f32 %v860_v30, 0.0  ;;  %v922_v28 = vmax.f32 %v868_v62, 0.0 }
 0x161   : > { %v1343_v19 = vpop.f32.mrf.mxu1  ;;  %v1552_v14 = vrot.slane %v1551_v60, 4  ;;  %v780_v3 = vand.u32 2147483647, %v726_v7  ;;  %v744_v11 = vsub.f32 %v2853_v53, %v2774_v31  ;;  %v771_v27 = vand.u32 2147483647, %v717_v32 }
 0x162   : > { %v1455_v63 = vmul.f32 %v2737_v46, %v2739_v54  ;;  %v1465_v40 = vmul.f32 %v2758_v29, %v887_v41  ;;  %v1473_v49 = vmul.f32 %v2767_v36, %v895_v35  ;;  %v869_v61 = vsub.f32 1.0, %v815_v50 }
 0x163   : > { %v1564_v24 = vadd.f32 %v1563_v10, %v1562_v44  ;;  %v789_v48 = vand.u32 2147483647, %v735_v47  ;;  %v762_v18 = vsub.f32 %v2855_v43, %v2774_v31  ;;  %v753_v52 = vsub.f32 %v2854_v8, %v2774_v31  ;;  %v1345_v2 = vpop.f32.mrf.mxu1 }
 0x164   : > { %v1456_v15 = vmul.f32 %v2741_v37, %v878_v58  ;;  %v1569_v53 = vadd.f32 %v1464_v33, %v1455_v63  ;;  %v1474_v42 = vmul.f32 %v1333_v9, %v896_v1  ;;  %v1482_v59 = vmul.f32 %v1337_v45, %v904_v51 }
 0x165   : > { %v1553_v46 = vadd.f32 %v1552_v14, %v1551_v60  ;;  %v834_v54 = vsub.f32 1.0, %v780_v3  ;;  %v798_v29 = vand.u32 2147483647, %v744_v11  ;;  %v825_v4 = vsub.f32 1.0, %v771_v27 }
 0x166   : > { %v1580_v36 = vadd.f32 %v1465_v40, %v1456_v15  ;;  %v1570_v0 = vadd.f32 %v1569_v53, %v1473_v49  ;;  %v1483_v39 = vmul.f32 %v1339_v26, %v905_v17  ;;  %v1491_v23 = vmul.f32 %v1343_v19, %v913_v6 }
 0x167   : > { %v1565_v16 = vrot.slane %v1564_v24, 2  ;;  %v923_v20 = vmax.f32 %v869_v61, 0.0  ;;  %v807_v43 = vand.u32 2147483647, %v753_v52  ;;  %v1492_v8 = vmul.f32 %v1345_v2, %v914_v55 }
 0x168   : > { %v1581_v13 = vadd.f32 %v1580_v36, %v1474_v42  ;;  %v1571_v34 = vadd.f32 %v1570_v0, %v1482_v59  ;;  %v843_v31 = vsub.f32 1.0, %v789_v48  ;;  %v1554_v37 = vrot.slane %v1553_v46, 2 }
 0x169   : > { %v888_v9 = vmax.f32 %v834_v54, 0.0  ;;  %v852_v45 = vsub.f32 1.0, %v798_v29  ;;  %v816_v57 = vand.u32 2147483647, %v762_v18  ;;  %v879_v12 = vmax.f32 %v825_v4, 0.0 }
 0x16a   : > { %v1582_v38 = vadd.f32 %v1581_v13, %v1483_v39  ;;  %v1572_v44 = vadd.f32 %v1571_v34, %v1491_v23  ;;  %v1566_v30 = vadd.f32 %v1565_v16, %v1564_v24  ;;  %v861_v26 = vsub.f32 1.0, %v807_v43 }
 0x16b   : > { %v897_v41 = vmax.f32 %v843_v31, 0.0  ;;  %v1555_v35 = vadd.f32 %v1554_v37, %v1553_v46  ;;  %v906_v1 = vmax.f32 %v852_v45, 0.0  ;;  %v870_v17 = vsub.f32 1.0, %v816_v57 }
 0x16c   : > { %v1583_v60 = vadd.f32 %v1582_v38, %v1492_v8  ;;  %v1567_v55 = vrot.slane %v1566_v30, 1  ;;  %v915_v19 = vmax.f32 %v861_v26, 0.0  ;;  %v2857_v45 = vcombine.low %v2722_v22, %v2728_v5 }
 0x16d   : > { %v1556_v63 = vrot.slane %v1555_v35, 1  ;;  %v924_v40 = vmax.f32 %v870_v17, 0.0 }
 0x16e   : > { %v1349_v56 = vpop.f32.mrf.mxu1  ;;  %v1568_v52 = vadd.f32 %v1567_v55, %v1566_v30  ;;  %v1651_v57 = vrot.slane %v2857_v45, %v2673_v21 }
 0x16f   : > { %v1500_v25 = vmul.f32 %v1349_v56, %v922_v28  ;;  %v1557_v46 = vadd.f32 %v1556_v63, %v1555_v35 }
 0x170   : > { %v1351_v62 = vpop.f32.mrf.mxu1  ;;  %v1875_v58 = vpop.f32.mrf.mxu0 }
 0x171   : > { %v1573_v7 = vadd.f32 %v1572_v44, %v1500_v25  ;;  %v1501_v32 = vmul.f32 %v1351_v62, %v923_v20  ;;  %v1466_v33 = vmul.f32 %v1875_v58, %v888_v9  ;;  %v1613_v0 = vcombine.low %v1557_v46, %v1568_v52 }
 0x172   : > { %v1878_v50 = vpop.f32.mrf.mxu1  ;;  %v1420_v51 = vpop.f32.mrf.mxu0  ;;  %v2858_v62 = vlaneseq }
 0x173   : > { %v1574_v10 = vrot.slane %v1573_v7, 4  ;;  %v1584_v47 = vadd.f32 %v1583_v60, %v1501_v32  ;;  %v1457_v6 = vmul.f32 %v1420_v51, %v879_v12  ;;  %v1484_v48 = vmul.f32 %v1878_v50, %v906_v1 }
 0x174   : > { %v1430_v28 = vpop.f32.mrf.mxu1  ;;  %v1635_v13 = vrot.slane %v1613_v0, %v2673_v21  ;;  %vm1679_vm1 = vcmp.lt.s32.totalorder %v2858_v62, 128 }
 0x175   : > { %v1575_v14 = vadd.f32 %v1574_v10, %v1573_v7  ;;  %v1585_v3 = vrot.slane %v1584_v47, 4  ;;  %v1591_v11 = vadd.f32 %v1466_v33, %v1457_v6  ;;  %v1475_v27 = vmul.f32 %v1430_v28, %v897_v41 }
 0x176   : > { %v1881_v49 = vpop.f32.mrf.mxu1 }
 0x177   : > { %v1576_v61 = vrot.slane %v1575_v14, 2  ;;  %v1586_v24 = vadd.f32 %v1585_v3, %v1584_v47  ;;  %v1592_v18 = vadd.f32 %v1591_v11, %v1475_v27  ;;  %v1502_v4 = vmul.f32 %v1881_v49, %v924_v40 }
 0x178   : > { %v1440_v15 = vpop.f32.mrf.mxu1 }
 0x179   : > { %v1577_v53 = vadd.f32 %v1576_v61, %v1575_v14  ;;  %v1587_v42 = vrot.slane %v1586_v24, 2  ;;  %v1493_v59 = vmul.f32 %v1440_v15, %v915_v19  ;;  %v1593_v2 = vadd.f32 %v1592_v18, %v1484_v48 }
 0x17b   : > { %v1578_v54 = vrot.slane %v1577_v53, 1  ;;  %v1588_v29 = vadd.f32 %v1587_v42, %v1586_v24  ;;  %v1594_v36 = vadd.f32 %v1593_v2, %v1493_v59 }
 0x17d   : > { %v1589_v39 = vrot.slane %v1588_v29, 1  ;;  %v1595_v23 = vadd.f32 %v1594_v36, %v1502_v4  ;;  %v1579_v16 = vadd.f32 %v1578_v54, %v1577_v53 }
 0x17f   : > { %v1590_v20 = vadd.f32 %v1589_v39, %v1588_v29  ;;  %v1596_v43 = vrot.slane %v1595_v23, 4 }
 0x181   : > { %v1614_v34 = vcombine.low %v1579_v16, %v1590_v20  ;;  %v1597_v8 = vadd.f32 %v1596_v43, %v1595_v23 }
 0x183   : > { %v1642_v31 = vrot.slane %v1614_v34, %v2673_v21  ;;  %v1598_v37 = vrot.slane %v1597_v8, 2 }
 0x185   : > { %v1644_v56 = vcombine.low %v1635_v13, %v1642_v31  ;;  %v1599_v9 = vadd.f32 %v1598_v37, %v1597_v8 }
 0x187   : > { %v1658_v38 = vrot.slane %v1644_v56, %v2673_v21  ;;  %v1600_v44 = vrot.slane %v1599_v9, 1 }
 0x189   : > { %v1659_v25 = vcombine.low %v1651_v57, %v1658_v38  ;;  %v1601_v12 = vadd.f32 %v1600_v44, %v1599_v9 }
 0x18b   : > { %1676 = vst [vmem:[%s177_s23] sm:$0xff] %v1659_v25  ;;  %v1666_v30 = vrot.slane %v1601_v12, %v2673_v21 }
 0x18d   : > { %v1673_v58 = vrot.slane %v1666_v30, %v2673_v21 }
 0x18f   : > { %1681 = vst.msk [vmem:[%s177_s23 + $0x8] sm:$0x1] %vm1679_vm1, %v1673_v58 }
 0x190 PF: > { %s13_s13 = sadd.s32 1, %s2006_s13   ;;  %s2859_s9 = smov %s1998_s11 }
 0x191   : > { %p10_p4 = scmp.ge.s32.totalorder %s13_s13, 6   ;;  %s2860_s10 = smov %s2002_s12 }
 0x192   : > { %s2861_s11 = smov %s2864_s15  ;;  %s2862_s12 = smov %s2868_s16 }
 0x193   :  { %12 = sbr.rel (!%p10_p4) target bundleno = 3 (0x3), region = 63 }
 0x198   :  { %1710 = vsyncpa [#allocation3], 1 }
 0x199   :  { %1712 = vsyncpa [#allocation3 + $0x1], 1 }

</bundles_post_ra>
